<compile_context>
chip_gen: v7x
topology: tpu7x:2x2x1
jax: 0.10.0
libtpu: 0.0.40
codegen_flags: <defaults>
</compile_context>

<pallas_src>
import jax
import jax.numpy as jnp
from jax import lax
from jax.experimental import pallas as pl
from jax.experimental.pallas import tpu as pltpu

HI = jax.lax.Precision.HIGHEST

_VMEM = pl.BlockSpec(memory_space=pltpu.MemorySpace.VMEM)

_BLOCK_NPARAMS = 5        # VsT, bsT, W12, cheb_w, cheb_b
_BRANCH_NARGS = 1 + 2 * _BLOCK_NPARAMS


# ----------------------------------------------------------------------------
# In-kernel building block (traced inline, operates on VMEM-resident values/refs)
# ----------------------------------------------------------------------------
def _spatial_cheb_block(x, A_offT, vsT_ref, bsT_ref, w12_ref, chw_ref, chb_ref):
    """One STBlock_noTime (SpatialAtt + ChebConv + ReLU) in node-transposed form.

    x      : (B, N, T1) f32 value (C == 1 folded away)
    A_offT : (N, N)     value: (A * (1 - I))^T, shared by all blocks
    vsT_ref: (N, N)     Vs^T
    bsT_ref: (N, N)     bs^T
    w12_ref: (2, T1)    row 0 = W1, row 1 = W3 * W2
    chw_ref: (K, T1, T2) Chebyshev weights
    chb_ref: (1, T2)    Chebyshev bias
    returns  (B, N, T2) f32 value.
    """
    B, N, T1 = x.shape
    K = chw_ref.shape[0]
    T2 = chb_ref.shape[1]

    # ---- SpatialAtt (C == 1): rank-1 score, kept transposed so nothing is transposed ----
    w1 = w12_ref[0:1, :]                                   # (1, T1)
    w2 = w12_ref[1:2, :]                                   # (1, T1), already scaled by W3
    u = jnp.sum(x * w1, axis=2)                            # (B, N)  = X @ W1
    v = jnp.sum(x * w2, axis=2)                            # (B, N)  = W3 * (X @ W2)
    # S^T score: s[b,i,j] = v[b,i] * u[b,j] + bs[j,i]
    s = v[:, :, None] * u[:, None, :] + bsT_ref[...][None]
    # softmax over the original node dim 1  ==  softmax over the last axis here
    s = s - jnp.max(s, axis=2, keepdims=True)
    e = jnp.exp(s)
    s = e / jnp.sum(e, axis=2, keepdims=True)
    # (Vs @ s)^T = s^T @ Vs^T  ->  one 2-D MXU matmul on the folded (B*N, N) slab
    s = jnp.dot(s.reshape(B * N, N), vsT_ref[...],
                preferred_element_type=jnp.float32).reshape(B, N, N)
    s = s - jnp.max(s, axis=2, keepdims=True)
    e = jnp.exp(s)
    S_T = e / jnp.sum(e, axis=2, keepdims=True)            # S_T[b,i,j] = S[b,j,i]

    # ---- scaled Laplacian of A_hat = A * S (PyG ChebConv: sym norm, lambda_max = 2) ----
    # TODO(synk): getGCNParams is not given in the spec; torch_geometric dense_to_sparse
    # semantics (edge (i, j) carries A_hat[b, i, j], PyG aggregates at the edge target) are
    # assumed, which yields the transposed normalized propagation matrix used below.
    A_hatT = A_offT[None] * S_T                            # (B, N, N), diag pre-removed
    deg = jnp.sum(A_hatT, axis=1)                          # (B, N)  out-degree of A_hat_off
    dinv = jnp.where(deg > 0, lax.rsqrt(deg), 0.0)         # deg^-1/2 with inf -> 0
    # M = -L_hat_prop (kept positive); the minus is folded into the weight accumulation.
    M = dinv[:, :, None] * A_hatT * dinv[:, None, :]       # (B, N, N)

    def prop(y):                                           # y: (B, N, T1)
        return jnp.einsum('bij,bjt->bit', M, y, preferred_element_type=jnp.float32)

    # ---- Chebyshev: U_0 = x, U_k = 2 M U_{k-1} - U_{k-2}, Tx_k = (-1)^k U_k,
    #      out = sum_k Tx_k @ W_k accumulated as K small MXU dots (no lane concat).
    acc = jnp.dot(x.reshape(B * N, T1), chw_ref[0], preferred_element_type=jnp.float32)
    if K > 1:
        t_prev, t_cur = x, prop(x)
        acc = acc - jnp.dot(t_cur.reshape(B * N, T1), chw_ref[1],
                            preferred_element_type=jnp.float32)
        for k in range(2, K):
            t_prev, t_cur = t_cur, 2.0 * prop(t_cur) - t_prev
            term = jnp.dot(t_cur.reshape(B * N, T1), chw_ref[k],
                           preferred_element_type=jnp.float32)
            acc = acc + term if (k % 2 == 0) else acc - term
    out = jnp.maximum(acc + chb_ref[...], 0.0)             # (B*N, T2)
    return out.reshape(B, N, T2)


# ----------------------------------------------------------------------------
# Fused kernel: entire forward in one invocation, everything in VMEM
# ----------------------------------------------------------------------------
def astgcn_fused_kernel(*refs):
    """Ref layout (see astgcn_notime):
       [A_offT, lin_w, lin_b, wf,
        (x_b, 5 x block1 params, 5 x block2 params) for each of the 3 branches,
        out_ref]
    """
    a_offT_ref, lin_w_ref, lin_b_ref, wf_ref = refs[0:4]
    out_ref = refs[-1]

    A_offT = a_offT_ref[...]                               # shared by all 6 blocks
    lin_w = lin_w_ref[...]                                 # (F, Tp)
    lin_b = lin_b_ref[...]                                 # (1, Tp)
    wf = wf_ref[...]                                       # (3, Tp)

    out = None
    for b in range(3):
        base = 4 + b * _BRANCH_NARGS
        x_ref = refs[base]
        p1 = refs[base + 1: base + 1 + _BLOCK_NPARAMS]
        p2 = refs[base + 1 + _BLOCK_NPARAMS: base + _BRANCH_NARGS]

        y = _spatial_cheb_block(x_ref[...], A_offT, *p1)   # (B, N, 64)
        y = _spatial_cheb_block(y, A_offT, *p2)            # (B, N, 32)

        B, N, F = y.shape
        # NOTE: the PyTorch forward applies self.LinearD to ALL three branches
        # (LinearH / LinearW are unused); that behaviour is reproduced here.
        z = jnp.dot(y.reshape(B * N, F), lin_w, preferred_element_type=jnp.float32) + lin_b
        z = jnp.maximum(z, 0.0) * wf[b:b + 1, :]           # fold Fusion weight per branch
        out = z if out is None else out + z

    out_ref[...] = out.astype(out_ref.dtype)               # one (B*N, Tp) store


# ----------------------------------------------------------------------------
# Wrapper
# ----------------------------------------------------------------------------
def _block_args(p):
    """Host-side parameter packing for one STBlock (transposed views, W3 folded into W2)."""
    T1 = p['W1'].shape[0]
    T2 = p['cheb_w'].shape[2]
    w12 = jnp.stack([p['W1'], p['W3'][0] * p['W2'][0]], axis=0)         # (2, T1)
    return [p['Vs'].T.astype(jnp.float32),
            p['bs'].T.astype(jnp.float32),
            w12.astype(jnp.float32),
            p['cheb_w'].astype(jnp.float32),
            p['cheb_b'].reshape(1, T2).astype(jnp.float32)]


def astgcn_notime(Xh, Xd, Xw, A, params):
    """Full ASTGCN_noTime forward as ONE fused pallas_call."""
    B, N = Xh.shape[0], Xh.shape[1]
    Tp = params['linD_w'].shape[0]

    A_offT = (A * (1.0 - jnp.eye(N, dtype=A.dtype))).T.astype(jnp.float32)
    args = [A_offT,
            params['linD_w'].T.astype(jnp.float32),                     # (F, Tp)
            params['linD_b'].reshape(1, Tp).astype(jnp.float32),        # (1, Tp)
            jnp.stack([params['Wh'], params['Wd'], params['Ww']],
                      axis=0).astype(jnp.float32)]                      # (3, Tp)

    for X, k1, k2 in ((Xh, 'sptH1', 'sptH2'),
                      (Xd, 'sptD1', 'sptD2'),
                      (Xw, 'sptW1', 'sptW2')):
        T1 = X.shape[3]
        args.append(X.reshape(B, N, T1).astype(jnp.float32))
        args += _block_args(params[k1])
        args += _block_args(params[k2])

    out = pl.pallas_call(
        astgcn_fused_kernel,
        out_shape=jax.ShapeDtypeStruct((B * N, Tp), jnp.float32),
        in_specs=[_VMEM] * len(args),
        out_specs=_VMEM,
    )(*args)
    return out.reshape(B, N, 1, Tp)


# ----------------------------------------------------------------------------
# Pure-JAX reference (literal transcription of the PyTorch forward)
# ----------------------------------------------------------------------------
def _stblock_ref(X4, A, p):
    B, N, _, T1 = X4.shape
    K, _, T2 = p['cheb_w'].shape
    # SpatialAtt
    W1x = jnp.einsum('bnct,t->bnc', X4, p['W1'], precision=HI)
    W3x = jnp.einsum('c,bnct->bnt', p['W3'], X4, precision=HI)
    W3xT = jnp.transpose(W3x, (0, 2, 1))
    W1xW2 = jnp.einsum('bnc,ct->bnt', W1x, p['W2'], precision=HI)
    S_ = jnp.einsum('bnt,btm->bnm', W1xW2, W3xT, precision=HI) + p['bs'][None]
    S_ = jax.nn.softmax(S_, axis=1)
    S_ = jnp.einsum('ij,bjk->bik', p['Vs'], S_, precision=HI)
    S = jax.nn.softmax(S_, axis=1)
    # ChebConv on A_hat = A * S  (sym norm, lambda_max = 2, aggregate at edge target)
    A_hat = A[None] * S
    x = X4.reshape(B, N, T1)
    A_off = A_hat * (1.0 - jnp.eye(N, dtype=x.dtype))[None]
    deg = jnp.sum(A_off, axis=2)
    dinv = jnp.where(deg > 0, 1.0 / jnp.sqrt(deg), 0.0)
    Lhat = -(dinv[:, :, None] * A_off * dinv[:, None, :])     # [b, source, target]
    prop = lambda y: jnp.einsum('bst,bsx->btx', Lhat, y, precision=HI)
    W = p['cheb_w']
    out = jnp.einsum('bnt,to->bno', x, W[0], precision=HI)
    tx_prev, tx_cur = x, prop(x)
    out = out + jnp.einsum('bnt,to->bno', tx_cur, W[1], precision=HI)
    for k in range(2, K):
        tx_next = 2.0 * prop(tx_cur) - tx_prev
        out = out + jnp.einsum('bnt,to->bno', tx_next, W[k], precision=HI)
        tx_prev, tx_cur = tx_cur, tx_next
    out = jnp.maximum(out + p['cheb_b'][None, None, :], 0.0)
    return out.reshape(B, N, 1, T2)


def astgcn_ref(Xh, Xd, Xw, A, params):
    def branch(X, p1, p2):
        Y = _stblock_ref(_stblock_ref(X, A, p1), A, p2)
        Z = jnp.einsum('bnco,po->bncp', Y, params['linD_w'], precision=HI) + params['linD_b']
        return jnp.maximum(Z, 0.0)
    Yh = branch(Xh, params['sptH1'], params['sptH2'])
    Yd = branch(Xd, params['sptD1'], params['sptD2'])
    Yw = branch(Xw, params['sptW1'], params['sptW2'])
    return params['Wh'] * Yh + params['Wd'] * Yd + params['Ww'] * Yw


# ----------------------------------------------------------------------------
# Test
# ----------------------------------------------------------------------------
def _init_stblock(key, N, T1, T2, K):
    k = jax.random.split(key, 7)
    return dict(
        Vs=jax.random.normal(k[0], (N, N), jnp.float32) * (1.0 / N ** 0.5),
        bs=jax.random.normal(k[1], (N, N), jnp.float32) * 0.3,
        W1=jax.random.uniform(k[2], (T1,), jnp.float32) * (4.0 / T1),
        W2=jax.random.normal(k[3], (1, T1), jnp.float32) * (1.0 / T1 ** 0.5),
        W3=jax.random.uniform(k[4], (1,), jnp.float32),
        cheb_w=jax.random.normal(k[5], (K, T1, T2), jnp.float32) * 0.1,
        cheb_b=jax.random.normal(k[6], (T2,), jnp.float32) * 0.1,
    )


if __name__ == "__main__":
    # ASTGCN_noTime(N, Th, Td, Tw, Tp); internal widths 64 -> 32 and K = 3 are fixed.
    B, N, Th, Td, Tw, Tp, K = 2, 8, 16, 12, 8, 12, 3
    T_MID1, T_MID2 = 64, 32

    key = jax.random.PRNGKey(0)
    kx, kp = jax.random.split(key)
    kxh, kxd, kxw, ka = jax.random.split(kx, 4)
    Xh = jax.random.normal(kxh, (B, N, 1, Th), jnp.float32)
    Xd = jax.random.normal(kxd, (B, N, 1, Td), jnp.float32)
    Xw = jax.random.normal(kxw, (B, N, 1, Tw), jnp.float32)
    A_raw = jax.random.uniform(ka, (N, N), jnp.float32)
    A = (A_raw + A_raw.T) * 0.5            # symmetric, non-negative adjacency

    ks = jax.random.split(kp, 11)
    params = dict(
        sptH1=_init_stblock(ks[0], N, Th, T_MID1, K),
        sptH2=_init_stblock(ks[1], N, T_MID1, T_MID2, K),
        sptD1=_init_stblock(ks[2], N, Td, T_MID1, K),
        sptD2=_init_stblock(ks[3], N, T_MID1, T_MID2, K),
        sptW1=_init_stblock(ks[4], N, Tw, T_MID1, K),
        sptW2=_init_stblock(ks[5], N, T_MID1, T_MID2, K),
        linD_w=jax.random.normal(ks[6], (Tp, T_MID2), jnp.float32) * 0.1,
        linD_b=jax.random.normal(ks[7], (Tp,), jnp.float32) * 0.1,
        Wh=jax.random.uniform(ks[8], (Tp,), jnp.float32),
        Wd=jax.random.uniform(ks[9], (Tp,), jnp.float32),
        Ww=jax.random.uniform(ks[10], (Tp,), jnp.float32),
    )

    out = jax.jit(astgcn_notime)(Xh, Xd, Xw, A, params)
    out = jax.block_until_ready(out)

    ref = astgcn_ref(Xh, Xd, Xw, A, params)
    assert out.shape == (B, N, 1, Tp), out.shape
    max_err = float(jnp.max(jnp.abs(out - ref)))
    assert jnp.allclose(out, ref, atol=5e-4, rtol=5e-4), f"mismatch vs reference: {max_err}"

    print("KERNEL_OK")
</pallas_src>

<mosaic_0001>
module attributes {stable_mosaic.version = 11 : i64} {
  func.func @astgcn_fused_kernel(%arg0: memref<8x8xf32, #tpu.memory_space<vmem>>, %arg1: memref<32x12xf32, #tpu.memory_space<vmem>>, %arg2: memref<1x12xf32, #tpu.memory_space<vmem>>, %arg3: memref<3x12xf32, #tpu.memory_space<vmem>>, %arg4: memref<2x8x16xf32, #tpu.memory_space<vmem>>, %arg5: memref<8x8xf32, #tpu.memory_space<vmem>>, %arg6: memref<8x8xf32, #tpu.memory_space<vmem>>, %arg7: memref<2x16xf32, #tpu.memory_space<vmem>>, %arg8: memref<3x16x64xf32, #tpu.memory_space<vmem>>, %arg9: memref<1x64xf32, #tpu.memory_space<vmem>>, %arg10: memref<8x8xf32, #tpu.memory_space<vmem>>, %arg11: memref<8x8xf32, #tpu.memory_space<vmem>>, %arg12: memref<2x64xf32, #tpu.memory_space<vmem>>, %arg13: memref<3x64x32xf32, #tpu.memory_space<vmem>>, %arg14: memref<1x32xf32, #tpu.memory_space<vmem>>, %arg15: memref<2x8x12xf32, #tpu.memory_space<vmem>>, %arg16: memref<8x8xf32, #tpu.memory_space<vmem>>, %arg17: memref<8x8xf32, #tpu.memory_space<vmem>>, %arg18: memref<2x12xf32, #tpu.memory_space<vmem>>, %arg19: memref<3x12x64xf32, #tpu.memory_space<vmem>>, %arg20: memref<1x64xf32, #tpu.memory_space<vmem>>, %arg21: memref<8x8xf32, #tpu.memory_space<vmem>>, %arg22: memref<8x8xf32, #tpu.memory_space<vmem>>, %arg23: memref<2x64xf32, #tpu.memory_space<vmem>>, %arg24: memref<3x64x32xf32, #tpu.memory_space<vmem>>, %arg25: memref<1x32xf32, #tpu.memory_space<vmem>>, %arg26: memref<2x8x8xf32, #tpu.memory_space<vmem>>, %arg27: memref<8x8xf32, #tpu.memory_space<vmem>>, %arg28: memref<8x8xf32, #tpu.memory_space<vmem>>, %arg29: memref<2x8xf32, #tpu.memory_space<vmem>>, %arg30: memref<3x8x64xf32, #tpu.memory_space<vmem>>, %arg31: memref<1x64xf32, #tpu.memory_space<vmem>>, %arg32: memref<8x8xf32, #tpu.memory_space<vmem>>, %arg33: memref<8x8xf32, #tpu.memory_space<vmem>>, %arg34: memref<2x64xf32, #tpu.memory_space<vmem>>, %arg35: memref<3x64x32xf32, #tpu.memory_space<vmem>>, %arg36: memref<1x32xf32, #tpu.memory_space<vmem>>, %arg37: memref<16x12xf32, #tpu.memory_space<vmem>>) attributes {dimension_semantics = [], scalar_prefetch = 0 : i64, scratch_operands = 0 : i64, tpu.core_type = #tpu.core_type<tc>} {
    %c0 = arith.constant 0 : index
    %c0_0 = arith.constant 0 : index
    %0 = vector.load %arg0[%c0, %c0_0] : memref<8x8xf32, #tpu.memory_space<vmem>>, vector<8x8xf32>
    %c0_1 = arith.constant 0 : index
    %c0_2 = arith.constant 0 : index
    %1 = vector.load %arg1[%c0_1, %c0_2] : memref<32x12xf32, #tpu.memory_space<vmem>>, vector<32x12xf32>
    %c0_3 = arith.constant 0 : index
    %c0_4 = arith.constant 0 : index
    %2 = vector.load %arg2[%c0_3, %c0_4] : memref<1x12xf32, #tpu.memory_space<vmem>>, vector<1x12xf32>
    %c0_5 = arith.constant 0 : index
    %c0_6 = arith.constant 0 : index
    %3 = vector.load %arg3[%c0_5, %c0_6] : memref<3x12xf32, #tpu.memory_space<vmem>>, vector<3x12xf32>
    %c0_7 = arith.constant 0 : index
    %c0_8 = arith.constant 0 : index
    %c0_9 = arith.constant 0 : index
    %4 = vector.load %arg4[%c0_7, %c0_8, %c0_9] : memref<2x8x16xf32, #tpu.memory_space<vmem>>, vector<2x8x16xf32>
    %c0_10 = arith.constant 0 : index
    %c0_11 = arith.constant 0 : index
    %5 = vector.load %arg7[%c0_10, %c0_11] : memref<2x16xf32, #tpu.memory_space<vmem>>, vector<1x16xf32>
    %c1 = arith.constant 1 : index
    %c0_12 = arith.constant 0 : index
    %6 = vector.load %arg7[%c1, %c0_12] : memref<2x16xf32, #tpu.memory_space<vmem>>, vector<1x16xf32>
    %7 = vector.shape_cast %5 : vector<1x16xf32> to vector<1x1x16xf32>
    %8 = vector.broadcast %7 : vector<1x1x16xf32> to vector<2x8x16xf32>
    %9 = arith.mulf %4, %8 : vector<2x8x16xf32>
    %cst = arith.constant dense<0.000000e+00> : vector<2x8xf32>
    %10 = vector.multi_reduction <add>, %9, %cst [2] : vector<2x8x16xf32> to vector<2x8xf32>
    %11 = vector.shape_cast %6 : vector<1x16xf32> to vector<1x1x16xf32>
    %12 = vector.broadcast %11 : vector<1x1x16xf32> to vector<2x8x16xf32>
    %13 = arith.mulf %4, %12 : vector<2x8x16xf32>
    %cst_13 = arith.constant dense<0.000000e+00> : vector<2x8xf32>
    %14 = vector.multi_reduction <add>, %13, %cst_13 [2] : vector<2x8x16xf32> to vector<2x8xf32>
    %15 = vector.shape_cast %14 : vector<2x8xf32> to vector<2x8x1xf32>
    %16 = vector.shape_cast %10 : vector<2x8xf32> to vector<2x1x8xf32>
    %17 = vector.broadcast %15 : vector<2x8x1xf32> to vector<2x8x8xf32>
    %18 = vector.broadcast %16 : vector<2x1x8xf32> to vector<2x8x8xf32>
    %19 = arith.mulf %17, %18 : vector<2x8x8xf32>
    %c0_14 = arith.constant 0 : index
    %c0_15 = arith.constant 0 : index
    %20 = vector.load %arg6[%c0_14, %c0_15] : memref<8x8xf32, #tpu.memory_space<vmem>>, vector<8x8xf32>
    %21 = vector.shape_cast %20 : vector<8x8xf32> to vector<1x8x8xf32>
    %22 = vector.broadcast %21 : vector<1x8x8xf32> to vector<2x8x8xf32>
    %23 = arith.addf %19, %22 : vector<2x8x8xf32>
    %cst_16 = arith.constant dense<0xFF800000> : vector<2x8xf32>
    %24 = vector.multi_reduction <maximumf>, %23, %cst_16 [2] : vector<2x8x8xf32> to vector<2x8xf32>
    %25 = vector.shape_cast %24 : vector<2x8xf32> to vector<2x8x1xf32>
    %26 = vector.broadcast %25 : vector<2x8x1xf32> to vector<2x8x8xf32>
    %27 = arith.subf %23, %26 : vector<2x8x8xf32>
    %28 = math.exp %27 : vector<2x8x8xf32>
    %cst_17 = arith.constant dense<0.000000e+00> : vector<2x8xf32>
    %29 = vector.multi_reduction <add>, %28, %cst_17 [2] : vector<2x8x8xf32> to vector<2x8xf32>
    %30 = vector.shape_cast %29 : vector<2x8xf32> to vector<2x8x1xf32>
    %31 = vector.broadcast %30 : vector<2x8x1xf32> to vector<2x8x8xf32>
    %32 = arith.divf %28, %31 : vector<2x8x8xf32>
    %33 = vector.shape_cast %32 : vector<2x8x8xf32> to vector<16x8xf32>
    %c0_18 = arith.constant 0 : index
    %c0_19 = arith.constant 0 : index
    %34 = vector.load %arg5[%c0_18, %c0_19] : memref<8x8xf32, #tpu.memory_space<vmem>>, vector<8x8xf32>
    %cst_20 = arith.constant dense<0.000000e+00> : vector<16x8xf32>
    %35 = tpu.matmul %33, %34, %cst_20 {dimension_numbers = #tpu.dot_dimension_numbers<[1], [0], [0], [1], [0, 0, 1, 1], [], []>} : vector<16x8xf32>, vector<8x8xf32>, vector<16x8xf32> -> vector<16x8xf32>
    %36 = vector.shape_cast %35 : vector<16x8xf32> to vector<2x8x8xf32>
    %cst_21 = arith.constant dense<0xFF800000> : vector<2x8xf32>
    %37 = vector.multi_reduction <maximumf>, %36, %cst_21 [2] : vector<2x8x8xf32> to vector<2x8xf32>
    %38 = vector.shape_cast %37 : vector<2x8xf32> to vector<2x8x1xf32>
    %39 = vector.broadcast %38 : vector<2x8x1xf32> to vector<2x8x8xf32>
    %40 = arith.subf %36, %39 : vector<2x8x8xf32>
    %41 = math.exp %40 : vector<2x8x8xf32>
    %cst_22 = arith.constant dense<0.000000e+00> : vector<2x8xf32>
    %42 = vector.multi_reduction <add>, %41, %cst_22 [2] : vector<2x8x8xf32> to vector<2x8xf32>
    %43 = vector.shape_cast %42 : vector<2x8xf32> to vector<2x8x1xf32>
    %44 = vector.broadcast %43 : vector<2x8x1xf32> to vector<2x8x8xf32>
    %45 = arith.divf %41, %44 : vector<2x8x8xf32>
    %46 = vector.shape_cast %0 : vector<8x8xf32> to vector<1x8x8xf32>
    %47 = vector.broadcast %46 : vector<1x8x8xf32> to vector<2x8x8xf32>
    %48 = arith.mulf %47, %45 : vector<2x8x8xf32>
    %cst_23 = arith.constant dense<0.000000e+00> : vector<2x8xf32>
    %49 = vector.multi_reduction <add>, %48, %cst_23 [1] : vector<2x8x8xf32> to vector<2x8xf32>
    %cst_24 = arith.constant 0.000000e+00 : f32
    %50 = vector.broadcast %cst_24 : f32 to vector<2x8xf32>
    %51 = arith.cmpf ogt, %49, %50 : vector<2x8xf32>
    %52 = math.rsqrt %49 : vector<2x8xf32>
    %cst_25 = arith.constant 0.000000e+00 : f32
    %53 = vector.broadcast %cst_25 : f32 to vector<2x8xf32>
    %54 = arith.select %51, %52, %53 : vector<2x8xi1>, vector<2x8xf32>
    %55 = vector.shape_cast %54 : vector<2x8xf32> to vector<2x8x1xf32>
    %56 = vector.broadcast %55 : vector<2x8x1xf32> to vector<2x8x8xf32>
    %57 = arith.mulf %56, %48 : vector<2x8x8xf32>
    %58 = vector.shape_cast %54 : vector<2x8xf32> to vector<2x1x8xf32>
    %59 = vector.broadcast %58 : vector<2x1x8xf32> to vector<2x8x8xf32>
    %60 = arith.mulf %57, %59 : vector<2x8x8xf32>
    %61 = vector.shape_cast %4 : vector<2x8x16xf32> to vector<16x16xf32>
    %c0_26 = arith.constant 0 : index
    %c0_27 = arith.constant 0 : index
    %c0_28 = arith.constant 0 : index
    %62 = vector.load %arg8[%c0_26, %c0_27, %c0_28] : memref<3x16x64xf32, #tpu.memory_space<vmem>>, vector<1x16x64xf32>
    %63 = vector.shape_cast %62 : vector<1x16x64xf32> to vector<16x64xf32>
    %cst_29 = arith.constant dense<0.000000e+00> : vector<16x64xf32>
    %64 = tpu.matmul %61, %63, %cst_29 {dimension_numbers = #tpu.dot_dimension_numbers<[1], [0], [0], [1], [0, 0, 1, 1], [], []>} : vector<16x16xf32>, vector<16x64xf32>, vector<16x64xf32> -> vector<16x64xf32>
    "tpu.trace_start"() <{level = 10 : i32, message = "bij,bjt->bit"}> : () -> ()
    %cst_30 = arith.constant dense<0.000000e+00> : vector<2x8x16xf32>
    %65 = tpu.matmul %60, %4, %cst_30 {dimension_numbers = #tpu.dot_dimension_numbers<[2], [1], [1], [2], [0, 0, 0, 1, 1, 2], [0], [0]>} : vector<2x8x8xf32>, vector<2x8x16xf32>, vector<2x8x16xf32> -> vector<2x8x16xf32>
    "tpu.trace_stop"() : () -> ()
    %66 = vector.shape_cast %65 : vector<2x8x16xf32> to vector<16x16xf32>
    %c1_31 = arith.constant 1 : index
    %c0_32 = arith.constant 0 : index
    %c0_33 = arith.constant 0 : index
    %67 = vector.load %arg8[%c1_31, %c0_32, %c0_33] : memref<3x16x64xf32, #tpu.memory_space<vmem>>, vector<1x16x64xf32>
    %68 = vector.shape_cast %67 : vector<1x16x64xf32> to vector<16x64xf32>
    %cst_34 = arith.constant dense<0.000000e+00> : vector<16x64xf32>
    %69 = tpu.matmul %66, %68, %cst_34 {dimension_numbers = #tpu.dot_dimension_numbers<[1], [0], [0], [1], [0, 0, 1, 1], [], []>} : vector<16x16xf32>, vector<16x64xf32>, vector<16x64xf32> -> vector<16x64xf32>
    %70 = arith.subf %64, %69 : vector<16x64xf32>
    "tpu.trace_start"() <{level = 10 : i32, message = "bij,bjt->bit"}> : () -> ()
    %cst_35 = arith.constant dense<0.000000e+00> : vector<2x8x16xf32>
    %71 = tpu.matmul %60, %65, %cst_35 {dimension_numbers = #tpu.dot_dimension_numbers<[2], [1], [1], [2], [0, 0, 0, 1, 1, 2], [0], [0]>} : vector<2x8x8xf32>, vector<2x8x16xf32>, vector<2x8x16xf32> -> vector<2x8x16xf32>
    "tpu.trace_stop"() : () -> ()
    %cst_36 = arith.constant 2.000000e+00 : f32
    %72 = vector.broadcast %cst_36 : f32 to vector<2x8x16xf32>
    %73 = arith.mulf %72, %71 : vector<2x8x16xf32>
    %74 = arith.subf %73, %4 : vector<2x8x16xf32>
    %75 = vector.shape_cast %74 : vector<2x8x16xf32> to vector<16x16xf32>
    %c2 = arith.constant 2 : index
    %c0_37 = arith.constant 0 : index
    %c0_38 = arith.constant 0 : index
    %76 = vector.load %arg8[%c2, %c0_37, %c0_38] : memref<3x16x64xf32, #tpu.memory_space<vmem>>, vector<1x16x64xf32>
    %77 = vector.shape_cast %76 : vector<1x16x64xf32> to vector<16x64xf32>
    %cst_39 = arith.constant dense<0.000000e+00> : vector<16x64xf32>
    %78 = tpu.matmul %75, %77, %cst_39 {dimension_numbers = #tpu.dot_dimension_numbers<[1], [0], [0], [1], [0, 0, 1, 1], [], []>} : vector<16x16xf32>, vector<16x64xf32>, vector<16x64xf32> -> vector<16x64xf32>
    %79 = arith.addf %70, %78 : vector<16x64xf32>
    %c0_40 = arith.constant 0 : index
    %c0_41 = arith.constant 0 : index
    %80 = vector.load %arg9[%c0_40, %c0_41] : memref<1x64xf32, #tpu.memory_space<vmem>>, vector<1x64xf32>
    %81 = vector.broadcast %80 : vector<1x64xf32> to vector<16x64xf32>
    %82 = arith.addf %79, %81 : vector<16x64xf32>
    %cst_42 = arith.constant 0.000000e+00 : f32
    %83 = vector.broadcast %cst_42 : f32 to vector<16x64xf32>
    %84 = arith.maximumf %82, %83 : vector<16x64xf32>
    %85 = vector.shape_cast %84 : vector<16x64xf32> to vector<2x8x64xf32>
    %c0_43 = arith.constant 0 : index
    %c0_44 = arith.constant 0 : index
    %86 = vector.load %arg12[%c0_43, %c0_44] : memref<2x64xf32, #tpu.memory_space<vmem>>, vector<1x64xf32>
    %c1_45 = arith.constant 1 : index
    %c0_46 = arith.constant 0 : index
    %87 = vector.load %arg12[%c1_45, %c0_46] : memref<2x64xf32, #tpu.memory_space<vmem>>, vector<1x64xf32>
    %88 = vector.shape_cast %86 : vector<1x64xf32> to vector<1x1x64xf32>
    %89 = vector.broadcast %88 : vector<1x1x64xf32> to vector<2x8x64xf32>
    %90 = arith.mulf %85, %89 : vector<2x8x64xf32>
    %cst_47 = arith.constant dense<0.000000e+00> : vector<2x8xf32>
    %91 = vector.multi_reduction <add>, %90, %cst_47 [2] : vector<2x8x64xf32> to vector<2x8xf32>
    %92 = vector.shape_cast %87 : vector<1x64xf32> to vector<1x1x64xf32>
    %93 = vector.broadcast %92 : vector<1x1x64xf32> to vector<2x8x64xf32>
    %94 = arith.mulf %85, %93 : vector<2x8x64xf32>
    %cst_48 = arith.constant dense<0.000000e+00> : vector<2x8xf32>
    %95 = vector.multi_reduction <add>, %94, %cst_48 [2] : vector<2x8x64xf32> to vector<2x8xf32>
    %96 = vector.shape_cast %95 : vector<2x8xf32> to vector<2x8x1xf32>
    %97 = vector.shape_cast %91 : vector<2x8xf32> to vector<2x1x8xf32>
    %98 = vector.broadcast %96 : vector<2x8x1xf32> to vector<2x8x8xf32>
    %99 = vector.broadcast %97 : vector<2x1x8xf32> to vector<2x8x8xf32>
    %100 = arith.mulf %98, %99 : vector<2x8x8xf32>
    %c0_49 = arith.constant 0 : index
    %c0_50 = arith.constant 0 : index
    %101 = vector.load %arg11[%c0_49, %c0_50] : memref<8x8xf32, #tpu.memory_space<vmem>>, vector<8x8xf32>
    %102 = vector.shape_cast %101 : vector<8x8xf32> to vector<1x8x8xf32>
    %103 = vector.broadcast %102 : vector<1x8x8xf32> to vector<2x8x8xf32>
    %104 = arith.addf %100, %103 : vector<2x8x8xf32>
    %cst_51 = arith.constant dense<0xFF800000> : vector<2x8xf32>
    %105 = vector.multi_reduction <maximumf>, %104, %cst_51 [2] : vector<2x8x8xf32> to vector<2x8xf32>
    %106 = vector.shape_cast %105 : vector<2x8xf32> to vector<2x8x1xf32>
    %107 = vector.broadcast %106 : vector<2x8x1xf32> to vector<2x8x8xf32>
    %108 = arith.subf %104, %107 : vector<2x8x8xf32>
    %109 = math.exp %108 : vector<2x8x8xf32>
    %cst_52 = arith.constant dense<0.000000e+00> : vector<2x8xf32>
    %110 = vector.multi_reduction <add>, %109, %cst_52 [2] : vector<2x8x8xf32> to vector<2x8xf32>
    %111 = vector.shape_cast %110 : vector<2x8xf32> to vector<2x8x1xf32>
    %112 = vector.broadcast %111 : vector<2x8x1xf32> to vector<2x8x8xf32>
    %113 = arith.divf %109, %112 : vector<2x8x8xf32>
    %114 = vector.shape_cast %113 : vector<2x8x8xf32> to vector<16x8xf32>
    %c0_53 = arith.constant 0 : index
    %c0_54 = arith.constant 0 : index
    %115 = vector.load %arg10[%c0_53, %c0_54] : memref<8x8xf32, #tpu.memory_space<vmem>>, vector<8x8xf32>
    %cst_55 = arith.constant dense<0.000000e+00> : vector<16x8xf32>
    %116 = tpu.matmul %114, %115, %cst_55 {dimension_numbers = #tpu.dot_dimension_numbers<[1], [0], [0], [1], [0, 0, 1, 1], [], []>} : vector<16x8xf32>, vector<8x8xf32>, vector<16x8xf32> -> vector<16x8xf32>
    %117 = vector.shape_cast %116 : vector<16x8xf32> to vector<2x8x8xf32>
    %cst_56 = arith.constant dense<0xFF800000> : vector<2x8xf32>
    %118 = vector.multi_reduction <maximumf>, %117, %cst_56 [2] : vector<2x8x8xf32> to vector<2x8xf32>
    %119 = vector.shape_cast %118 : vector<2x8xf32> to vector<2x8x1xf32>
    %120 = vector.broadcast %119 : vector<2x8x1xf32> to vector<2x8x8xf32>
    %121 = arith.subf %117, %120 : vector<2x8x8xf32>
    %122 = math.exp %121 : vector<2x8x8xf32>
    %cst_57 = arith.constant dense<0.000000e+00> : vector<2x8xf32>
    %123 = vector.multi_reduction <add>, %122, %cst_57 [2] : vector<2x8x8xf32> to vector<2x8xf32>
    %124 = vector.shape_cast %123 : vector<2x8xf32> to vector<2x8x1xf32>
    %125 = vector.broadcast %124 : vector<2x8x1xf32> to vector<2x8x8xf32>
    %126 = arith.divf %122, %125 : vector<2x8x8xf32>
    %127 = vector.shape_cast %0 : vector<8x8xf32> to vector<1x8x8xf32>
    %128 = vector.broadcast %127 : vector<1x8x8xf32> to vector<2x8x8xf32>
    %129 = arith.mulf %128, %126 : vector<2x8x8xf32>
    %cst_58 = arith.constant dense<0.000000e+00> : vector<2x8xf32>
    %130 = vector.multi_reduction <add>, %129, %cst_58 [1] : vector<2x8x8xf32> to vector<2x8xf32>
    %cst_59 = arith.constant 0.000000e+00 : f32
    %131 = vector.broadcast %cst_59 : f32 to vector<2x8xf32>
    %132 = arith.cmpf ogt, %130, %131 : vector<2x8xf32>
    %133 = math.rsqrt %130 : vector<2x8xf32>
    %cst_60 = arith.constant 0.000000e+00 : f32
    %134 = vector.broadcast %cst_60 : f32 to vector<2x8xf32>
    %135 = arith.select %132, %133, %134 : vector<2x8xi1>, vector<2x8xf32>
    %136 = vector.shape_cast %135 : vector<2x8xf32> to vector<2x8x1xf32>
    %137 = vector.broadcast %136 : vector<2x8x1xf32> to vector<2x8x8xf32>
    %138 = arith.mulf %137, %129 : vector<2x8x8xf32>
    %139 = vector.shape_cast %135 : vector<2x8xf32> to vector<2x1x8xf32>
    %140 = vector.broadcast %139 : vector<2x1x8xf32> to vector<2x8x8xf32>
    %141 = arith.mulf %138, %140 : vector<2x8x8xf32>
    %142 = vector.shape_cast %85 : vector<2x8x64xf32> to vector<16x64xf32>
    %c0_61 = arith.constant 0 : index
    %c0_62 = arith.constant 0 : index
    %c0_63 = arith.constant 0 : index
    %143 = vector.load %arg13[%c0_61, %c0_62, %c0_63] : memref<3x64x32xf32, #tpu.memory_space<vmem>>, vector<1x64x32xf32>
    %144 = vector.shape_cast %143 : vector<1x64x32xf32> to vector<64x32xf32>
    %cst_64 = arith.constant dense<0.000000e+00> : vector<16x32xf32>
    %145 = tpu.matmul %142, %144, %cst_64 {dimension_numbers = #tpu.dot_dimension_numbers<[1], [0], [0], [1], [0, 0, 1, 1], [], []>} : vector<16x64xf32>, vector<64x32xf32>, vector<16x32xf32> -> vector<16x32xf32>
    "tpu.trace_start"() <{level = 10 : i32, message = "bij,bjt->bit"}> : () -> ()
    %cst_65 = arith.constant dense<0.000000e+00> : vector<2x8x64xf32>
    %146 = tpu.matmul %141, %85, %cst_65 {dimension_numbers = #tpu.dot_dimension_numbers<[2], [1], [1], [2], [0, 0, 0, 1, 1, 2], [0], [0]>} : vector<2x8x8xf32>, vector<2x8x64xf32>, vector<2x8x64xf32> -> vector<2x8x64xf32>
    "tpu.trace_stop"() : () -> ()
    %147 = vector.shape_cast %146 : vector<2x8x64xf32> to vector<16x64xf32>
    %c1_66 = arith.constant 1 : index
    %c0_67 = arith.constant 0 : index
    %c0_68 = arith.constant 0 : index
    %148 = vector.load %arg13[%c1_66, %c0_67, %c0_68] : memref<3x64x32xf32, #tpu.memory_space<vmem>>, vector<1x64x32xf32>
    %149 = vector.shape_cast %148 : vector<1x64x32xf32> to vector<64x32xf32>
    %cst_69 = arith.constant dense<0.000000e+00> : vector<16x32xf32>
    %150 = tpu.matmul %147, %149, %cst_69 {dimension_numbers = #tpu.dot_dimension_numbers<[1], [0], [0], [1], [0, 0, 1, 1], [], []>} : vector<16x64xf32>, vector<64x32xf32>, vector<16x32xf32> -> vector<16x32xf32>
    %151 = arith.subf %145, %150 : vector<16x32xf32>
    "tpu.trace_start"() <{level = 10 : i32, message = "bij,bjt->bit"}> : () -> ()
    %cst_70 = arith.constant dense<0.000000e+00> : vector<2x8x64xf32>
    %152 = tpu.matmul %141, %146, %cst_70 {dimension_numbers = #tpu.dot_dimension_numbers<[2], [1], [1], [2], [0, 0, 0, 1, 1, 2], [0], [0]>} : vector<2x8x8xf32>, vector<2x8x64xf32>, vector<2x8x64xf32> -> vector<2x8x64xf32>
    "tpu.trace_stop"() : () -> ()
    %cst_71 = arith.constant 2.000000e+00 : f32
    %153 = vector.broadcast %cst_71 : f32 to vector<2x8x64xf32>
    %154 = arith.mulf %153, %152 : vector<2x8x64xf32>
    %155 = arith.subf %154, %85 : vector<2x8x64xf32>
    %156 = vector.shape_cast %155 : vector<2x8x64xf32> to vector<16x64xf32>
    %c2_72 = arith.constant 2 : index
    %c0_73 = arith.constant 0 : index
    %c0_74 = arith.constant 0 : index
    %157 = vector.load %arg13[%c2_72, %c0_73, %c0_74] : memref<3x64x32xf32, #tpu.memory_space<vmem>>, vector<1x64x32xf32>
    %158 = vector.shape_cast %157 : vector<1x64x32xf32> to vector<64x32xf32>
    %cst_75 = arith.constant dense<0.000000e+00> : vector<16x32xf32>
    %159 = tpu.matmul %156, %158, %cst_75 {dimension_numbers = #tpu.dot_dimension_numbers<[1], [0], [0], [1], [0, 0, 1, 1], [], []>} : vector<16x64xf32>, vector<64x32xf32>, vector<16x32xf32> -> vector<16x32xf32>
    %160 = arith.addf %151, %159 : vector<16x32xf32>
    %c0_76 = arith.constant 0 : index
    %c0_77 = arith.constant 0 : index
    %161 = vector.load %arg14[%c0_76, %c0_77] : memref<1x32xf32, #tpu.memory_space<vmem>>, vector<1x32xf32>
    %162 = vector.broadcast %161 : vector<1x32xf32> to vector<16x32xf32>
    %163 = arith.addf %160, %162 : vector<16x32xf32>
    %cst_78 = arith.constant 0.000000e+00 : f32
    %164 = vector.broadcast %cst_78 : f32 to vector<16x32xf32>
    %165 = arith.maximumf %163, %164 : vector<16x32xf32>
    %166 = vector.shape_cast %165 : vector<16x32xf32> to vector<2x8x32xf32>
    %167 = vector.shape_cast %166 : vector<2x8x32xf32> to vector<16x32xf32>
    %cst_79 = arith.constant dense<0.000000e+00> : vector<16x12xf32>
    %168 = tpu.matmul %167, %1, %cst_79 {dimension_numbers = #tpu.dot_dimension_numbers<[1], [0], [0], [1], [0, 0, 1, 1], [], []>} : vector<16x32xf32>, vector<32x12xf32>, vector<16x12xf32> -> vector<16x12xf32>
    %169 = vector.broadcast %2 : vector<1x12xf32> to vector<16x12xf32>
    %170 = arith.addf %168, %169 : vector<16x12xf32>
    %cst_80 = arith.constant 0.000000e+00 : f32
    %171 = vector.broadcast %cst_80 : f32 to vector<16x12xf32>
    %172 = arith.maximumf %170, %171 : vector<16x12xf32>
    %173 = vector.extract_strided_slice %3 {offsets = [0, 0], sizes = [1, 12], strides = [1, 1]} : vector<3x12xf32> to vector<1x12xf32>
    %174 = vector.broadcast %173 : vector<1x12xf32> to vector<16x12xf32>
    %175 = arith.mulf %172, %174 : vector<16x12xf32>
    %c0_81 = arith.constant 0 : index
    %c0_82 = arith.constant 0 : index
    %c0_83 = arith.constant 0 : index
    %176 = vector.load %arg15[%c0_81, %c0_82, %c0_83] : memref<2x8x12xf32, #tpu.memory_space<vmem>>, vector<2x8x12xf32>
    %c0_84 = arith.constant 0 : index
    %c0_85 = arith.constant 0 : index
    %177 = vector.load %arg18[%c0_84, %c0_85] : memref<2x12xf32, #tpu.memory_space<vmem>>, vector<1x12xf32>
    %c1_86 = arith.constant 1 : index
    %c0_87 = arith.constant 0 : index
    %178 = vector.load %arg18[%c1_86, %c0_87] : memref<2x12xf32, #tpu.memory_space<vmem>>, vector<1x12xf32>
    %179 = vector.shape_cast %177 : vector<1x12xf32> to vector<1x1x12xf32>
    %180 = vector.broadcast %179 : vector<1x1x12xf32> to vector<2x8x12xf32>
    %181 = arith.mulf %176, %180 : vector<2x8x12xf32>
    %cst_88 = arith.constant dense<0.000000e+00> : vector<2x8xf32>
    %182 = vector.multi_reduction <add>, %181, %cst_88 [2] : vector<2x8x12xf32> to vector<2x8xf32>
    %183 = vector.shape_cast %178 : vector<1x12xf32> to vector<1x1x12xf32>
    %184 = vector.broadcast %183 : vector<1x1x12xf32> to vector<2x8x12xf32>
    %185 = arith.mulf %176, %184 : vector<2x8x12xf32>
    %cst_89 = arith.constant dense<0.000000e+00> : vector<2x8xf32>
    %186 = vector.multi_reduction <add>, %185, %cst_89 [2] : vector<2x8x12xf32> to vector<2x8xf32>
    %187 = vector.shape_cast %186 : vector<2x8xf32> to vector<2x8x1xf32>
    %188 = vector.shape_cast %182 : vector<2x8xf32> to vector<2x1x8xf32>
    %189 = vector.broadcast %187 : vector<2x8x1xf32> to vector<2x8x8xf32>
    %190 = vector.broadcast %188 : vector<2x1x8xf32> to vector<2x8x8xf32>
    %191 = arith.mulf %189, %190 : vector<2x8x8xf32>
    %c0_90 = arith.constant 0 : index
    %c0_91 = arith.constant 0 : index
    %192 = vector.load %arg17[%c0_90, %c0_91] : memref<8x8xf32, #tpu.memory_space<vmem>>, vector<8x8xf32>
    %193 = vector.shape_cast %192 : vector<8x8xf32> to vector<1x8x8xf32>
    %194 = vector.broadcast %193 : vector<1x8x8xf32> to vector<2x8x8xf32>
    %195 = arith.addf %191, %194 : vector<2x8x8xf32>
    %cst_92 = arith.constant dense<0xFF800000> : vector<2x8xf32>
    %196 = vector.multi_reduction <maximumf>, %195, %cst_92 [2] : vector<2x8x8xf32> to vector<2x8xf32>
    %197 = vector.shape_cast %196 : vector<2x8xf32> to vector<2x8x1xf32>
    %198 = vector.broadcast %197 : vector<2x8x1xf32> to vector<2x8x8xf32>
    %199 = arith.subf %195, %198 : vector<2x8x8xf32>
    %200 = math.exp %199 : vector<2x8x8xf32>
    %cst_93 = arith.constant dense<0.000000e+00> : vector<2x8xf32>
    %201 = vector.multi_reduction <add>, %200, %cst_93 [2] : vector<2x8x8xf32> to vector<2x8xf32>
    %202 = vector.shape_cast %201 : vector<2x8xf32> to vector<2x8x1xf32>
    %203 = vector.broadcast %202 : vector<2x8x1xf32> to vector<2x8x8xf32>
    %204 = arith.divf %200, %203 : vector<2x8x8xf32>
    %205 = vector.shape_cast %204 : vector<2x8x8xf32> to vector<16x8xf32>
    %c0_94 = arith.constant 0 : index
    %c0_95 = arith.constant 0 : index
    %206 = vector.load %arg16[%c0_94, %c0_95] : memref<8x8xf32, #tpu.memory_space<vmem>>, vector<8x8xf32>
    %cst_96 = arith.constant dense<0.000000e+00> : vector<16x8xf32>
    %207 = tpu.matmul %205, %206, %cst_96 {dimension_numbers = #tpu.dot_dimension_numbers<[1], [0], [0], [1], [0, 0, 1, 1], [], []>} : vector<16x8xf32>, vector<8x8xf32>, vector<16x8xf32> -> vector<16x8xf32>
    %208 = vector.shape_cast %207 : vector<16x8xf32> to vector<2x8x8xf32>
    %cst_97 = arith.constant dense<0xFF800000> : vector<2x8xf32>
    %209 = vector.multi_reduction <maximumf>, %208, %cst_97 [2] : vector<2x8x8xf32> to vector<2x8xf32>
    %210 = vector.shape_cast %209 : vector<2x8xf32> to vector<2x8x1xf32>
    %211 = vector.broadcast %210 : vector<2x8x1xf32> to vector<2x8x8xf32>
    %212 = arith.subf %208, %211 : vector<2x8x8xf32>
    %213 = math.exp %212 : vector<2x8x8xf32>
    %cst_98 = arith.constant dense<0.000000e+00> : vector<2x8xf32>
    %214 = vector.multi_reduction <add>, %213, %cst_98 [2] : vector<2x8x8xf32> to vector<2x8xf32>
    %215 = vector.shape_cast %214 : vector<2x8xf32> to vector<2x8x1xf32>
    %216 = vector.broadcast %215 : vector<2x8x1xf32> to vector<2x8x8xf32>
    %217 = arith.divf %213, %216 : vector<2x8x8xf32>
    %218 = vector.shape_cast %0 : vector<8x8xf32> to vector<1x8x8xf32>
    %219 = vector.broadcast %218 : vector<1x8x8xf32> to vector<2x8x8xf32>
    %220 = arith.mulf %219, %217 : vector<2x8x8xf32>
    %cst_99 = arith.constant dense<0.000000e+00> : vector<2x8xf32>
    %221 = vector.multi_reduction <add>, %220, %cst_99 [1] : vector<2x8x8xf32> to vector<2x8xf32>
    %cst_100 = arith.constant 0.000000e+00 : f32
    %222 = vector.broadcast %cst_100 : f32 to vector<2x8xf32>
    %223 = arith.cmpf ogt, %221, %222 : vector<2x8xf32>
    %224 = math.rsqrt %221 : vector<2x8xf32>
    %cst_101 = arith.constant 0.000000e+00 : f32
    %225 = vector.broadcast %cst_101 : f32 to vector<2x8xf32>
    %226 = arith.select %223, %224, %225 : vector<2x8xi1>, vector<2x8xf32>
    %227 = vector.shape_cast %226 : vector<2x8xf32> to vector<2x8x1xf32>
    %228 = vector.broadcast %227 : vector<2x8x1xf32> to vector<2x8x8xf32>
    %229 = arith.mulf %228, %220 : vector<2x8x8xf32>
    %230 = vector.shape_cast %226 : vector<2x8xf32> to vector<2x1x8xf32>
    %231 = vector.broadcast %230 : vector<2x1x8xf32> to vector<2x8x8xf32>
    %232 = arith.mulf %229, %231 : vector<2x8x8xf32>
    %233 = vector.shape_cast %176 : vector<2x8x12xf32> to vector<16x12xf32>
    %c0_102 = arith.constant 0 : index
    %c0_103 = arith.constant 0 : index
    %c0_104 = arith.constant 0 : index
    %234 = vector.load %arg19[%c0_102, %c0_103, %c0_104] : memref<3x12x64xf32, #tpu.memory_space<vmem>>, vector<1x12x64xf32>
    %235 = vector.shape_cast %234 : vector<1x12x64xf32> to vector<12x64xf32>
    %cst_105 = arith.constant dense<0.000000e+00> : vector<16x64xf32>
    %236 = tpu.matmul %233, %235, %cst_105 {dimension_numbers = #tpu.dot_dimension_numbers<[1], [0], [0], [1], [0, 0, 1, 1], [], []>} : vector<16x12xf32>, vector<12x64xf32>, vector<16x64xf32> -> vector<16x64xf32>
    "tpu.trace_start"() <{level = 10 : i32, message = "bij,bjt->bit"}> : () -> ()
    %cst_106 = arith.constant dense<0.000000e+00> : vector<2x8x12xf32>
    %237 = tpu.matmul %232, %176, %cst_106 {dimension_numbers = #tpu.dot_dimension_numbers<[2], [1], [1], [2], [0, 0, 0, 1, 1, 2], [0], [0]>} : vector<2x8x8xf32>, vector<2x8x12xf32>, vector<2x8x12xf32> -> vector<2x8x12xf32>
    "tpu.trace_stop"() : () -> ()
    %238 = vector.shape_cast %237 : vector<2x8x12xf32> to vector<16x12xf32>
    %c1_107 = arith.constant 1 : index
    %c0_108 = arith.constant 0 : index
    %c0_109 = arith.constant 0 : index
    %239 = vector.load %arg19[%c1_107, %c0_108, %c0_109] : memref<3x12x64xf32, #tpu.memory_space<vmem>>, vector<1x12x64xf32>
    %240 = vector.shape_cast %239 : vector<1x12x64xf32> to vector<12x64xf32>
    %cst_110 = arith.constant dense<0.000000e+00> : vector<16x64xf32>
    %241 = tpu.matmul %238, %240, %cst_110 {dimension_numbers = #tpu.dot_dimension_numbers<[1], [0], [0], [1], [0, 0, 1, 1], [], []>} : vector<16x12xf32>, vector<12x64xf32>, vector<16x64xf32> -> vector<16x64xf32>
    %242 = arith.subf %236, %241 : vector<16x64xf32>
    "tpu.trace_start"() <{level = 10 : i32, message = "bij,bjt->bit"}> : () -> ()
    %cst_111 = arith.constant dense<0.000000e+00> : vector<2x8x12xf32>
    %243 = tpu.matmul %232, %237, %cst_111 {dimension_numbers = #tpu.dot_dimension_numbers<[2], [1], [1], [2], [0, 0, 0, 1, 1, 2], [0], [0]>} : vector<2x8x8xf32>, vector<2x8x12xf32>, vector<2x8x12xf32> -> vector<2x8x12xf32>
    "tpu.trace_stop"() : () -> ()
    %cst_112 = arith.constant 2.000000e+00 : f32
    %244 = vector.broadcast %cst_112 : f32 to vector<2x8x12xf32>
    %245 = arith.mulf %244, %243 : vector<2x8x12xf32>
    %246 = arith.subf %245, %176 : vector<2x8x12xf32>
    %247 = vector.shape_cast %246 : vector<2x8x12xf32> to vector<16x12xf32>
    %c2_113 = arith.constant 2 : index
    %c0_114 = arith.constant 0 : index
    %c0_115 = arith.constant 0 : index
    %248 = vector.load %arg19[%c2_113, %c0_114, %c0_115] : memref<3x12x64xf32, #tpu.memory_space<vmem>>, vector<1x12x64xf32>
    %249 = vector.shape_cast %248 : vector<1x12x64xf32> to vector<12x64xf32>
    %cst_116 = arith.constant dense<0.000000e+00> : vector<16x64xf32>
    %250 = tpu.matmul %247, %249, %cst_116 {dimension_numbers = #tpu.dot_dimension_numbers<[1], [0], [0], [1], [0, 0, 1, 1], [], []>} : vector<16x12xf32>, vector<12x64xf32>, vector<16x64xf32> -> vector<16x64xf32>
    %251 = arith.addf %242, %250 : vector<16x64xf32>
    %c0_117 = arith.constant 0 : index
    %c0_118 = arith.constant 0 : index
    %252 = vector.load %arg20[%c0_117, %c0_118] : memref<1x64xf32, #tpu.memory_space<vmem>>, vector<1x64xf32>
    %253 = vector.broadcast %252 : vector<1x64xf32> to vector<16x64xf32>
    %254 = arith.addf %251, %253 : vector<16x64xf32>
    %cst_119 = arith.constant 0.000000e+00 : f32
    %255 = vector.broadcast %cst_119 : f32 to vector<16x64xf32>
    %256 = arith.maximumf %254, %255 : vector<16x64xf32>
    %257 = vector.shape_cast %256 : vector<16x64xf32> to vector<2x8x64xf32>
    %c0_120 = arith.constant 0 : index
    %c0_121 = arith.constant 0 : index
    %258 = vector.load %arg23[%c0_120, %c0_121] : memref<2x64xf32, #tpu.memory_space<vmem>>, vector<1x64xf32>
    %c1_122 = arith.constant 1 : index
    %c0_123 = arith.constant 0 : index
    %259 = vector.load %arg23[%c1_122, %c0_123] : memref<2x64xf32, #tpu.memory_space<vmem>>, vector<1x64xf32>
    %260 = vector.shape_cast %258 : vector<1x64xf32> to vector<1x1x64xf32>
    %261 = vector.broadcast %260 : vector<1x1x64xf32> to vector<2x8x64xf32>
    %262 = arith.mulf %257, %261 : vector<2x8x64xf32>
    %cst_124 = arith.constant dense<0.000000e+00> : vector<2x8xf32>
    %263 = vector.multi_reduction <add>, %262, %cst_124 [2] : vector<2x8x64xf32> to vector<2x8xf32>
    %264 = vector.shape_cast %259 : vector<1x64xf32> to vector<1x1x64xf32>
    %265 = vector.broadcast %264 : vector<1x1x64xf32> to vector<2x8x64xf32>
    %266 = arith.mulf %257, %265 : vector<2x8x64xf32>
    %cst_125 = arith.constant dense<0.000000e+00> : vector<2x8xf32>
    %267 = vector.multi_reduction <add>, %266, %cst_125 [2] : vector<2x8x64xf32> to vector<2x8xf32>
    %268 = vector.shape_cast %267 : vector<2x8xf32> to vector<2x8x1xf32>
    %269 = vector.shape_cast %263 : vector<2x8xf32> to vector<2x1x8xf32>
    %270 = vector.broadcast %268 : vector<2x8x1xf32> to vector<2x8x8xf32>
    %271 = vector.broadcast %269 : vector<2x1x8xf32> to vector<2x8x8xf32>
    %272 = arith.mulf %270, %271 : vector<2x8x8xf32>
    %c0_126 = arith.constant 0 : index
    %c0_127 = arith.constant 0 : index
    %273 = vector.load %arg22[%c0_126, %c0_127] : memref<8x8xf32, #tpu.memory_space<vmem>>, vector<8x8xf32>
    %274 = vector.shape_cast %273 : vector<8x8xf32> to vector<1x8x8xf32>
    %275 = vector.broadcast %274 : vector<1x8x8xf32> to vector<2x8x8xf32>
    %276 = arith.addf %272, %275 : vector<2x8x8xf32>
    %cst_128 = arith.constant dense<0xFF800000> : vector<2x8xf32>
    %277 = vector.multi_reduction <maximumf>, %276, %cst_128 [2] : vector<2x8x8xf32> to vector<2x8xf32>
    %278 = vector.shape_cast %277 : vector<2x8xf32> to vector<2x8x1xf32>
    %279 = vector.broadcast %278 : vector<2x8x1xf32> to vector<2x8x8xf32>
    %280 = arith.subf %276, %279 : vector<2x8x8xf32>
    %281 = math.exp %280 : vector<2x8x8xf32>
    %cst_129 = arith.constant dense<0.000000e+00> : vector<2x8xf32>
    %282 = vector.multi_reduction <add>, %281, %cst_129 [2] : vector<2x8x8xf32> to vector<2x8xf32>
    %283 = vector.shape_cast %282 : vector<2x8xf32> to vector<2x8x1xf32>
    %284 = vector.broadcast %283 : vector<2x8x1xf32> to vector<2x8x8xf32>
    %285 = arith.divf %281, %284 : vector<2x8x8xf32>
    %286 = vector.shape_cast %285 : vector<2x8x8xf32> to vector<16x8xf32>
    %c0_130 = arith.constant 0 : index
    %c0_131 = arith.constant 0 : index
    %287 = vector.load %arg21[%c0_130, %c0_131] : memref<8x8xf32, #tpu.memory_space<vmem>>, vector<8x8xf32>
    %cst_132 = arith.constant dense<0.000000e+00> : vector<16x8xf32>
    %288 = tpu.matmul %286, %287, %cst_132 {dimension_numbers = #tpu.dot_dimension_numbers<[1], [0], [0], [1], [0, 0, 1, 1], [], []>} : vector<16x8xf32>, vector<8x8xf32>, vector<16x8xf32> -> vector<16x8xf32>
    %289 = vector.shape_cast %288 : vector<16x8xf32> to vector<2x8x8xf32>
    %cst_133 = arith.constant dense<0xFF800000> : vector<2x8xf32>
    %290 = vector.multi_reduction <maximumf>, %289, %cst_133 [2] : vector<2x8x8xf32> to vector<2x8xf32>
    %291 = vector.shape_cast %290 : vector<2x8xf32> to vector<2x8x1xf32>
    %292 = vector.broadcast %291 : vector<2x8x1xf32> to vector<2x8x8xf32>
    %293 = arith.subf %289, %292 : vector<2x8x8xf32>
    %294 = math.exp %293 : vector<2x8x8xf32>
    %cst_134 = arith.constant dense<0.000000e+00> : vector<2x8xf32>
    %295 = vector.multi_reduction <add>, %294, %cst_134 [2] : vector<2x8x8xf32> to vector<2x8xf32>
    %296 = vector.shape_cast %295 : vector<2x8xf32> to vector<2x8x1xf32>
    %297 = vector.broadcast %296 : vector<2x8x1xf32> to vector<2x8x8xf32>
    %298 = arith.divf %294, %297 : vector<2x8x8xf32>
    %299 = vector.shape_cast %0 : vector<8x8xf32> to vector<1x8x8xf32>
    %300 = vector.broadcast %299 : vector<1x8x8xf32> to vector<2x8x8xf32>
    %301 = arith.mulf %300, %298 : vector<2x8x8xf32>
    %cst_135 = arith.constant dense<0.000000e+00> : vector<2x8xf32>
    %302 = vector.multi_reduction <add>, %301, %cst_135 [1] : vector<2x8x8xf32> to vector<2x8xf32>
    %cst_136 = arith.constant 0.000000e+00 : f32
    %303 = vector.broadcast %cst_136 : f32 to vector<2x8xf32>
    %304 = arith.cmpf ogt, %302, %303 : vector<2x8xf32>
    %305 = math.rsqrt %302 : vector<2x8xf32>
    %cst_137 = arith.constant 0.000000e+00 : f32
    %306 = vector.broadcast %cst_137 : f32 to vector<2x8xf32>
    %307 = arith.select %304, %305, %306 : vector<2x8xi1>, vector<2x8xf32>
    %308 = vector.shape_cast %307 : vector<2x8xf32> to vector<2x8x1xf32>
    %309 = vector.broadcast %308 : vector<2x8x1xf32> to vector<2x8x8xf32>
    %310 = arith.mulf %309, %301 : vector<2x8x8xf32>
    %311 = vector.shape_cast %307 : vector<2x8xf32> to vector<2x1x8xf32>
    %312 = vector.broadcast %311 : vector<2x1x8xf32> to vector<2x8x8xf32>
    %313 = arith.mulf %310, %312 : vector<2x8x8xf32>
    %314 = vector.shape_cast %257 : vector<2x8x64xf32> to vector<16x64xf32>
    %c0_138 = arith.constant 0 : index
    %c0_139 = arith.constant 0 : index
    %c0_140 = arith.constant 0 : index
    %315 = vector.load %arg24[%c0_138, %c0_139, %c0_140] : memref<3x64x32xf32, #tpu.memory_space<vmem>>, vector<1x64x32xf32>
    %316 = vector.shape_cast %315 : vector<1x64x32xf32> to vector<64x32xf32>
    %cst_141 = arith.constant dense<0.000000e+00> : vector<16x32xf32>
    %317 = tpu.matmul %314, %316, %cst_141 {dimension_numbers = #tpu.dot_dimension_numbers<[1], [0], [0], [1], [0, 0, 1, 1], [], []>} : vector<16x64xf32>, vector<64x32xf32>, vector<16x32xf32> -> vector<16x32xf32>
    "tpu.trace_start"() <{level = 10 : i32, message = "bij,bjt->bit"}> : () -> ()
    %cst_142 = arith.constant dense<0.000000e+00> : vector<2x8x64xf32>
    %318 = tpu.matmul %313, %257, %cst_142 {dimension_numbers = #tpu.dot_dimension_numbers<[2], [1], [1], [2], [0, 0, 0, 1, 1, 2], [0], [0]>} : vector<2x8x8xf32>, vector<2x8x64xf32>, vector<2x8x64xf32> -> vector<2x8x64xf32>
    "tpu.trace_stop"() : () -> ()
    %319 = vector.shape_cast %318 : vector<2x8x64xf32> to vector<16x64xf32>
    %c1_143 = arith.constant 1 : index
    %c0_144 = arith.constant 0 : index
    %c0_145 = arith.constant 0 : index
    %320 = vector.load %arg24[%c1_143, %c0_144, %c0_145] : memref<3x64x32xf32, #tpu.memory_space<vmem>>, vector<1x64x32xf32>
    %321 = vector.shape_cast %320 : vector<1x64x32xf32> to vector<64x32xf32>
    %cst_146 = arith.constant dense<0.000000e+00> : vector<16x32xf32>
    %322 = tpu.matmul %319, %321, %cst_146 {dimension_numbers = #tpu.dot_dimension_numbers<[1], [0], [0], [1], [0, 0, 1, 1], [], []>} : vector<16x64xf32>, vector<64x32xf32>, vector<16x32xf32> -> vector<16x32xf32>
    %323 = arith.subf %317, %322 : vector<16x32xf32>
    "tpu.trace_start"() <{level = 10 : i32, message = "bij,bjt->bit"}> : () -> ()
    %cst_147 = arith.constant dense<0.000000e+00> : vector<2x8x64xf32>
    %324 = tpu.matmul %313, %318, %cst_147 {dimension_numbers = #tpu.dot_dimension_numbers<[2], [1], [1], [2], [0, 0, 0, 1, 1, 2], [0], [0]>} : vector<2x8x8xf32>, vector<2x8x64xf32>, vector<2x8x64xf32> -> vector<2x8x64xf32>
    "tpu.trace_stop"() : () -> ()
    %cst_148 = arith.constant 2.000000e+00 : f32
    %325 = vector.broadcast %cst_148 : f32 to vector<2x8x64xf32>
    %326 = arith.mulf %325, %324 : vector<2x8x64xf32>
    %327 = arith.subf %326, %257 : vector<2x8x64xf32>
    %328 = vector.shape_cast %327 : vector<2x8x64xf32> to vector<16x64xf32>
    %c2_149 = arith.constant 2 : index
    %c0_150 = arith.constant 0 : index
    %c0_151 = arith.constant 0 : index
    %329 = vector.load %arg24[%c2_149, %c0_150, %c0_151] : memref<3x64x32xf32, #tpu.memory_space<vmem>>, vector<1x64x32xf32>
    %330 = vector.shape_cast %329 : vector<1x64x32xf32> to vector<64x32xf32>
    %cst_152 = arith.constant dense<0.000000e+00> : vector<16x32xf32>
    %331 = tpu.matmul %328, %330, %cst_152 {dimension_numbers = #tpu.dot_dimension_numbers<[1], [0], [0], [1], [0, 0, 1, 1], [], []>} : vector<16x64xf32>, vector<64x32xf32>, vector<16x32xf32> -> vector<16x32xf32>
    %332 = arith.addf %323, %331 : vector<16x32xf32>
    %c0_153 = arith.constant 0 : index
    %c0_154 = arith.constant 0 : index
    %333 = vector.load %arg25[%c0_153, %c0_154] : memref<1x32xf32, #tpu.memory_space<vmem>>, vector<1x32xf32>
    %334 = vector.broadcast %333 : vector<1x32xf32> to vector<16x32xf32>
    %335 = arith.addf %332, %334 : vector<16x32xf32>
    %cst_155 = arith.constant 0.000000e+00 : f32
    %336 = vector.broadcast %cst_155 : f32 to vector<16x32xf32>
    %337 = arith.maximumf %335, %336 : vector<16x32xf32>
    %338 = vector.shape_cast %337 : vector<16x32xf32> to vector<2x8x32xf32>
    %339 = vector.shape_cast %338 : vector<2x8x32xf32> to vector<16x32xf32>
    %cst_156 = arith.constant dense<0.000000e+00> : vector<16x12xf32>
    %340 = tpu.matmul %339, %1, %cst_156 {dimension_numbers = #tpu.dot_dimension_numbers<[1], [0], [0], [1], [0, 0, 1, 1], [], []>} : vector<16x32xf32>, vector<32x12xf32>, vector<16x12xf32> -> vector<16x12xf32>
    %341 = vector.broadcast %2 : vector<1x12xf32> to vector<16x12xf32>
    %342 = arith.addf %340, %341 : vector<16x12xf32>
    %cst_157 = arith.constant 0.000000e+00 : f32
    %343 = vector.broadcast %cst_157 : f32 to vector<16x12xf32>
    %344 = arith.maximumf %342, %343 : vector<16x12xf32>
    %345 = vector.extract_strided_slice %3 {offsets = [1, 0], sizes = [1, 12], strides = [1, 1]} : vector<3x12xf32> to vector<1x12xf32>
    %346 = vector.broadcast %345 : vector<1x12xf32> to vector<16x12xf32>
    %347 = arith.mulf %344, %346 : vector<16x12xf32>
    %348 = arith.addf %175, %347 : vector<16x12xf32>
    %c0_158 = arith.constant 0 : index
    %c0_159 = arith.constant 0 : index
    %c0_160 = arith.constant 0 : index
    %349 = vector.load %arg26[%c0_158, %c0_159, %c0_160] : memref<2x8x8xf32, #tpu.memory_space<vmem>>, vector<2x8x8xf32>
    %c0_161 = arith.constant 0 : index
    %c0_162 = arith.constant 0 : index
    %350 = vector.load %arg29[%c0_161, %c0_162] : memref<2x8xf32, #tpu.memory_space<vmem>>, vector<1x8xf32>
    %c1_163 = arith.constant 1 : index
    %c0_164 = arith.constant 0 : index
    %351 = vector.load %arg29[%c1_163, %c0_164] : memref<2x8xf32, #tpu.memory_space<vmem>>, vector<1x8xf32>
    %352 = vector.shape_cast %350 : vector<1x8xf32> to vector<1x1x8xf32>
    %353 = vector.broadcast %352 : vector<1x1x8xf32> to vector<2x8x8xf32>
    %354 = arith.mulf %349, %353 : vector<2x8x8xf32>
    %cst_165 = arith.constant dense<0.000000e+00> : vector<2x8xf32>
    %355 = vector.multi_reduction <add>, %354, %cst_165 [2] : vector<2x8x8xf32> to vector<2x8xf32>
    %356 = vector.shape_cast %351 : vector<1x8xf32> to vector<1x1x8xf32>
    %357 = vector.broadcast %356 : vector<1x1x8xf32> to vector<2x8x8xf32>
    %358 = arith.mulf %349, %357 : vector<2x8x8xf32>
    %cst_166 = arith.constant dense<0.000000e+00> : vector<2x8xf32>
    %359 = vector.multi_reduction <add>, %358, %cst_166 [2] : vector<2x8x8xf32> to vector<2x8xf32>
    %360 = vector.shape_cast %359 : vector<2x8xf32> to vector<2x8x1xf32>
    %361 = vector.shape_cast %355 : vector<2x8xf32> to vector<2x1x8xf32>
    %362 = vector.broadcast %360 : vector<2x8x1xf32> to vector<2x8x8xf32>
    %363 = vector.broadcast %361 : vector<2x1x8xf32> to vector<2x8x8xf32>
    %364 = arith.mulf %362, %363 : vector<2x8x8xf32>
    %c0_167 = arith.constant 0 : index
    %c0_168 = arith.constant 0 : index
    %365 = vector.load %arg28[%c0_167, %c0_168] : memref<8x8xf32, #tpu.memory_space<vmem>>, vector<8x8xf32>
    %366 = vector.shape_cast %365 : vector<8x8xf32> to vector<1x8x8xf32>
    %367 = vector.broadcast %366 : vector<1x8x8xf32> to vector<2x8x8xf32>
    %368 = arith.addf %364, %367 : vector<2x8x8xf32>
    %cst_169 = arith.constant dense<0xFF800000> : vector<2x8xf32>
    %369 = vector.multi_reduction <maximumf>, %368, %cst_169 [2] : vector<2x8x8xf32> to vector<2x8xf32>
    %370 = vector.shape_cast %369 : vector<2x8xf32> to vector<2x8x1xf32>
    %371 = vector.broadcast %370 : vector<2x8x1xf32> to vector<2x8x8xf32>
    %372 = arith.subf %368, %371 : vector<2x8x8xf32>
    %373 = math.exp %372 : vector<2x8x8xf32>
    %cst_170 = arith.constant dense<0.000000e+00> : vector<2x8xf32>
    %374 = vector.multi_reduction <add>, %373, %cst_170 [2] : vector<2x8x8xf32> to vector<2x8xf32>
    %375 = vector.shape_cast %374 : vector<2x8xf32> to vector<2x8x1xf32>
    %376 = vector.broadcast %375 : vector<2x8x1xf32> to vector<2x8x8xf32>
    %377 = arith.divf %373, %376 : vector<2x8x8xf32>
    %378 = vector.shape_cast %377 : vector<2x8x8xf32> to vector<16x8xf32>
    %c0_171 = arith.constant 0 : index
    %c0_172 = arith.constant 0 : index
    %379 = vector.load %arg27[%c0_171, %c0_172] : memref<8x8xf32, #tpu.memory_space<vmem>>, vector<8x8xf32>
    %cst_173 = arith.constant dense<0.000000e+00> : vector<16x8xf32>
    %380 = tpu.matmul %378, %379, %cst_173 {dimension_numbers = #tpu.dot_dimension_numbers<[1], [0], [0], [1], [0, 0, 1, 1], [], []>} : vector<16x8xf32>, vector<8x8xf32>, vector<16x8xf32> -> vector<16x8xf32>
    %381 = vector.shape_cast %380 : vector<16x8xf32> to vector<2x8x8xf32>
    %cst_174 = arith.constant dense<0xFF800000> : vector<2x8xf32>
    %382 = vector.multi_reduction <maximumf>, %381, %cst_174 [2] : vector<2x8x8xf32> to vector<2x8xf32>
    %383 = vector.shape_cast %382 : vector<2x8xf32> to vector<2x8x1xf32>
    %384 = vector.broadcast %383 : vector<2x8x1xf32> to vector<2x8x8xf32>
    %385 = arith.subf %381, %384 : vector<2x8x8xf32>
    %386 = math.exp %385 : vector<2x8x8xf32>
    %cst_175 = arith.constant dense<0.000000e+00> : vector<2x8xf32>
    %387 = vector.multi_reduction <add>, %386, %cst_175 [2] : vector<2x8x8xf32> to vector<2x8xf32>
    %388 = vector.shape_cast %387 : vector<2x8xf32> to vector<2x8x1xf32>
    %389 = vector.broadcast %388 : vector<2x8x1xf32> to vector<2x8x8xf32>
    %390 = arith.divf %386, %389 : vector<2x8x8xf32>
    %391 = vector.shape_cast %0 : vector<8x8xf32> to vector<1x8x8xf32>
    %392 = vector.broadcast %391 : vector<1x8x8xf32> to vector<2x8x8xf32>
    %393 = arith.mulf %392, %390 : vector<2x8x8xf32>
    %cst_176 = arith.constant dense<0.000000e+00> : vector<2x8xf32>
    %394 = vector.multi_reduction <add>, %393, %cst_176 [1] : vector<2x8x8xf32> to vector<2x8xf32>
    %cst_177 = arith.constant 0.000000e+00 : f32
    %395 = vector.broadcast %cst_177 : f32 to vector<2x8xf32>
    %396 = arith.cmpf ogt, %394, %395 : vector<2x8xf32>
    %397 = math.rsqrt %394 : vector<2x8xf32>
    %cst_178 = arith.constant 0.000000e+00 : f32
    %398 = vector.broadcast %cst_178 : f32 to vector<2x8xf32>
    %399 = arith.select %396, %397, %398 : vector<2x8xi1>, vector<2x8xf32>
    %400 = vector.shape_cast %399 : vector<2x8xf32> to vector<2x8x1xf32>
    %401 = vector.broadcast %400 : vector<2x8x1xf32> to vector<2x8x8xf32>
    %402 = arith.mulf %401, %393 : vector<2x8x8xf32>
    %403 = vector.shape_cast %399 : vector<2x8xf32> to vector<2x1x8xf32>
    %404 = vector.broadcast %403 : vector<2x1x8xf32> to vector<2x8x8xf32>
    %405 = arith.mulf %402, %404 : vector<2x8x8xf32>
    %406 = vector.shape_cast %349 : vector<2x8x8xf32> to vector<16x8xf32>
    %c0_179 = arith.constant 0 : index
    %c0_180 = arith.constant 0 : index
    %c0_181 = arith.constant 0 : index
    %407 = vector.load %arg30[%c0_179, %c0_180, %c0_181] : memref<3x8x64xf32, #tpu.memory_space<vmem>>, vector<1x8x64xf32>
    %408 = vector.shape_cast %407 : vector<1x8x64xf32> to vector<8x64xf32>
    %cst_182 = arith.constant dense<0.000000e+00> : vector<16x64xf32>
    %409 = tpu.matmul %406, %408, %cst_182 {dimension_numbers = #tpu.dot_dimension_numbers<[1], [0], [0], [1], [0, 0, 1, 1], [], []>} : vector<16x8xf32>, vector<8x64xf32>, vector<16x64xf32> -> vector<16x64xf32>
    "tpu.trace_start"() <{level = 10 : i32, message = "bij,bjt->bit"}> : () -> ()
    %cst_183 = arith.constant dense<0.000000e+00> : vector<2x8x8xf32>
    %410 = tpu.matmul %405, %349, %cst_183 {dimension_numbers = #tpu.dot_dimension_numbers<[2], [1], [1], [2], [0, 0, 0, 1, 1, 2], [0], [0]>} : vector<2x8x8xf32>, vector<2x8x8xf32>, vector<2x8x8xf32> -> vector<2x8x8xf32>
    "tpu.trace_stop"() : () -> ()
    %411 = vector.shape_cast %410 : vector<2x8x8xf32> to vector<16x8xf32>
    %c1_184 = arith.constant 1 : index
    %c0_185 = arith.constant 0 : index
    %c0_186 = arith.constant 0 : index
    %412 = vector.load %arg30[%c1_184, %c0_185, %c0_186] : memref<3x8x64xf32, #tpu.memory_space<vmem>>, vector<1x8x64xf32>
    %413 = vector.shape_cast %412 : vector<1x8x64xf32> to vector<8x64xf32>
    %cst_187 = arith.constant dense<0.000000e+00> : vector<16x64xf32>
    %414 = tpu.matmul %411, %413, %cst_187 {dimension_numbers = #tpu.dot_dimension_numbers<[1], [0], [0], [1], [0, 0, 1, 1], [], []>} : vector<16x8xf32>, vector<8x64xf32>, vector<16x64xf32> -> vector<16x64xf32>
    %415 = arith.subf %409, %414 : vector<16x64xf32>
    "tpu.trace_start"() <{level = 10 : i32, message = "bij,bjt->bit"}> : () -> ()
    %cst_188 = arith.constant dense<0.000000e+00> : vector<2x8x8xf32>
    %416 = tpu.matmul %405, %410, %cst_188 {dimension_numbers = #tpu.dot_dimension_numbers<[2], [1], [1], [2], [0, 0, 0, 1, 1, 2], [0], [0]>} : vector<2x8x8xf32>, vector<2x8x8xf32>, vector<2x8x8xf32> -> vector<2x8x8xf32>
    "tpu.trace_stop"() : () -> ()
    %cst_189 = arith.constant 2.000000e+00 : f32
    %417 = vector.broadcast %cst_189 : f32 to vector<2x8x8xf32>
    %418 = arith.mulf %417, %416 : vector<2x8x8xf32>
    %419 = arith.subf %418, %349 : vector<2x8x8xf32>
    %420 = vector.shape_cast %419 : vector<2x8x8xf32> to vector<16x8xf32>
    %c2_190 = arith.constant 2 : index
    %c0_191 = arith.constant 0 : index
    %c0_192 = arith.constant 0 : index
    %421 = vector.load %arg30[%c2_190, %c0_191, %c0_192] : memref<3x8x64xf32, #tpu.memory_space<vmem>>, vector<1x8x64xf32>
    %422 = vector.shape_cast %421 : vector<1x8x64xf32> to vector<8x64xf32>
    %cst_193 = arith.constant dense<0.000000e+00> : vector<16x64xf32>
    %423 = tpu.matmul %420, %422, %cst_193 {dimension_numbers = #tpu.dot_dimension_numbers<[1], [0], [0], [1], [0, 0, 1, 1], [], []>} : vector<16x8xf32>, vector<8x64xf32>, vector<16x64xf32> -> vector<16x64xf32>
    %424 = arith.addf %415, %423 : vector<16x64xf32>
    %c0_194 = arith.constant 0 : index
    %c0_195 = arith.constant 0 : index
    %425 = vector.load %arg31[%c0_194, %c0_195] : memref<1x64xf32, #tpu.memory_space<vmem>>, vector<1x64xf32>
    %426 = vector.broadcast %425 : vector<1x64xf32> to vector<16x64xf32>
    %427 = arith.addf %424, %426 : vector<16x64xf32>
    %cst_196 = arith.constant 0.000000e+00 : f32
    %428 = vector.broadcast %cst_196 : f32 to vector<16x64xf32>
    %429 = arith.maximumf %427, %428 : vector<16x64xf32>
    %430 = vector.shape_cast %429 : vector<16x64xf32> to vector<2x8x64xf32>
    %c0_197 = arith.constant 0 : index
    %c0_198 = arith.constant 0 : index
    %431 = vector.load %arg34[%c0_197, %c0_198] : memref<2x64xf32, #tpu.memory_space<vmem>>, vector<1x64xf32>
    %c1_199 = arith.constant 1 : index
    %c0_200 = arith.constant 0 : index
    %432 = vector.load %arg34[%c1_199, %c0_200] : memref<2x64xf32, #tpu.memory_space<vmem>>, vector<1x64xf32>
    %433 = vector.shape_cast %431 : vector<1x64xf32> to vector<1x1x64xf32>
    %434 = vector.broadcast %433 : vector<1x1x64xf32> to vector<2x8x64xf32>
    %435 = arith.mulf %430, %434 : vector<2x8x64xf32>
    %cst_201 = arith.constant dense<0.000000e+00> : vector<2x8xf32>
    %436 = vector.multi_reduction <add>, %435, %cst_201 [2] : vector<2x8x64xf32> to vector<2x8xf32>
    %437 = vector.shape_cast %432 : vector<1x64xf32> to vector<1x1x64xf32>
    %438 = vector.broadcast %437 : vector<1x1x64xf32> to vector<2x8x64xf32>
    %439 = arith.mulf %430, %438 : vector<2x8x64xf32>
    %cst_202 = arith.constant dense<0.000000e+00> : vector<2x8xf32>
    %440 = vector.multi_reduction <add>, %439, %cst_202 [2] : vector<2x8x64xf32> to vector<2x8xf32>
    %441 = vector.shape_cast %440 : vector<2x8xf32> to vector<2x8x1xf32>
    %442 = vector.shape_cast %436 : vector<2x8xf32> to vector<2x1x8xf32>
    %443 = vector.broadcast %441 : vector<2x8x1xf32> to vector<2x8x8xf32>
    %444 = vector.broadcast %442 : vector<2x1x8xf32> to vector<2x8x8xf32>
    %445 = arith.mulf %443, %444 : vector<2x8x8xf32>
    %c0_203 = arith.constant 0 : index
    %c0_204 = arith.constant 0 : index
    %446 = vector.load %arg33[%c0_203, %c0_204] : memref<8x8xf32, #tpu.memory_space<vmem>>, vector<8x8xf32>
    %447 = vector.shape_cast %446 : vector<8x8xf32> to vector<1x8x8xf32>
    %448 = vector.broadcast %447 : vector<1x8x8xf32> to vector<2x8x8xf32>
    %449 = arith.addf %445, %448 : vector<2x8x8xf32>
    %cst_205 = arith.constant dense<0xFF800000> : vector<2x8xf32>
    %450 = vector.multi_reduction <maximumf>, %449, %cst_205 [2] : vector<2x8x8xf32> to vector<2x8xf32>
    %451 = vector.shape_cast %450 : vector<2x8xf32> to vector<2x8x1xf32>
    %452 = vector.broadcast %451 : vector<2x8x1xf32> to vector<2x8x8xf32>
    %453 = arith.subf %449, %452 : vector<2x8x8xf32>
    %454 = math.exp %453 : vector<2x8x8xf32>
    %cst_206 = arith.constant dense<0.000000e+00> : vector<2x8xf32>
    %455 = vector.multi_reduction <add>, %454, %cst_206 [2] : vector<2x8x8xf32> to vector<2x8xf32>
    %456 = vector.shape_cast %455 : vector<2x8xf32> to vector<2x8x1xf32>
    %457 = vector.broadcast %456 : vector<2x8x1xf32> to vector<2x8x8xf32>
    %458 = arith.divf %454, %457 : vector<2x8x8xf32>
    %459 = vector.shape_cast %458 : vector<2x8x8xf32> to vector<16x8xf32>
    %c0_207 = arith.constant 0 : index
    %c0_208 = arith.constant 0 : index
    %460 = vector.load %arg32[%c0_207, %c0_208] : memref<8x8xf32, #tpu.memory_space<vmem>>, vector<8x8xf32>
    %cst_209 = arith.constant dense<0.000000e+00> : vector<16x8xf32>
    %461 = tpu.matmul %459, %460, %cst_209 {dimension_numbers = #tpu.dot_dimension_numbers<[1], [0], [0], [1], [0, 0, 1, 1], [], []>} : vector<16x8xf32>, vector<8x8xf32>, vector<16x8xf32> -> vector<16x8xf32>
    %462 = vector.shape_cast %461 : vector<16x8xf32> to vector<2x8x8xf32>
    %cst_210 = arith.constant dense<0xFF800000> : vector<2x8xf32>
    %463 = vector.multi_reduction <maximumf>, %462, %cst_210 [2] : vector<2x8x8xf32> to vector<2x8xf32>
    %464 = vector.shape_cast %463 : vector<2x8xf32> to vector<2x8x1xf32>
    %465 = vector.broadcast %464 : vector<2x8x1xf32> to vector<2x8x8xf32>
    %466 = arith.subf %462, %465 : vector<2x8x8xf32>
    %467 = math.exp %466 : vector<2x8x8xf32>
    %cst_211 = arith.constant dense<0.000000e+00> : vector<2x8xf32>
    %468 = vector.multi_reduction <add>, %467, %cst_211 [2] : vector<2x8x8xf32> to vector<2x8xf32>
    %469 = vector.shape_cast %468 : vector<2x8xf32> to vector<2x8x1xf32>
    %470 = vector.broadcast %469 : vector<2x8x1xf32> to vector<2x8x8xf32>
    %471 = arith.divf %467, %470 : vector<2x8x8xf32>
    %472 = vector.shape_cast %0 : vector<8x8xf32> to vector<1x8x8xf32>
    %473 = vector.broadcast %472 : vector<1x8x8xf32> to vector<2x8x8xf32>
    %474 = arith.mulf %473, %471 : vector<2x8x8xf32>
    %cst_212 = arith.constant dense<0.000000e+00> : vector<2x8xf32>
    %475 = vector.multi_reduction <add>, %474, %cst_212 [1] : vector<2x8x8xf32> to vector<2x8xf32>
    %cst_213 = arith.constant 0.000000e+00 : f32
    %476 = vector.broadcast %cst_213 : f32 to vector<2x8xf32>
    %477 = arith.cmpf ogt, %475, %476 : vector<2x8xf32>
    %478 = math.rsqrt %475 : vector<2x8xf32>
    %cst_214 = arith.constant 0.000000e+00 : f32
    %479 = vector.broadcast %cst_214 : f32 to vector<2x8xf32>
    %480 = arith.select %477, %478, %479 : vector<2x8xi1>, vector<2x8xf32>
    %481 = vector.shape_cast %480 : vector<2x8xf32> to vector<2x8x1xf32>
    %482 = vector.broadcast %481 : vector<2x8x1xf32> to vector<2x8x8xf32>
    %483 = arith.mulf %482, %474 : vector<2x8x8xf32>
    %484 = vector.shape_cast %480 : vector<2x8xf32> to vector<2x1x8xf32>
    %485 = vector.broadcast %484 : vector<2x1x8xf32> to vector<2x8x8xf32>
    %486 = arith.mulf %483, %485 : vector<2x8x8xf32>
    %487 = vector.shape_cast %430 : vector<2x8x64xf32> to vector<16x64xf32>
    %c0_215 = arith.constant 0 : index
    %c0_216 = arith.constant 0 : index
    %c0_217 = arith.constant 0 : index
    %488 = vector.load %arg35[%c0_215, %c0_216, %c0_217] : memref<3x64x32xf32, #tpu.memory_space<vmem>>, vector<1x64x32xf32>
    %489 = vector.shape_cast %488 : vector<1x64x32xf32> to vector<64x32xf32>
    %cst_218 = arith.constant dense<0.000000e+00> : vector<16x32xf32>
    %490 = tpu.matmul %487, %489, %cst_218 {dimension_numbers = #tpu.dot_dimension_numbers<[1], [0], [0], [1], [0, 0, 1, 1], [], []>} : vector<16x64xf32>, vector<64x32xf32>, vector<16x32xf32> -> vector<16x32xf32>
    "tpu.trace_start"() <{level = 10 : i32, message = "bij,bjt->bit"}> : () -> ()
    %cst_219 = arith.constant dense<0.000000e+00> : vector<2x8x64xf32>
    %491 = tpu.matmul %486, %430, %cst_219 {dimension_numbers = #tpu.dot_dimension_numbers<[2], [1], [1], [2], [0, 0, 0, 1, 1, 2], [0], [0]>} : vector<2x8x8xf32>, vector<2x8x64xf32>, vector<2x8x64xf32> -> vector<2x8x64xf32>
    "tpu.trace_stop"() : () -> ()
    %492 = vector.shape_cast %491 : vector<2x8x64xf32> to vector<16x64xf32>
    %c1_220 = arith.constant 1 : index
    %c0_221 = arith.constant 0 : index
    %c0_222 = arith.constant 0 : index
    %493 = vector.load %arg35[%c1_220, %c0_221, %c0_222] : memref<3x64x32xf32, #tpu.memory_space<vmem>>, vector<1x64x32xf32>
    %494 = vector.shape_cast %493 : vector<1x64x32xf32> to vector<64x32xf32>
    %cst_223 = arith.constant dense<0.000000e+00> : vector<16x32xf32>
    %495 = tpu.matmul %492, %494, %cst_223 {dimension_numbers = #tpu.dot_dimension_numbers<[1], [0], [0], [1], [0, 0, 1, 1], [], []>} : vector<16x64xf32>, vector<64x32xf32>, vector<16x32xf32> -> vector<16x32xf32>
    %496 = arith.subf %490, %495 : vector<16x32xf32>
    "tpu.trace_start"() <{level = 10 : i32, message = "bij,bjt->bit"}> : () -> ()
    %cst_224 = arith.constant dense<0.000000e+00> : vector<2x8x64xf32>
    %497 = tpu.matmul %486, %491, %cst_224 {dimension_numbers = #tpu.dot_dimension_numbers<[2], [1], [1], [2], [0, 0, 0, 1, 1, 2], [0], [0]>} : vector<2x8x8xf32>, vector<2x8x64xf32>, vector<2x8x64xf32> -> vector<2x8x64xf32>
    "tpu.trace_stop"() : () -> ()
    %cst_225 = arith.constant 2.000000e+00 : f32
    %498 = vector.broadcast %cst_225 : f32 to vector<2x8x64xf32>
    %499 = arith.mulf %498, %497 : vector<2x8x64xf32>
    %500 = arith.subf %499, %430 : vector<2x8x64xf32>
    %501 = vector.shape_cast %500 : vector<2x8x64xf32> to vector<16x64xf32>
    %c2_226 = arith.constant 2 : index
    %c0_227 = arith.constant 0 : index
    %c0_228 = arith.constant 0 : index
    %502 = vector.load %arg35[%c2_226, %c0_227, %c0_228] : memref<3x64x32xf32, #tpu.memory_space<vmem>>, vector<1x64x32xf32>
    %503 = vector.shape_cast %502 : vector<1x64x32xf32> to vector<64x32xf32>
    %cst_229 = arith.constant dense<0.000000e+00> : vector<16x32xf32>
    %504 = tpu.matmul %501, %503, %cst_229 {dimension_numbers = #tpu.dot_dimension_numbers<[1], [0], [0], [1], [0, 0, 1, 1], [], []>} : vector<16x64xf32>, vector<64x32xf32>, vector<16x32xf32> -> vector<16x32xf32>
    %505 = arith.addf %496, %504 : vector<16x32xf32>
    %c0_230 = arith.constant 0 : index
    %c0_231 = arith.constant 0 : index
    %506 = vector.load %arg36[%c0_230, %c0_231] : memref<1x32xf32, #tpu.memory_space<vmem>>, vector<1x32xf32>
    %507 = vector.broadcast %506 : vector<1x32xf32> to vector<16x32xf32>
    %508 = arith.addf %505, %507 : vector<16x32xf32>
    %cst_232 = arith.constant 0.000000e+00 : f32
    %509 = vector.broadcast %cst_232 : f32 to vector<16x32xf32>
    %510 = arith.maximumf %508, %509 : vector<16x32xf32>
    %511 = vector.shape_cast %510 : vector<16x32xf32> to vector<2x8x32xf32>
    %512 = vector.shape_cast %511 : vector<2x8x32xf32> to vector<16x32xf32>
    %cst_233 = arith.constant dense<0.000000e+00> : vector<16x12xf32>
    %513 = tpu.matmul %512, %1, %cst_233 {dimension_numbers = #tpu.dot_dimension_numbers<[1], [0], [0], [1], [0, 0, 1, 1], [], []>} : vector<16x32xf32>, vector<32x12xf32>, vector<16x12xf32> -> vector<16x12xf32>
    %514 = vector.broadcast %2 : vector<1x12xf32> to vector<16x12xf32>
    %515 = arith.addf %513, %514 : vector<16x12xf32>
    %cst_234 = arith.constant 0.000000e+00 : f32
    %516 = vector.broadcast %cst_234 : f32 to vector<16x12xf32>
    %517 = arith.maximumf %515, %516 : vector<16x12xf32>
    %518 = vector.extract_strided_slice %3 {offsets = [2, 0], sizes = [1, 12], strides = [1, 1]} : vector<3x12xf32> to vector<1x12xf32>
    %519 = vector.broadcast %518 : vector<1x12xf32> to vector<16x12xf32>
    %520 = arith.mulf %517, %519 : vector<16x12xf32>
    %521 = arith.addf %348, %520 : vector<16x12xf32>
    %c0_235 = arith.constant 0 : index
    %c0_236 = arith.constant 0 : index
    %522 = vector.load %arg37[%c0_235, %c0_236] : memref<16x12xf32, #tpu.memory_space<vmem>>, vector<16x12xf32>
    tpu.vector_store %arg37[%c0_235, %c0_236], %521 {strides = array<i32>} : memref<16x12xf32, #tpu.memory_space<vmem>>, vector<16x12xf32>,
    return
  }
}

</mosaic_0001>

<bundles_post_ra>
// kernel: astgcn_notime.1
= control target key start
LH: loop header
LB: loop body
LE: loop exit
PB: predicated region body
PF: predicated region fallthrough
CT: control target
= control target key end

     0   :  { %s6350_s6 = smov 1   ;;  %s6351_s10 = smov 2   ;;  %s7184_s0 = inlined_call_operand.smem [shape: u32[38], index: -1, kind: input, shape index: {}] }
   0x1   :  { %s6401_s5 = sld [smem:[%s7184_s0]]   ;;  %s6352_s14 = smov 3  }
   0x2   :  { %s6406_s9 = sld [smem:[%s7184_s0 + %s6350_s6]]   ;;  %s6353_s18 = smov 4  }
   0x3   :  { %s6411_s13 = sld [smem:[%s7184_s0 + %s6351_s10]]   ;;  %s6354_s22 = smov 5  }
   0x4   :  { %s6416_s17 = sld [smem:[%s7184_s0 + %s6352_s14]]   ;;  %s6355_s26 = smov 6  }
   0x5   :  { %s6421_s21 = sld [smem:[%s7184_s0 + %s6353_s18]]   ;;  %s6356_s30 = smov 7  }
   0x6   :  { %s6426_s25 = sld [smem:[%s7184_s0 + %s6354_s22]]   ;;  %s6357_s4 = smov 8  }
   0x7   :  { %s6431_s29 = sld [smem:[%s7184_s0 + %s6355_s26]]   ;;  %s6358_s10 = smov 9  }
   0x8   :  { %7192 = sst [smem:[#allocation5_spill]] %s6406_s9  ;;  %s6359_s15 = smov 10  }
   0x9   :  { %7193 = sst [smem:[#allocation6_spill]] %s6411_s13  ;;  %s6360_s20 = smov 11  }
   0xa   :  { %7194 = sst [smem:[#allocation7_spill]] %s6416_s17  ;;  %s6361_s26 = smov 12  }
   0xb   :  { %s6436_s3 = sld [smem:[%s7184_s0 + %s6356_s30]]   ;;  %s6362_s1 = smov 13  }
   0xc   :  { %s6441_s8 = sld [smem:[%s7184_s0 + %s6357_s4]]   ;;  %s6363_s7 = smov 14  }
   0xd   :  { %s6446_s14 = sld [smem:[%s7184_s0 + %s6358_s10]]   ;;  %s6365_s22 = smov 16  }
   0xe   :  { %s6451_s19 = sld [smem:[%s7184_s0 + %s6359_s15]]   ;;  %s6364_s15 = smov 15  }
   0xf   :  { %s6456_s24 = sld [smem:[%s7184_s0 + %s6360_s20]]   ;;  %s6366_s28 = smov 17  }
  0x10   :  { %s6461_s30 = sld [smem:[%s7184_s0 + %s6361_s26]]  }
  0x11   :  { %s6466_s6 = sld [smem:[%s7184_s0 + %s6362_s1]]  }
  0x12   :  { %s6471_s12 = sld [smem:[%s7184_s0 + %s6363_s7]]   ;;  %s6367_s7 = smov 18  }
  0x13   :  { %s6476_s20 = sld [smem:[%s7184_s0 + %s6364_s15]]   ;;  %s6368_s15 = smov 19  }
  0x14   :  { %s6481_s27 = sld [smem:[%s7184_s0 + %s6365_s22]]   ;;  %s6369_s22 = smov 20  }
  0x15   :  { %s6486_s4 = sld [smem:[%s7184_s0 + %s6366_s28]]   ;;  %s6370_s28 = smov 21  }
  0x16   :  { %s6491_s17 = sld [smem:[%s7184_s0 + %s6367_s7]]   ;;  %s6371_s7 = smov 22  }
  0x17   :  { %s6496_s13 = sld [smem:[%s7184_s0 + %s6368_s15]]   ;;  %s6372_s15 = smov 23  }
  0x18   :  { %7195 = sst [smem:[#allocation8_spill]] %s6471_s12 }
  0x19   :  { %s6501_s12 = sld [smem:[%s7184_s0 + %s6369_s22]]   ;;  %s6373_s22 = smov 24  }
  0x1a   :  { %7196 = sst [smem:[#allocation9_spill]] %s6481_s27 }
  0x1b   :  { %s6506_s27 = sld [smem:[%s7184_s0 + %s6370_s28]]   ;;  %s6374_s28 = smov 25  }
  0x1c   :  { %s6511_s9 = sld [smem:[%s7184_s0 + %s6371_s7]]   ;;  %s6375_s7 = smov 26  }
  0x1d   :  { %7197 = sst [smem:[#allocation10_spill]] %s6496_s13 }
  0x1e   :  { %s6516_s13 = sld [smem:[%s7184_s0 + %s6372_s15]]   ;;  %s6376_s15 = smov 27  }
  0x1f   :  { %7198 = sst [smem:[#allocation11_spill]] %s6501_s12 }
  0x20   :  { %s6521_s12 = sld [smem:[%s7184_s0 + %s6373_s22]]   ;;  %s6377_s22 = smov 28  }
  0x21   :  { %7199 = sst [smem:[#allocation12_spill]] %s6506_s27 }
  0x22   :  { %7200 = sst [smem:[#allocation13_spill]] %s6511_s9 }
  0x23   :  { %s6526_s27 = sld [smem:[%s7184_s0 + %s6374_s28]]   ;;  %s6378_s28 = smov 29  }
  0x24   :  { %7201 = sst [smem:[#allocation14_spill]] %s6516_s13 }
  0x25   :  { %s6531_s9 = sld [smem:[%s7184_s0 + %s6375_s7]]   ;;  %s6379_s7 = smov 30  }
  0x26   :  { %7202 = sst [smem:[#allocation15_spill]] %s6521_s12 }
  0x27   :  { %s6536_s13 = sld [smem:[%s7184_s0 + %s6376_s15]]   ;;  %s6380_s15 = smov 31  }
  0x28   :  { %s6541_s12 = sld [smem:[%s7184_s0 + %s6377_s22]]   ;;  %s6381_s22 = smov 32  }
  0x29   :  { %7203 = sst [smem:[#allocation16_spill]] %s6526_s27 }
  0x2a   :  { %s6546_s27 = sld [smem:[%s7184_s0 + %s6378_s28]]   ;;  %s6382_s28 = smov 33  }
  0x2b   :  { %7204 = sst [smem:[#allocation17_spill]] %s6531_s9 }
  0x2c   :  { %s6551_s9 = sld [smem:[%s7184_s0 + %s6379_s7]]   ;;  %s6383_s7 = smov 34  }
  0x2d   :  { %7205 = sst [smem:[#allocation18_spill]] %s6536_s13 }
  0x2e   :  { %7206 = sst [smem:[#allocation19_spill]] %s6541_s12 }
  0x2f   :  { %s6556_s13 = sld [smem:[%s7184_s0 + %s6380_s15]]   ;;  %s6384_s15 = smov 35  }
  0x30   :  { %7207 = sst [smem:[#allocation20_spill]] %s6546_s27 }
  0x31   :  { %s6561_s12 = sld [smem:[%s7184_s0 + %s6381_s22]]   ;;  %s6385_s22 = smov 36  }
  0x32   :  { %7208 = sst [smem:[#allocation21_spill]] %s6551_s9 }
  0x33   :  { %s6566_s27 = sld [smem:[%s7184_s0 + %s6382_s28]]   ;;  %s6386_s28 = smov 37  }
  0x34   :  { %s6571_s9 = sld [smem:[%s7184_s0 + %s6383_s7]]  }
  0x35   :  { %7209 = sst [smem:[#allocation22_spill]] %s6556_s13 }
  0x36   :  { %s6576_s13 = sld [smem:[%s7184_s0 + %s6384_s15]]  }
  0x37   :  { %7210 = sst [smem:[#allocation23_spill]] %s6561_s12 }
  0x38   :  { %s6581_s12 = sld [smem:[%s7184_s0 + %s6385_s22]]  }
  0x39   :  { %7211 = sst [smem:[#allocation24_spill]] %s6566_s27 }
  0x3a   :  { %s6586_s27 = sld [smem:[%s7184_s0 + %s6386_s28]]  }
  0x3b   :  { %v6589_v0 = vld [vmem:[%s6421_s21] sm:$0xff]  ;;  %vm172_vm0 = vcmask 130048   ;;  %v6596_v5 = vld [vmem:[%s6421_s21 + $0x8] sm:$0xff] }
  0x3c   :  { %v5188_v1 = vld [vmem:[%s6436_s3] ss:$0 sm:$0xff]  ;;  %v5189_v2 = vld [vmem:[%s6436_s3 + $0x1] ss:$0 sm:$0xff] }
  0x3d   :  { %v170_v3 = vmul.f32 %v5188_v1, %v6589_v0  ;;  %v183_v4 = vmul.f32 %v5189_v2, %v6589_v0 }
  0x3e   :  { %80 = vsyncpa [#allocation3], 0  ;;  %v171_v6 = vmul.f32 %v5188_v1, %v6596_v5  ;;  %v184_v7 = vmul.f32 %v5189_v2, %v6596_v5  ;;  %v193_v12 = vlaneseq  ;;  %v225_v19 = vld [vmem:[%s6431_s29] sm:$0xff]  ;;  %vm228_vm1 = vcmask 64512   ;;  %v388_v61 = vld [vmem:[%s6441_s8 + $0x8] sm:$0xff]  ;;  %s7212_s0 = sld [smem:[#allocation5_spill]] }
  0x3f   :  { %v173_v8 = vsel %vm172_vm0, %v170_v3, 0.0  ;;  %v185_v9 = vsel %vm172_vm0, %v183_v4, 0.0  ;;  %v251_v39 = vld [vmem:[%s6426_s25] sm:$0xff]  ;;  %vm6388_vm2 = vmmov 0   ;;  %vm951_vm5 = vcmask 523264   ;;  %s7214_s21 = sld [smem:[#allocation8_spill]] }
  0x40   :  { %174 = vadd.xlane.f32.xlu0 %v173_v8  ;;  %186 = vadd.xlane.f32.xlu1 %v185_v9  ;;  %v176_v10 = vsel %vm172_vm0, %v171_v6, 0.0  ;;  %v188_v11 = vsel %vm172_vm0, %v184_v7, 0.0  ;;  %v194_v13 = vand.u32 127, %v193_v12  ;;  %v6604_v14 = vshrl.u32 %v193_v12, 7  ;;  %v387_v60 = vld [vmem:[%s6441_s8] sm:$0xff]  ;;  %s7215_s25 = sld [smem:[#allocation10_spill]] }
  0x41   :  { %5553 = vmatprep.subr.mxu0 %v251_v39  ;;  %v5964_v62 = vpack.c.bf16 %v388_v61, %v387_v60  ;;  %v6630_v3 = vld [vmem:[%s6401_s5] sm:$0xff]  ;;  %v1159_v61 = vld [vmem:[%s6466_s6 + $0x10] sm:$0xff]  ;;  %vm1837_vm8 = vcmask 97280   ;;  %vm1737_vm9 = vcmask 261120   ;;  %vm2051_vm10 = vcmask 1043456   ;;  %s7218_s29 = sld [smem:[#allocation15_spill]] }
  0x42   :  { %v6607_v15 = vsub.s32 %v194_v13, %v6604_v14  ;;  %5554 = vmatpush3.msra.mxu0 %v251_v39  ;;  %vm6389_vm11 = vmmov 1   ;;  %s7219_s3 = sld [smem:[#allocation11_spill]]  ;;  %s7229_s7 = sld [smem:[#allocation7_spill]] }
  0x43   :  { %5965 = vmatprep.subr.bf16.mxu0 %v5964_v62  ;;  %vm6826_vm12 = vmpackc.low %vm2051_vm10, %vm6389_vm11  ;;  %s7230_s10 = sld [smem:[#allocation21_spill]]  ;;  %s7231_s11 = sld [smem:[#allocation22_spill]] }
  0x44   :  { %177 = vadd.xlane.f32.xlu0 %v176_v10  ;;  %189 = vadd.xlane.f32.xlu1 %v188_v11  ;;  %s7232_s15 = sld [smem:[#allocation24_spill]] }
  0xcd   :  { %v175_v16 = vpop.xlane.xlu0 %174  ;;  %v187_v17 = vpop.xlane.xlu1 %186 }
  0xce   :  { %v198_v18 = vrot.slane %v175_v16, %v6607_v15 }
  0xd0   :  { %v223_v20 = vmul.f32 %v198_v18, %v187_v17 }
  0xd1   :  { %v178_v21 = vpop.xlane.xlu0 %177  ;;  %v190_v22 = vpop.xlane.xlu1 %189 }
  0xd2   :  { %v202_v23 = vrot.slane %v178_v21, %v6607_v15  ;;  %v226_v24 = vadd.f32 %v225_v19, %v223_v20 }
  0xd4   :  { %v224_v25 = vmul.f32 %v202_v23, %v190_v22  ;;  %v229_v26 = vsel %vm228_vm1, %v226_v24, -inf }
  0xd5   :  { %230 = vmax.xlane.f32.xlu0 %v229_v26  ;;  %v6387_v26 = vmov 0.0  }
  0xd6   :  { %v227_v27 = vadd.f32 %v225_v19, %v224_v25  ;;  %5570 = vmatprep.subr.mxu1 %v6387_v26  ;;  %5572 = vmatprep.mubr.msk.f32.mxu1 %vm6388_vm2, %v6387_v26 }
  0xd7   :  { %5571 = vmatpush3.msra.mxu1 %v6596_v5 }
  0xd8   :  { %v232_v28 = vsel %vm228_vm1, %v227_v27, -inf  ;;  %5582 = vmatprep.subr.mxu1 %v6387_v26 }
  0xd9   :  { %233 = vmax.xlane.f32.xlu1 %v232_v28  ;;  %v5197_v28 = vld [vmem:[%s6441_s8 + $0x18] sm:$0xff] }
 0x162   :  { %v231_v29 = vpop.xlane.xlu0 %230 }
 0x163   :  { %v235_v30 = vsub.f32 %v226_v24, %v231_v29 }
 0x165   :  { %v237_v31 = vmul.f32 1.442695, %v235_v30 }
 0x166   :  { %v234_v32 = vpop.xlane.xlu1 %233 }
 0x167   :  { %6205 = vpow2.f32 %v237_v31  ;;  %v236_v33 = vsub.f32 %v227_v27, %v234_v32  ;;  %v5196_v27 = vld [vmem:[%s6441_s8 + $0x10] sm:$0xff] }
 0x168   :  { %v5968_v29 = vpack.c.bf16 %v5197_v28, %v5196_v27 }
 0x169   :  { %v239_v34 = vmul.f32 1.442695, %v236_v33 }
 0x16b   :  { %6207 = vpow2.f32 %v239_v34 }
 0x171   :  { %v6206_v35 = vpop.eup %6205 }
 0x172   :  { %v241_v36 = vsel %vm228_vm1, %v6206_v35, 0.0 }
 0x173   :  { %242 = vadd.xlane.f32.xlu0 %v241_v36 }
 0x175   :  { %v6208_v37 = vpop.eup %6207 }
 0x176   :  { %v244_v38 = vsel %vm228_vm1, %v6208_v37, 0.0 }
 0x177   :  { %245 = vadd.xlane.f32.xlu1 %v244_v38 }
 0x200   :  { %v243_v40 = vpop.xlane.xlu0 %242 }
 0x201   :  { %6209 = vrcp.f32 %v243_v40 }
 0x204   :  { %v246_v41 = vpop.xlane.xlu1 %245 }
 0x205   :  { %6211 = vrcp.f32 %v246_v41 }
 0x20b   :  { %v6210_v42 = vpop.eup %6209 }
 0x20c   :  { %v248_v43 = vmul.f32 %v6210_v42, %v6206_v35 }
 0x20e   :  { %5555 = vmatprep.mubr.msk.f32.mxu0 %vm228_vm1, %v248_v43 }
 0x20f   :  { %v6212_v44 = vpop.eup %6211 }
 0x210   :  { %v250_v45 = vmul.f32 %v6212_v44, %v6208_v37 }
 0x212   :  { %5556 = vmatmul.mubr.msk.f32.vlgmr.msra.gmra.mrb[0].mxu0 %vm228_vm1, %v250_v45 }
 0x213   :  { %5562 = vmatprep.mubr.msk.f32.mxu0 %vm172_vm0, %v6589_v0  ;;  %5967 = vmatpush3.bf16.msra.mxu0 %v5964_v62  ;;  %v1160_v62 = vld [vmem:[%s6466_s6 + $0x18] sm:$0xff] }
 0x214   :  { %5565 = vmatprep.subr.mxu0 %v6387_v26 }
 0x216   :  { %5563 = vmatmul.mubr.msk.f32.vlgmr.msra.gmra.mrb[2].mxu0 %vm172_vm0, %v6596_v5 }
 0x217   :  { %5566 = vmatpush3.msra.mxu0 %v6589_v0  ;;  %5567 = vmatprep.mubr.msk.f32.mxu0 %vm6388_vm2, %v6387_v26 }
 0x218   :  { %5969 = vmatprep.subr.bf16.mxu0 %v5968_v29 }
 0x2e5   :  { %v5557_v46 = vpop.f32.mrb[0].mxu0 }
 0x2e6   :  { %v324_v47 = vpop.f32.mrb[1].mxu0  ;;  %v336_v48 = vsel %vm228_vm1, %v5557_v46, -inf }
 0x2e7   :  { %337 = vmax.xlane.f32.xlu1 %v336_v48  ;;  %v333_v49 = vsel %vm228_vm1, %v324_v47, -inf }
 0x2e8   :  { %334 = vmax.xlane.f32.xlu0 %v333_v49  ;;  %v1157_v49 = vld [vmem:[%s6466_s6] sm:$0xff] }
 0x2e9   :  { %v6647_v34 = vpop.f32.mrb[2].mxu0 }
 0x2ea   :  { %v6649_v35 = vpop.f32.mrb[3].mxu0 }
 0x374   :  { %v338_v50 = vpop.xlane.xlu1 %337 }
 0x375   :  { %v340_v51 = vsub.f32 %v5557_v46, %v338_v50  ;;  %v335_v52 = vpop.xlane.xlu0 %334  ;;  %v5202_v46 = vld [vmem:[%s6441_s8 + $0x20] sm:$0xff]  ;;  %v1158_v50 = vld [vmem:[%s6466_s6 + $0x8] sm:$0xff] }
 0x376   :  { %v339_v53 = vsub.f32 %v324_v47, %v335_v52  ;;  %v5203_v47 = vld [vmem:[%s6441_s8 + $0x28] sm:$0xff]  ;;  %s7220_s8 = sld [smem:[#allocation14_spill]] }
 0x377   :  { %v343_v54 = vmul.f32 1.442695, %v340_v51  ;;  %v5972_v48 = vpack.c.bf16 %v5203_v47, %v5202_v46  ;;  %v5976_v51 = vpack.c.bf16 %v1158_v50, %v1157_v49 }
 0x378   :  { %v341_v55 = vmul.f32 1.442695, %v339_v53 }
 0x379   :  { %6213 = vpow2.f32 %v343_v54 }
 0x37a   :  { %6215 = vpow2.f32 %v341_v55 }
 0x383   :  { %v6214_v56 = vpop.eup %6213 }
 0x384   :  { %v6216_v57 = vpop.eup %6215  ;;  %v348_v58 = vsel %vm228_vm1, %v6214_v56, 0.0 }
 0x385   :  { %349 = vadd.xlane.f32.xlu1 %v348_v58  ;;  %v345_v59 = vsel %vm228_vm1, %v6216_v57, 0.0 }
 0x386   :  { %346 = vadd.xlane.f32.xlu0 %v345_v59 }
 0x412   :  { %v350_v63 = vpop.xlane.xlu1 %349 }
 0x413   :  { %6217 = vrcp.f32 %v350_v63  ;;  %v347_v1 = vpop.xlane.xlu0 %346 }
 0x414   :  { %6219 = vrcp.f32 %v347_v1 }
 0x41d   :  { %v6218_v2 = vpop.eup %6217 }
 0x41e   :  { %v6220_v4 = vpop.eup %6219  ;;  %v354_v6 = vmul.f32 %v6218_v2, %v6214_v56 }
 0x41f   :  { %v352_v7 = vmul.f32 %v6220_v4, %v6216_v57  ;;  %v5980_v4 = vpack.c.bf16 %v1160_v62, %v1159_v61 }
 0x420   :  { %v356_v8 = vmul.f32 %v354_v6, %v6630_v3  ;;  %v1161_v6 = vld [vmem:[%s6466_s6 + $0x20] sm:$0xff] }
 0x421   :  { %v355_v9 = vmul.f32 %v352_v7, %v6630_v3 }
 0x422   :  { %v364_v10 = vsel %vm228_vm1, %v356_v8, 0.0 }
 0x423   :  { %v365_v11 = vrot.slane %v364_v10, 4  ;;  %v357_v12 = vsel %vm228_vm1, %v355_v9, 0.0 }
 0x424   :  { %v358_v13 = vrot.slane %v357_v12, 4 }
 0x425   :  { %v366_v16 = vadd.f32 %v365_v11, %v364_v10  ;;  %v5206_v11 = vld [vmem:[%s6446_s14] ss:$0 sm:$0xff]  ;;  %s7221_s14 = sld [smem:[#allocation13_spill]] }
 0x426   :  { %v359_v17 = vadd.f32 %v358_v13, %v357_v12 }
 0x427   :  { %v367_v18 = vrot.slane %v366_v16, 2 }
 0x428   :  { %v360_v19 = vrot.slane %v359_v17, 2 }
 0x429   :  { %v368_v20 = vadd.f32 %v367_v18, %v366_v16 }
 0x42a   :  { %v361_v21 = vadd.f32 %v360_v19, %v359_v17  ;;  %v5207_v19 = vld [vmem:[%s6461_s30] ss:$0 sm:$0xff] }
 0x42b   :  { %v369_v22 = vrot.slane %v368_v20, 1 }
 0x42c   :  { %v362_v23 = vrot.slane %v361_v21, 1 }
 0x42d   :  { %v370_v24 = vadd.f32 %v369_v22, %v368_v20  ;;  %v5208_v22 = vld [vmem:[%s6461_s30 + $0x1] ss:$0 sm:$0xff]  ;;  %s7224_s30 = sld [smem:[#allocation20_spill]] }
 0x42e   :  { %v363_v25 = vadd.f32 %v362_v23, %v361_v21 }
 0x42f   :  { %6221 = vrsqrt.f32 %v370_v24  ;;  %vm372_vm3 = vcmp.gt.f32.partialorder %v370_v24, 0.0 }
 0x430   :  { %6223 = vrsqrt.f32 %v363_v25  ;;  %vm371_vm4 = vcmp.gt.f32.partialorder %v363_v25, 0.0 }
 0x439   :  { %v6222_v30 = vpop.eup %6221 }
 0x43a   :  { %v6224_v31 = vpop.eup %6223  ;;  %v376_v32 = vsel %vm372_vm3, %v6222_v30, 0.0 }
 0x43b   :  { %381 = vbcast.lane.b32.xlu1 %v376_v32, 256  ;;  %v375_v33 = vsel %vm371_vm4, %v6224_v31, 0.0 }
 0x43c   :  { %378 = vbcast.lane.b32.xlu0 %v375_v33, 256 }
 0x4ad   :  { %v382_v36 = vpop.permute.xlu1 %381 }
 0x4ae   :  { %v384_v37 = vmul.f32 %v382_v36, %v356_v8  ;;  %v379_v38 = vpop.permute.xlu0 %378  ;;  %v1163_v8 = vld [vmem:[%s6466_s6 + $0x30] sm:$0xff] }
 0x4af   :  { %v383_v39 = vmul.f32 %v379_v38, %v355_v9  ;;  %v1164_v9 = vld [vmem:[%s6466_s6 + $0x38] sm:$0xff] }
 0x4b0   :  { %v386_v40 = vmul.f32 %v384_v37, %v376_v32  ;;  %v5988_v10 = vpack.c.bf16 %v1164_v9, %v1163_v8  ;;  %v996_v37 = vld [vmem:[%s6456_s24] sm:$0xff]  ;;  %s7223_s24 = sld [smem:[#allocation17_spill]] }
 0x4b1   :  { %v385_v41 = vmul.f32 %v383_v39, %v375_v33 }
 0x4b2   :  { %5573 = vmatmul.mubr.msk.f32.vlgmr.msra.gmra.mrb[0].mxu1 %vm228_vm1, %v386_v40 }
 0x4b3   :  { %5568 = vmatmul.mubr.msk.f32.vlgmr.msra.gmra.mrb[4].mxu0 %vm228_vm1, %v385_v41  ;;  %5584 = vmatprep.mubr.msk.f32.mxu1 %vm6388_vm2, %v6387_v26 }
 0x4b4   :  { %5971 = vmatpush3.bf16.msra.mxu0 %v5968_v29 }
 0x4b5   :  { %5587 = vmatprep.subr.mxu0 %v6387_v26 }
 0x585   :  { %v612_v42 = vpop.f32.mrb[0].mxu1 }
 0x586   :  { %v539_v43 = vpop.f32.mrb[4].mxu0  ;;  %v5574_v44 = vpop.f32.mrb[1].mxu1 }
 0x587   :  { %v5569_v45 = vpop.f32.mrb[5].mxu0  ;;  %5579 = vmatprep.mubr.msk.f32.mxu0 %vm172_vm0, %v539_v43  ;;  %5583 = vmatpush3.msra.mxu1 %v539_v43 }
 0x588   :  { %5580 = vmatmul.mubr.msk.f32.vlgmr.msra.gmra.mrb[6].mxu0 %vm172_vm0, %v612_v42  ;;  %5585 = vmatmul.mubr.msk.f32.vlgmr.msra.gmra.mrb[2].mxu1 %vm228_vm1, %v385_v41 }
 0x589   :  { %5588 = vmatpush3.msra.mxu0 %v612_v42  ;;  %5589 = vmatprep.mubr.msk.f32.mxu0 %vm6388_vm2, %v6387_v26 }
 0x58a   :  { %5973 = vmatprep.subr.bf16.mxu1 %v5972_v48 }
 0x58b   :  { %5975 = vmatpush3.bf16.msra.mxu1 %v5972_v48 }
 0x58c   :  { %5590 = vmatmul.mubr.msk.f32.vlgmr.msra.gmra.mrb[8].mxu0 %vm228_vm1, %v386_v40  ;;  %5977 = vmatprep.subr.bf16.mxu1 %v5976_v51 }
 0x65b   :  { %v5581_v52 = vpop.f32.mrb[6].mxu0  ;;  %v768_v53 = vpop.f32.mrb[2].mxu1 }
 0x65c   :  { %v701_v54 = vsub.f32 %v6647_v34, %v5581_v52  ;;  %v842_v55 = vmul.f32 2.0, %v768_v53  ;;  %v691_v56 = vpop.f32.mrb[7].mxu0  ;;  %v5586_v57 = vpop.f32.mrb[3].mxu1 }
 0x65d   :  { %v700_v58 = vsub.f32 %v6649_v35, %v691_v56  ;;  %v1021_v57 = vld [vmem:[%s6451_s19] sm:$0xff]  ;;  %s7222_s19 = sld [smem:[#allocation12_spill]] }
 0x65e   :  { %v844_v59 = vsub.f32 %v842_v55, %v6589_v0  ;;  %v1162_v0 = vld [vmem:[%s6466_s6 + $0x28] sm:$0xff]  ;;  %5599 = vmatprep.subr.mxu0 %v1021_v57 }
 0x65f   :  { %v838_v60 = vpop.f32.mrb[8].mxu0  ;;  %v5984_v7 = vpack.c.bf16 %v1162_v0, %v1161_v6  ;;  %5600 = vmatpush3.msra.mxu0 %v1021_v57 }
 0x660   :  { %v843_v63 = vmul.f32 2.0, %v838_v60  ;;  %v5591_v1 = vpop.f32.mrb[9].mxu0  ;;  %5596 = vmatprep.mubr.msk.f32.mxu1 %vm172_vm0, %v844_v59  ;;  %5623 = vmatprep.subr.mxu0 %v6387_v26 }
 0x662   :  { %v845_v2 = vsub.f32 %v843_v63, %v6596_v5 }
 0x664   :  { %5597 = vmatmul.mubr.msk.f32.vlgmr.msra.gmra.mrb[4].mxu1 %vm172_vm0, %v845_v2 }
 0x665   :  { %5979 = vmatpush3.bf16.msra.mxu1 %v5976_v51 }
 0x666   :  { %5981 = vmatprep.subr.bf16.mxu1 %v5980_v4 }
 0x669   :  { %5983 = vmatpush3.bf16.msra.mxu1 %v5980_v4 }
 0x66a   :  { %5985 = vmatprep.subr.bf16.mxu1 %v5984_v7 }
 0x66d   :  { %5987 = vmatpush3.bf16.msra.mxu1 %v5984_v7 }
 0x66e   :  { %5989 = vmatprep.subr.bf16.mxu1 %v5988_v10 }
 0x671   :  { %5991 = vmatpush3.bf16.msra.mxu1 %v5988_v10 }
 0x672   :  { %5652 = vmatprep.subr.mxu1 %v6387_v26 }
 0x737   :  { %v5598_v5 = vpop.f32.mrb[4].mxu1 }
 0x738   :  { %v931_v12 = vadd.f32 %v5598_v5, %v701_v54  ;;  %v921_v13 = vpop.f32.mrb[5].mxu1 }
 0x739   :  { %v930_v16 = vadd.f32 %v921_v13, %v700_v58 }
 0x73a   :  { %v940_v17 = vadd.f32 %v5206_v11, %v931_v12 }
 0x73b   :  { %v939_v18 = vadd.f32 %v5206_v11, %v930_v16 }
 0x73c   :  { %v6681_v20 = vmax.f32 %v940_v17, 0.0 }
 0x73d   :  { %v6683_v21 = vmax.f32 %v939_v18, 0.0 }
 0x73e   :  { %v950_v23 = vmul.f32 %v5207_v19, %v6681_v20  ;;  %v963_v29 = vmul.f32 %v5208_v22, %v6681_v20 }
 0x73f   :  { %5620 = vmatprep.mubr.msk.f32.mxu1 %vm951_vm5, %v6683_v21  ;;  %v949_v24 = vmul.f32 %v5207_v19, %v6683_v21  ;;  %v962_v27 = vmul.f32 %v5208_v22, %v6683_v21 }
 0x740   :  { %5621 = vmatmul.mubr.msk.f32.vlgmr.msra.gmra.mrb[6].mxu1 %vm951_vm5, %v6681_v20  ;;  %v955_v25 = vsel %vm951_vm5, %v950_v23, 0.0  ;;  %v967_v31 = vsel %vm951_vm5, %v963_v29, 0.0 }
 0x741   :  { %956 = vadd.xlane.f32.xlu0 %v955_v25  ;;  %v952_v28 = vsel %vm951_vm5, %v949_v24, 0.0  ;;  %5654 = vmatprep.mubr.msk.f32.mxu1 %vm6388_vm2, %v6387_v26  ;;  %v964_v30 = vsel %vm951_vm5, %v962_v27, 0.0 }
 0x742   :  { %953 = vadd.xlane.f32.xlu1 %v952_v28 }
 0x745   :  { %965 = vadd.xlane.f32.xlu0 %v964_v30 }
 0x746   :  { %968 = vadd.xlane.f32.xlu1 %v967_v31 }
 0x7ce   :  { %v957_v32 = vpop.xlane.xlu0 %956 }
 0x7cf   :  { %v954_v33 = vpop.xlane.xlu1 %953  ;;  %v979_v35 = vrot.slane %v957_v32, %v6607_v15 }
 0x7d0   :  { %v975_v34 = vrot.slane %v954_v33, %v6607_v15 }
 0x7d2   :  { %v966_v36 = vpop.xlane.xlu0 %965 }
 0x7d3   :  { %v994_v38 = vmul.f32 %v975_v34, %v966_v36  ;;  %v969_v39 = vpop.xlane.xlu1 %968 }
 0x7d4   :  { %v995_v40 = vmul.f32 %v979_v35, %v969_v39 }
 0x7d5   :  { %v997_v41 = vadd.f32 %v996_v37, %v994_v38 }
 0x7d6   :  { %v998_v42 = vadd.f32 %v996_v37, %v995_v40 }
 0x7d7   :  { %v999_v43 = vsel %vm228_vm1, %v997_v41, -inf }
 0x7d8   :  { %1000 = vmax.xlane.f32.xlu0 %v999_v43  ;;  %v1002_v44 = vsel %vm228_vm1, %v998_v42, -inf }
 0x7d9   :  { %1003 = vmax.xlane.f32.xlu1 %v1002_v44 }
 0x813   :  { %v6705_v45 = vpop.f32.mrb[6].mxu1 }
 0x814   :  { %v6707_v46 = vpop.f32.mrb[7].mxu1 }
 0x865   :  { %v1001_v47 = vpop.xlane.xlu0 %1000 }
 0x866   :  { %v1005_v48 = vsub.f32 %v997_v41, %v1001_v47  ;;  %v1004_v49 = vpop.xlane.xlu1 %1003 }
 0x867   :  { %v1006_v50 = vsub.f32 %v998_v42, %v1004_v49  ;;  %v5241_v49 = vld [vmem:[%s6491_s17] ss:$0 sm:$0xff] }
 0x868   :  { %v1007_v51 = vmul.f32 1.442695, %v1005_v48  ;;  %v6728_v48 = vld [vmem:[%s6476_s20 + $0x8] sm:$0xff] }
 0x869   :  { %v1009_v52 = vmul.f32 1.442695, %v1006_v50  ;;  %v1836_v50 = vmul.f32 %v5241_v49, %v6728_v48 }
 0x86a   :  { %6225 = vpow2.f32 %v1007_v51  ;;  %v6733_v51 = vld [vmem:[%s6476_s20] sm:$0xff]  ;;  %s7227_s20 = sld [smem:[#allocation16_spill]] }
 0x86b   :  { %6227 = vpow2.f32 %v1009_v52  ;;  %v5242_v52 = vld [vmem:[%s6491_s17 + $0x1] ss:$0 sm:$0xff]  ;;  %s7213_s17 = sld [smem:[#allocation9_spill]] }
 0x874   :  { %v6226_v53 = vpop.eup %6225 }
 0x875   :  { %v6228_v54 = vpop.eup %6227  ;;  %v1011_v55 = vsel %vm228_vm1, %v6226_v53, 0.0 }
 0x876   :  { %1012 = vadd.xlane.f32.xlu0 %v1011_v55  ;;  %v1014_v56 = vsel %vm228_vm1, %v6228_v54, 0.0  ;;  %v1848_v55 = vmul.f32 %v5242_v52, %v6733_v51 }
 0x877   :  { %1015 = vadd.xlane.f32.xlu1 %v1014_v56 }
 0x878   :  { %v1850_v57 = vsel %vm1837_vm8, %v1848_v55, 0.0  ;;  %v5230_v55 = vld [vmem:[%s6466_s6 + $0x98] sm:$0xff] }
 0x903   :  { %v1013_v58 = vpop.xlane.xlu0 %1012 }
 0x904   :  { %6229 = vrcp.f32 %v1013_v58  ;;  %v1016_v59 = vpop.xlane.xlu1 %1015  ;;  %v1849_v58 = vmul.f32 %v5242_v52, %v6728_v48  ;;  %v5228_v52 = vld [vmem:[%s6466_s6 + $0x88] sm:$0xff] }
 0x905   :  { %6231 = vrcp.f32 %v1016_v59 }
 0x906   :  { %v1853_v59 = vsel %vm1837_vm8, %v1849_v58, 0.0  ;;  %v5232_v58 = vld [vmem:[%s6466_s6 + $0xa8] sm:$0xff] }
 0x90e   :  { %v6230_v60 = vpop.eup %6229 }
 0x90f   :  { %v6232_v61 = vpop.eup %6231  ;;  %v1018_v62 = vmul.f32 %v6230_v60, %v6226_v53  ;;  %v1841_v53 = vsel %vm1837_vm8, %v1836_v50, 0.0  ;;  %v5227_v50 = vld [vmem:[%s6466_s6 + $0x80] sm:$0xff] }
 0x910   :  { %v1020_v63 = vmul.f32 %v6232_v61, %v6228_v54  ;;  %v1835_v54 = vmul.f32 %v5241_v49, %v6733_v51 }
 0x911   :  { %5601 = vmatprep.mubr.msk.f32.mxu0 %vm228_vm1, %v1018_v62  ;;  %v5215_v62 = vld [vmem:[%s6466_s6 + $0x40] sm:$0xff] }
 0x912   :  { %5602 = vmatmul.mubr.msk.f32.vlgmr.msra.gmra.mrb[10].mxu0 %vm228_vm1, %v1020_v63  ;;  %v1838_v56 = vsel %vm1837_vm8, %v1835_v54, 0.0  ;;  %v5216_v63 = vld [vmem:[%s6466_s6 + $0x48] sm:$0xff]  ;;  %v6008_v54 = vpack.c.bf16 %v5228_v52, %v5227_v50 }
 0x913   :  { %5624 = vmatpush3.msra.mxu0 %v6683_v21  ;;  %5625 = vmatprep.mubr.msk.f32.mxu0 %vm6388_vm2, %v6387_v26 }
 0x914   :  { %5628 = vmatprep.subr.mxu0 %v6387_v26 }
 0x9e5   :  { %v5603_v1 = vpop.f32.mrb[10].mxu0 }
 0x9e6   :  { %v1094_v2 = vpop.f32.mrb[11].mxu0  ;;  %v1106_v4 = vsel %vm228_vm1, %v5603_v1, -inf }
 0x9e7   :  { %1107 = vmax.xlane.f32.xlu1 %v1106_v4  ;;  %v1103_v6 = vsel %vm228_vm1, %v1094_v2, -inf }
 0x9e8   :  { %1104 = vmax.xlane.f32.xlu0 %v1103_v6  ;;  %v5992_v6 = vpack.c.bf16 %v5216_v63, %v5215_v62 }
 0xa74   :  { %v1108_v0 = vpop.xlane.xlu1 %1107 }
 0xa75   :  { %v1110_v7 = vsub.f32 %v5603_v1, %v1108_v0  ;;  %v1105_v8 = vpop.xlane.xlu0 %1104  ;;  %v5217_v0 = vld [vmem:[%s6466_s6 + $0x50] sm:$0xff] }
 0xa76   :  { %v1109_v9 = vsub.f32 %v1094_v2, %v1105_v8 }
 0xa77   :  { %v1113_v10 = vmul.f32 1.442695, %v1110_v7  ;;  %v5218_v7 = vld [vmem:[%s6466_s6 + $0x58] sm:$0xff] }
 0xa78   :  { %v1111_v5 = vmul.f32 1.442695, %v1109_v9  ;;  %v5996_v9 = vpack.c.bf16 %v5218_v7, %v5217_v0 }
 0xa79   :  { %6233 = vpow2.f32 %v1113_v10 }
 0xa7a   :  { %6235 = vpow2.f32 %v1111_v5 }
 0xa83   :  { %v6234_v11 = vpop.eup %6233 }
 0xa84   :  { %v6236_v12 = vpop.eup %6235  ;;  %v1118_v13 = vsel %vm228_vm1, %v6234_v11, 0.0 }
 0xa85   :  { %1119 = vadd.xlane.f32.xlu1 %v1118_v13  ;;  %v1115_v16 = vsel %vm228_vm1, %v6236_v12, 0.0 }
 0xa86   :  { %1116 = vadd.xlane.f32.xlu0 %v1115_v16  ;;  %v1882_v16 = vld [vmem:[%s6486_s4] sm:$0xff]  ;;  %s7228_s4 = sld [smem:[#allocation6_spill]] }
 0xb12   :  { %v1120_v17 = vpop.xlane.xlu1 %1119 }
 0xb13   :  { %6237 = vrcp.f32 %v1120_v17  ;;  %v1117_v18 = vpop.xlane.xlu0 %1116 }
 0xb14   :  { %6239 = vrcp.f32 %v1117_v18 }
 0xb1d   :  { %v6238_v19 = vpop.eup %6237 }
 0xb1e   :  { %v6240_v22 = vpop.eup %6239  ;;  %v1124_v23 = vmul.f32 %v6238_v19, %v6234_v11 }
 0xb1f   :  { %v1122_v24 = vmul.f32 %v6240_v22, %v6236_v12 }
 0xb20   :  { %v1126_v25 = vmul.f32 %v1124_v23, %v6630_v3 }
 0xb21   :  { %v1125_v27 = vmul.f32 %v1122_v24, %v6630_v3 }
 0xb22   :  { %v1134_v28 = vsel %vm228_vm1, %v1126_v25, 0.0 }
 0xb23   :  { %v1135_v29 = vrot.slane %v1134_v28, 4  ;;  %v1127_v30 = vsel %vm228_vm1, %v1125_v27, 0.0 }
 0xb24   :  { %v1128_v31 = vrot.slane %v1127_v30, 4 }
 0xb25   :  { %v1136_v32 = vadd.f32 %v1135_v29, %v1134_v28  ;;  %v5220_v28 = vld [vmem:[%s6466_s6 + $0x68] sm:$0xff] }
 0xb26   :  { %v1129_v33 = vadd.f32 %v1128_v31, %v1127_v30  ;;  %v5221_v30 = vld [vmem:[%s6466_s6 + $0x70] sm:$0xff]  ;;  %v5222_v31 = vld [vmem:[%s6466_s6 + $0x78] sm:$0xff] }
 0xb27   :  { %v1137_v34 = vrot.slane %v1136_v32, 2 }
 0xb28   :  { %v1130_v35 = vrot.slane %v1129_v33, 2 }
 0xb29   :  { %v1138_v36 = vadd.f32 %v1137_v34, %v1136_v32  ;;  %v6004_v32 = vpack.c.bf16 %v5222_v31, %v5221_v30 }
 0xb2a   :  { %v1131_v37 = vadd.f32 %v1130_v35, %v1129_v33 }
 0xb2b   :  { %v1139_v38 = vrot.slane %v1138_v36, 1 }
 0xb2c   :  { %v1132_v39 = vrot.slane %v1131_v37, 1 }
 0xb2d   :  { %v1140_v40 = vadd.f32 %v1139_v38, %v1138_v36 }
 0xb2e   :  { %v1133_v41 = vadd.f32 %v1132_v39, %v1131_v37 }
 0xb2f   :  { %6241 = vrsqrt.f32 %v1140_v40  ;;  %vm1142_vm6 = vcmp.gt.f32.partialorder %v1140_v40, 0.0 }
 0xb30   :  { %6243 = vrsqrt.f32 %v1133_v41  ;;  %vm1141_vm7 = vcmp.gt.f32.partialorder %v1133_v41, 0.0 }
 0xb39   :  { %v6242_v42 = vpop.eup %6241 }
 0xb3a   :  { %v6244_v43 = vpop.eup %6243  ;;  %v1146_v44 = vsel %vm1142_vm6, %v6242_v42, 0.0 }
 0xb3b   :  { %1151 = vbcast.lane.b32.xlu1 %v1146_v44, 256  ;;  %v1145_v47 = vsel %vm1141_vm7, %v6244_v43, 0.0 }
 0xb3c   :  { %1148 = vbcast.lane.b32.xlu0 %v1145_v47, 256 }
 0xb5b   :  { %1842 = vadd.xlane.f32.xlu0 %v1841_v53  ;;  %v5229_v53 = vld [vmem:[%s6466_s6 + $0x90] sm:$0xff] }
 0xb5f   :  { %1839 = vadd.xlane.f32.xlu1 %v1838_v56  ;;  %1851 = vadd.xlane.f32.xlu0 %v1850_v57  ;;  %v6012_v56 = vpack.c.bf16 %v5230_v55, %v5229_v53  ;;  %v5231_v57 = vld [vmem:[%s6466_s6 + $0xa0] sm:$0xff] }
 0xb60   :  { %v2043_v55 = vld [vmem:[%s7215_s25] sm:$0xff] }
 0xb63   :  { %1854 = vadd.xlane.f32.xlu1 %v1853_v59  ;;  %v6016_v59 = vpack.c.bf16 %v5232_v58, %v5231_v57 }
 0xbad   :  { %v1152_v60 = vpop.permute.xlu1 %1151 }
 0xbae   :  { %v1149_v61 = vpop.permute.xlu0 %1148  ;;  %v1154_v2 = vmul.f32 %v1152_v60, %v1126_v25  ;;  %v5233_v60 = vld [vmem:[%s6466_s6 + $0xb0] sm:$0xff] }
 0xbaf   :  { %v1153_v1 = vmul.f32 %v1149_v61, %v1125_v27  ;;  %v5219_v27 = vld [vmem:[%s6466_s6 + $0x60] sm:$0xff]  ;;  %v5234_v61 = vld [vmem:[%s6466_s6 + $0xb8] sm:$0xff]  ;;  %s7226_s6 = sld [smem:[#allocation18_spill]] }
 0xbb0   :  { %v1156_v8 = vmul.f32 %v1154_v2, %v1146_v44  ;;  %v6000_v29 = vpack.c.bf16 %v5220_v28, %v5219_v27  ;;  %v6020_v62 = vpack.c.bf16 %v5234_v61, %v5233_v60 }
 0xbb1   :  { %v1155_v4 = vmul.f32 %v1153_v1, %v1145_v47 }
 0xbb3   :  { %5626 = vmatmul.mubr.msk.f32.vlgmr.msra.gmra.mrb[12].mxu0 %vm228_vm1, %v1155_v4 }
 0xbb4   :  { %5629 = vmatpush3.msra.mxu0 %v6681_v20  ;;  %5630 = vmatprep.mubr.msk.f32.mxu0 %vm6388_vm2, %v6387_v26 }
 0xbb5   :  { %5993 = vmatprep.subr.bf16.mxu0 %v5992_v6 }
 0xbb7   :  { %5631 = vmatmul.mubr.msk.f32.vlgmr.msra.gmra.mrb[14].mxu0 %vm228_vm1, %v1156_v8 }
 0xbb8   :  { %5995 = vmatpush3.bf16.msra.mxu0 %v5992_v6 }
 0xbb9   :  { %5997 = vmatprep.subr.bf16.mxu0 %v5996_v9 }
 0xbbc   :  { %5999 = vmatpush3.bf16.msra.mxu0 %v5996_v9 }
 0xbbd   :  { %6001 = vmatprep.subr.bf16.mxu0 %v6000_v29 }
 0xbc0   :  { %6003 = vmatpush3.bf16.msra.mxu0 %v6000_v29 }
 0xbc1   :  { %6005 = vmatprep.subr.bf16.mxu0 %v6004_v32 }
 0xbc4   :  { %6007 = vmatpush3.bf16.msra.mxu0 %v6004_v32 }
 0xbe8   :  { %v1843_v10 = vpop.xlane.xlu0 %1842 }
 0xbe9   :  { %v1865_v12 = vrot.slane %v1843_v10, %v6607_v15 }
 0xbec   :  { %v1840_v5 = vpop.xlane.xlu1 %1839  ;;  %v1852_v11 = vpop.xlane.xlu0 %1851 }
 0xbed   :  { %v1861_v13 = vrot.slane %v1840_v5, %v6607_v15 }
 0xbef   :  { %v1880_v17 = vmul.f32 %v1861_v13, %v1852_v11  ;;  %v159_v13 = vld [vmem:[%s7212_s0 + $0x18] sm:$0xff] }
 0xbf0   :  { %v1855_v18 = vpop.xlane.xlu1 %1854 }
 0xbf1   :  { %v1881_v19 = vmul.f32 %v1865_v12, %v1855_v18  ;;  %v1883_v22 = vadd.f32 %v1882_v16, %v1880_v17 }
 0xbf3   :  { %v1885_v23 = vsel %vm228_vm1, %v1883_v22, -inf  ;;  %v1884_v24 = vadd.f32 %v1882_v16, %v1881_v19 }
 0xbf4   :  { %1886 = vmax.xlane.f32.xlu0 %v1885_v23 }
 0xbf5   :  { %v1888_v25 = vsel %vm228_vm1, %v1884_v24, -inf }
 0xbf6   :  { %1889 = vmax.xlane.f32.xlu1 %v1888_v25 }
 0xc81   :  { %v1887_v33 = vpop.xlane.xlu0 %1886 }
 0xc82   :  { %v1891_v34 = vsub.f32 %v1883_v22, %v1887_v33  ;;  %v5237_v22 = vld [vmem:[%s7214_s21] ss:$0 sm:$0xff] }
 0xc83   :  { %v1890_v35 = vpop.xlane.xlu1 %1889 }
 0xc84   :  { %v1893_v36 = vmul.f32 1.442695, %v1891_v34  ;;  %v1892_v37 = vsub.f32 %v1884_v24, %v1890_v35 }
 0xc86   :  { %6245 = vpow2.f32 %v1893_v36  ;;  %v1895_v38 = vmul.f32 1.442695, %v1892_v37  ;;  %v1315_v39 = vpop.f32.mrb[12].mxu0 }
 0xc87   :  { %v5627_v40 = vpop.f32.mrb[13].mxu0  ;;  %5649 = vmatprep.mubr.msk.f32.mxu0 %vm951_vm5, %v1315_v39  ;;  %5653 = vmatpush3.msra.mxu1 %v1315_v39 }
 0xc88   :  { %6247 = vpow2.f32 %v1895_v38  ;;  %5655 = vmatmul.mubr.msk.f32.vlgmr.msra.gmra.mrb[8].mxu1 %vm228_vm1, %v1155_v4  ;;  %5657 = vmatprep.subr.mxu1 %v6387_v26 }
 0xc89   :  { %5659 = vmatprep.mubr.msk.f32.mxu1 %vm6388_vm2, %v6387_v26 }
 0xc8a   :  { %v1388_v41 = vpop.f32.mrb[14].mxu0 }
 0xc8b   :  { %v5632_v42 = vpop.f32.mrb[15].mxu0  ;;  %5650 = vmatmul.mubr.msk.f32.vlgmr.msra.gmra.mrb[16].mxu0 %vm951_vm5, %v1388_v41  ;;  %5658 = vmatpush3.msra.mxu1 %v1388_v41 }
 0xc8c   :  { %5660 = vmatmul.mubr.msk.f32.vlgmr.msra.gmra.mrb[10].mxu1 %vm228_vm1, %v1156_v8  ;;  %6009 = vmatprep.subr.bf16.mxu1 %v6008_v54 }
 0xc8d   :  { %6011 = vmatpush3.bf16.msra.mxu1 %v6008_v54 }
 0xc8e   :  { %6013 = vmatprep.subr.bf16.mxu1 %v6012_v56 }
 0xc90   :  { %v6768_v43 = vpop.eup %6245 }
 0xc91   :  { %v1897_v44 = vsel %vm228_vm1, %v6768_v43, 0.0  ;;  %6015 = vmatpush3.bf16.msra.mxu1 %v6012_v56  ;;  %v2044_v56 = vld [vmem:[%s7215_s25 + $0x8] sm:$0xf] }
 0xc92   :  { %v6772_v47 = vpop.eup %6247  ;;  %1898 = vadd.xlane.f32.xlu0 %v1897_v44  ;;  %6017 = vmatprep.subr.bf16.mxu1 %v6016_v59  ;;  %v6032_v57 = vpack.c.bf16 %v2044_v56, %v2043_v55 }
 0xc93   :  { %v1900_v49 = vsel %vm228_vm1, %v6772_v47, 0.0 }
 0xc94   :  { %1901 = vadd.xlane.f32.xlu1 %v1900_v49 }
 0xc95   :  { %6019 = vmatpush3.bf16.msra.mxu1 %v6016_v59 }
 0xc96   :  { %6021 = vmatprep.subr.bf16.mxu1 %v6020_v62 }
 0xc99   :  { %6023 = vmatpush3.bf16.msra.mxu1 %v6020_v62 }
 0xc9a   :  { %5704 = vmatprep.subr.mxu1 %v6387_v26 }
 0xd1f   :  { %v1899_v17 = vpop.xlane.xlu0 %1898 }
 0xd20   :  { %6249 = vrcp.f32 %v1899_v17 }
 0xd21   :  { %v1902_v18 = vpop.xlane.xlu1 %1901 }
 0xd22   :  { %6251 = vrcp.f32 %v1902_v18  ;;  %v5251_v18 = vld [vmem:[%s7215_s25 + $0x18] sm:$0xf] }
 0xd2a   :  { %v6250_v29 = vpop.eup %6249 }
 0xd2b   :  { %v1904_v33 = vmul.f32 %v6250_v29, %v6768_v43 }
 0xd2c   :  { %v6252_v32 = vpop.eup %6251 }
 0xd2d   :  { %v1906_v34 = vmul.f32 %v6252_v32, %v6772_v47 }
 0xd5b   :  { %v1550_v63 = vpop.f32.mrb[8].mxu1 }
 0xd5c   :  { %v1624_v1 = vmul.f32 2.0, %v1550_v63  ;;  %v5656_v2 = vpop.f32.mrb[9].mxu1 }
 0xd5e   :  { %v1626_v4 = vsub.f32 %v1624_v1, %v6683_v21  ;;  %v5651_v6 = vpop.f32.mrb[16].mxu0  ;;  %v156_v21 = vld [vmem:[%s7212_s0] sm:$0xff] }
 0xd5f   :  { %v1483_v0 = vsub.f32 %v6705_v45, %v5651_v6  ;;  %v1473_v7 = vpop.f32.mrb[17].mxu0  ;;  %v1620_v8 = vpop.f32.mrb[10].mxu1  ;;  %v157_v45 = vld [vmem:[%s7212_s0 + $0x8] sm:$0xff] }
 0xd60   :  { %v1482_v9 = vsub.f32 %v6707_v46, %v1473_v7  ;;  %v1625_v10 = vmul.f32 2.0, %v1620_v8  ;;  %v5661_v5 = vpop.f32.mrb[11].mxu1  ;;  %5678 = vmatprep.mubr.msk.f32.mxu1 %vm951_vm5, %v1626_v4  ;;  %v6796_v12 = vpack.c.bf16 %v157_v45, %v156_v21  ;;  %v158_v46 = vld [vmem:[%s7212_s0 + $0x10] sm:$0xff] }
 0xd61   :  { %v6802_v16 = vpack.c.bf16 %v159_v13, %v158_v46 }
 0xd62   :  { %v1627_v11 = vsub.f32 %v1625_v10, %v6681_v20  ;;  %6025 = vmatprep.subr.bf16.mxu0 %v6796_v12  ;;  %v1907_v20 = vld [vmem:[%s7213_s17] sm:$0xff] }
 0xd63   :  { %6027 = vmatpush3.bf16.msra.mxu0 %v6796_v12 }
 0xd64   :  { %5679 = vmatmul.mubr.msk.f32.vlgmr.msra.gmra.mrb[12].mxu1 %vm951_vm5, %v1627_v11  ;;  %6029 = vmatprep.subr.bf16.mxu0 %v6802_v16 }
 0xd65   :  { %5705 = vmatpush3.msra.mxu1 %v6733_v51  ;;  %5706 = vmatprep.mubr.msk.f32.mxu1 %vm6388_vm2, %v6387_v26 }
 0xd67   :  { %6031 = vmatpush3.bf16.msra.mxu0 %v6802_v16 }
 0xd68   :  { %5692 = vmatprep.subr.mxu0 %v1907_v20 }
 0xe37   :  { %v5680_v19 = vpop.f32.mrb[12].mxu1 }
 0xe38   :  { %v1719_v23 = vadd.f32 %v5680_v19, %v1483_v0  ;;  %v1709_v24 = vpop.f32.mrb[13].mxu1 }
 0xe39   :  { %v1718_v25 = vadd.f32 %v1709_v24, %v1482_v9 }
 0xe3a   :  { %v1728_v27 = vadd.f32 %v5237_v22, %v1719_v23 }
 0xe3b   :  { %v1727_v28 = vadd.f32 %v5237_v22, %v1718_v25 }
 0xe3c   :  { %v1730_v31 = vmax.f32 %v1728_v27, 0.0 }
 0xe3d   :  { %v1729_v30 = vmax.f32 %v1727_v28, 0.0 }
 0xe3f   :  { %5689 = vmatprep.mubr.msk.f32.mxu0 %vm1737_vm9, %v1729_v30 }
 0xe40   :  { %5690 = vmatmul.mubr.msk.f32.vlgmr.msra.gmra.mrb[18].mxu0 %vm1737_vm9, %v1730_v31 }
 0xe41   :  { %5694 = vmatprep.mubr.msk.f32.mxu0 %vm228_vm1, %v1904_v33  ;;  %5693 = vmatpush3.msra.mxu0 %v1907_v20 }
 0xe42   :  { %6034 = vmatprep.subr.msk.bf16.mxu0 %vm6826_vm12, %v6032_v57 }
 0xe44   :  { %5695 = vmatmul.mubr.msk.f32.vlgmr.msra.gmra.mrb[20].mxu0 %vm228_vm1, %v1906_v34 }
 0xe45   :  { %5701 = vmatprep.mubr.msk.f32.mxu0 %vm1837_vm8, %v6733_v51  ;;  %6037 = vmatpush3.bf16.msk.msra.mxu0 %vm6826_vm12, %v6032_v57 }
 0xe46   :  { %5709 = vmatprep.subr.mxu0 %v6387_v26 }
 0xe48   :  { %5702 = vmatmul.mubr.msk.f32.vlgmr.msra.gmra.mrb[22].mxu0 %vm1837_vm8, %v6728_v48 }
 0xe49   :  { %5710 = vmatpush3.msra.mxu0 %v6728_v48  ;;  %5711 = vmatprep.mubr.msk.f32.mxu0 %vm6388_vm2, %v6387_v26 }
 0xe4a   :  { %5721 = vmatprep.subr.mxu0 %v6387_v26 }
 0xf13   :  { %v6816_v35 = vpop.f32.mrb[18].mxu0 }
 0xf14   :  { %v6818_v36 = vpop.f32.mrb[19].mxu0 }
 0xf17   :  { %v5696_v37 = vpop.f32.mrb[20].mxu0 }
 0xf18   :  { %v1980_v38 = vpop.f32.mrb[21].mxu0  ;;  %v1992_v39 = vsel %vm228_vm1, %v5696_v37, -inf }
 0xf19   :  { %1993 = vmax.xlane.f32.xlu1 %v1992_v39  ;;  %v1989_v40 = vsel %vm228_vm1, %v1980_v38, -inf }
 0xf1a   :  { %1990 = vmax.xlane.f32.xlu0 %v1989_v40 }
 0xf1b   :  { %v6849_v27 = vpop.f32.mrb[22].mxu0 }
 0xf1c   :  { %v6851_v28 = vpop.f32.mrb[23].mxu0 }
 0xfa6   :  { %v1994_v41 = vpop.xlane.xlu1 %1993 }
 0xfa7   :  { %v1996_v42 = vsub.f32 %v5696_v37, %v1994_v41  ;;  %v1991_v43 = vpop.xlane.xlu0 %1990  ;;  %v5257_v41 = vld [vmem:[%s7215_s25 + $0x20] sm:$0xff] }
 0xfa8   :  { %v1995_v44 = vsub.f32 %v1980_v38, %v1991_v43 }
 0xfa9   :  { %v1999_v47 = vmul.f32 1.442695, %v1996_v42  ;;  %v5258_v42 = vld [vmem:[%s7215_s25 + $0x28] sm:$0xf] }
 0xfaa   :  { %v1997_v49 = vmul.f32 1.442695, %v1995_v44  ;;  %v6044_v43 = vpack.c.bf16 %v5258_v42, %v5257_v41  ;;  %v2822_v44 = vld [vmem:[%s7218_s29] sm:$0xff] }
 0xfab   :  { %6253 = vpow2.f32 %v1999_v47  ;;  %v2823_v47 = vld [vmem:[%s7218_s29 + $0x8] sm:$0xff] }
 0xfac   :  { %6255 = vpow2.f32 %v1997_v49  ;;  %v6050_v49 = vpack.c.bf16 %v2823_v47, %v2822_v44 }
 0xfb5   :  { %v6254_v50 = vpop.eup %6253 }
 0xfb6   :  { %v6256_v52 = vpop.eup %6255  ;;  %v2004_v53 = vsel %vm228_vm1, %v6254_v50, 0.0 }
 0xfb7   :  { %2005 = vadd.xlane.f32.xlu1 %v2004_v53  ;;  %v2001_v54 = vsel %vm228_vm1, %v6256_v52, 0.0 }
 0xfb8   :  { %2002 = vadd.xlane.f32.xlu0 %v2001_v54 }
0x1044   :  { %v2006_v59 = vpop.xlane.xlu1 %2005 }
0x1045   :  { %6257 = vrcp.f32 %v2006_v59  ;;  %v2003_v60 = vpop.xlane.xlu0 %2002 }
0x1046   :  { %6259 = vrcp.f32 %v2003_v60  ;;  %v2824_v60 = vld [vmem:[%s7218_s29 + $0x10] sm:$0xff] }
0x104f   :  { %v6258_v61 = vpop.eup %6257 }
0x1050   :  { %v6260_v62 = vpop.eup %6259  ;;  %v2010_v63 = vmul.f32 %v6258_v61, %v6254_v50  ;;  %v2825_v61 = vld [vmem:[%s7218_s29 + $0x18] sm:$0xff] }
0x1051   :  { %v2008_v1 = vmul.f32 %v6260_v62, %v6256_v52 }
0x1052   :  { %v2012_v2 = vmul.f32 %v2010_v63, %v6630_v3 }
0x1053   :  { %v2011_v4 = vmul.f32 %v2008_v1, %v6630_v3  ;;  %v5250_v3 = vld [vmem:[%s7215_s25 + $0x10] sm:$0xff] }
0x1054   :  { %v2020_v6 = vsel %vm228_vm1, %v2012_v2, 0.0  ;;  %v6038_v19 = vpack.c.bf16 %v5251_v18, %v5250_v3 }
0x1055   :  { %v2021_v0 = vrot.slane %v2020_v6, 4  ;;  %v2013_v7 = vsel %vm228_vm1, %v2011_v4, 0.0 }
0x1056   :  { %v2014_v8 = vrot.slane %v2013_v7, 4  ;;  %6040 = vmatprep.subr.msk.bf16.mxu1 %vm6826_vm12, %v6038_v19 }
0x1057   :  { %v2022_v9 = vadd.f32 %v2021_v0, %v2020_v6  ;;  %v2828_v0 = vld [vmem:[%s7218_s29 + $0x30] sm:$0xff] }
0x1058   :  { %v2015_v10 = vadd.f32 %v2014_v8, %v2013_v7  ;;  %v2829_v7 = vld [vmem:[%s7218_s29 + $0x38] sm:$0xff] }
0x1059   :  { %v2023_v5 = vrot.slane %v2022_v9, 2  ;;  %v6062_v8 = vpack.c.bf16 %v2829_v7, %v2828_v0 }
0x105a   :  { %v2016_v11 = vrot.slane %v2015_v10, 2 }
0x105b   :  { %v2024_v21 = vadd.f32 %v2023_v5, %v2022_v9  ;;  %v5262_v9 = vld [vmem:[%s7219_s3] ss:$0 sm:$0xff] }
0x105c   :  { %v2017_v45 = vadd.f32 %v2016_v11, %v2015_v10 }
0x105d   :  { %v2025_v46 = vrot.slane %v2024_v21, 1 }
0x105e   :  { %v2018_v13 = vrot.slane %v2017_v45, 1 }
0x105f   :  { %v2026_v20 = vadd.f32 %v2025_v46, %v2024_v21  ;;  %v5263_v46 = vld [vmem:[%s7220_s8] ss:$0 sm:$0xff] }
0x1060   :  { %v2019_v17 = vadd.f32 %v2018_v13, %v2017_v45 }
0x1061   :  { %6261 = vrsqrt.f32 %v2026_v20  ;;  %vm2028_vm13 = vcmp.gt.f32.partialorder %v2026_v20, 0.0 }
0x1062   :  { %6263 = vrsqrt.f32 %v2019_v17  ;;  %vm2027_vm14 = vcmp.gt.f32.partialorder %v2019_v17, 0.0  ;;  %v5264_v17 = vld [vmem:[%s7220_s8 + $0x1] ss:$0 sm:$0xff] }
0x106b   :  { %v6262_v22 = vpop.eup %6261 }
0x106c   :  { %v6264_v23 = vpop.eup %6263  ;;  %v2032_v24 = vsel %vm2028_vm13, %v6262_v22, 0.0 }
0x106d   :  { %2037 = vbcast.lane.b32.xlu1 %v2032_v24, 256  ;;  %v2031_v25 = vsel %vm2027_vm14, %v6264_v23, 0.0 }
0x106e   :  { %2034 = vbcast.lane.b32.xlu0 %v2031_v25, 256 }
0x10df   :  { %v2038_v29 = vpop.permute.xlu1 %2037 }
0x10e0   :  { %v2040_v30 = vmul.f32 %v2038_v29, %v2012_v2  ;;  %v2035_v31 = vpop.permute.xlu0 %2034  ;;  %v6054_v2 = vpack.c.bf16 %v2825_v61, %v2824_v60 }
0x10e1   :  { %v2039_v32 = vmul.f32 %v2035_v31, %v2011_v4  ;;  %v2826_v4 = vld [vmem:[%s7218_s29 + $0x20] sm:$0xff] }
0x10e2   :  { %v2042_v33 = vmul.f32 %v2040_v30, %v2032_v24 }
0x10e3   :  { %v2041_v34 = vmul.f32 %v2039_v32, %v2031_v25 }
0x10e4   :  { %5712 = vmatmul.mubr.msk.f32.vlgmr.msra.gmra.mrb[24].mxu0 %vm228_vm1, %v2042_v33 }
0x10e5   :  { %5707 = vmatmul.mubr.msk.f32.vlgmr.msra.gmra.mrb[14].mxu1 %vm228_vm1, %v2041_v34  ;;  %5723 = vmatprep.mubr.msk.f32.mxu0 %vm6388_vm2, %v6387_v26 }
0x10e6   :  { %6043 = vmatpush3.bf16.msk.msra.mxu1 %vm6826_vm12, %v6038_v19 }
0x10e7   :  { %5726 = vmatprep.subr.mxu1 %v6387_v26 }
0x11b7   :  { %v2272_v37 = vpop.f32.mrb[24].mxu0 }
0x11b8   :  { %v2199_v38 = vpop.f32.mrb[14].mxu1  ;;  %v5713_v39 = vpop.f32.mrb[25].mxu0 }
0x11b9   :  { %v5708_v40 = vpop.f32.mrb[15].mxu1  ;;  %5718 = vmatprep.mubr.msk.f32.mxu1 %vm1837_vm8, %v2199_v38  ;;  %5722 = vmatpush3.msra.mxu0 %v2199_v38 }
0x11ba   :  { %5719 = vmatmul.mubr.msk.f32.vlgmr.msra.gmra.mrb[16].mxu1 %vm1837_vm8, %v2272_v37  ;;  %5724 = vmatmul.mubr.msk.f32.vlgmr.msra.gmra.mrb[26].mxu0 %vm228_vm1, %v2041_v34 }
0x11bb   :  { %5727 = vmatpush3.msra.mxu1 %v2272_v37  ;;  %5728 = vmatprep.mubr.msk.f32.mxu1 %vm6388_vm2, %v6387_v26 }
0x11bc   :  { %6046 = vmatprep.subr.msk.bf16.mxu0 %vm6826_vm12, %v6044_v43 }
0x11bd   :  { %6049 = vmatpush3.bf16.msk.msra.mxu0 %vm6826_vm12, %v6044_v43 }
0x11be   :  { %5729 = vmatmul.mubr.msk.f32.vlgmr.msra.gmra.mrb[18].mxu1 %vm228_vm1, %v2042_v33  ;;  %6051 = vmatprep.subr.bf16.mxu0 %v6050_v49  ;;  %v2661_v33 = vld [vmem:[%s7221_s14] sm:$0xff] }
0x128d   :  { %v5720_v50 = vpop.f32.mrb[16].mxu1  ;;  %v2431_v52 = vpop.f32.mrb[26].mxu0 }
0x128e   :  { %v2364_v53 = vsub.f32 %v6849_v27, %v5720_v50  ;;  %v2505_v54 = vmul.f32 2.0, %v2431_v52  ;;  %v2354_v55 = vpop.f32.mrb[17].mxu1  ;;  %v5725_v56 = vpop.f32.mrb[27].mxu0 }
0x128f   :  { %v2363_v57 = vsub.f32 %v6851_v28, %v2354_v55 }
0x1290   :  { %v2507_v59 = vsub.f32 %v2505_v54, %v6733_v51  ;;  %v2827_v51 = vld [vmem:[%s7218_s29 + $0x28] sm:$0xff] }
0x1291   :  { %v2501_v58 = vpop.f32.mrb[18].mxu1  ;;  %v6058_v6 = vpack.c.bf16 %v2827_v51, %v2826_v4 }
0x1292   :  { %v2506_v62 = vmul.f32 2.0, %v2501_v58  ;;  %v5730_v63 = vpop.f32.mrb[19].mxu1  ;;  %5735 = vmatprep.mubr.msk.f32.mxu0 %vm1837_vm8, %v2507_v59  ;;  %v2686_v58 = vld [vmem:[%s7222_s19] sm:$0xff] }
0x1293   :  { %5738 = vmatprep.subr.mxu1 %v2686_v58 }
0x1294   :  { %v2508_v1 = vsub.f32 %v2506_v62, %v6728_v48  ;;  %5739 = vmatpush3.msra.mxu1 %v2686_v58 }
0x1295   :  { %5762 = vmatprep.subr.mxu1 %v6387_v26 }
0x1296   :  { %5736 = vmatmul.mubr.msk.f32.vlgmr.msra.gmra.mrb[28].mxu0 %vm1837_vm8, %v2508_v1 }
0x1297   :  { %6053 = vmatpush3.bf16.msra.mxu0 %v6050_v49 }
0x1298   :  { %6055 = vmatprep.subr.bf16.mxu0 %v6054_v2 }
0x129b   :  { %6057 = vmatpush3.bf16.msra.mxu0 %v6054_v2 }
0x129c   :  { %6059 = vmatprep.subr.bf16.mxu0 %v6058_v6 }
0x129f   :  { %6061 = vmatpush3.bf16.msra.mxu0 %v6058_v6 }
0x12a0   :  { %6063 = vmatprep.subr.bf16.mxu0 %v6062_v8 }
0x12a3   :  { %6065 = vmatpush3.bf16.msra.mxu0 %v6062_v8 }
0x12a4   :  { %5791 = vmatprep.subr.mxu0 %v6387_v26 }
0x1369   :  { %v5737_v48 = vpop.f32.mrb[28].mxu0 }
0x136a   :  { %v2597_v10 = vadd.f32 %v5737_v48, %v2364_v53  ;;  %v2587_v5 = vpop.f32.mrb[29].mxu0 }
0x136b   :  { %v2596_v11 = vadd.f32 %v2587_v5, %v2363_v57 }
0x136c   :  { %v2606_v21 = vadd.f32 %v5262_v9, %v2597_v10 }
0x136d   :  { %v2605_v45 = vadd.f32 %v5262_v9, %v2596_v11 }
0x136e   :  { %v6889_v13 = vmax.f32 %v2606_v21, 0.0 }
0x136f   :  { %v6891_v20 = vmax.f32 %v2605_v45, 0.0 }
0x1370   :  { %v2616_v3 = vmul.f32 %v5263_v46, %v6889_v13  ;;  %v2628_v24 = vmul.f32 %v5264_v17, %v6889_v13 }
0x1371   :  { %5759 = vmatprep.mubr.msk.f32.mxu0 %vm951_vm5, %v6891_v20  ;;  %v2615_v18 = vmul.f32 %v5263_v46, %v6891_v20  ;;  %v2627_v22 = vmul.f32 %v5264_v17, %v6891_v20 }
0x1372   :  { %5760 = vmatmul.mubr.msk.f32.vlgmr.msra.gmra.mrb[30].mxu0 %vm951_vm5, %v6889_v13  ;;  %v2620_v19 = vsel %vm951_vm5, %v2616_v3, 0.0  ;;  %v2632_v27 = vsel %vm951_vm5, %v2628_v24, 0.0  ;;  %v6932_v24 = vld [vmem:[%s6401_s5] sm:$0xff]  ;;  %s7225_s5 = sld [smem:[#allocation19_spill]] }
0x1373   :  { %2621 = vadd.xlane.f32.xlu0 %v2620_v19  ;;  %v2617_v23 = vsel %vm951_vm5, %v2615_v18, 0.0  ;;  %5793 = vmatprep.mubr.msk.f32.mxu0 %vm6388_vm2, %v6387_v26  ;;  %v2629_v25 = vsel %vm951_vm5, %v2627_v22, 0.0 }
0x1374   :  { %2618 = vadd.xlane.f32.xlu1 %v2617_v23 }
0x1377   :  { %2630 = vadd.xlane.f32.xlu0 %v2629_v25 }
0x1378   :  { %2633 = vadd.xlane.f32.xlu1 %v2632_v27 }
0x1400   :  { %v2622_v28 = vpop.xlane.xlu0 %2621 }
0x1401   :  { %v2619_v29 = vpop.xlane.xlu1 %2618  ;;  %v2644_v31 = vrot.slane %v2622_v28, %v6607_v15 }
0x1402   :  { %v2640_v30 = vrot.slane %v2619_v29, %v6607_v15 }
0x1404   :  { %v2631_v32 = vpop.xlane.xlu0 %2630 }
0x1405   :  { %v2659_v34 = vmul.f32 %v2640_v30, %v2631_v32  ;;  %v2634_v37 = vpop.xlane.xlu1 %2633 }
0x1406   :  { %v2660_v38 = vmul.f32 %v2644_v31, %v2634_v37 }
0x1407   :  { %v2662_v39 = vadd.f32 %v2661_v33, %v2659_v34 }
0x1408   :  { %v2663_v40 = vadd.f32 %v2661_v33, %v2660_v38 }
0x1409   :  { %v2664_v41 = vsel %vm228_vm1, %v2662_v39, -inf }
0x140a   :  { %2665 = vmax.xlane.f32.xlu0 %v2664_v41  ;;  %v2667_v42 = vsel %vm228_vm1, %v2663_v40, -inf }
0x140b   :  { %2668 = vmax.xlane.f32.xlu1 %v2667_v42 }
0x1445   :  { %v6913_v43 = vpop.f32.mrb[30].mxu0 }
0x1446   :  { %v6915_v44 = vpop.f32.mrb[31].mxu0 }
0x1497   :  { %v2666_v47 = vpop.xlane.xlu0 %2665 }
0x1498   :  { %v2670_v49 = vsub.f32 %v2662_v39, %v2666_v47  ;;  %v2669_v50 = vpop.xlane.xlu1 %2668 }
0x1499   :  { %v2671_v52 = vsub.f32 %v2663_v40, %v2669_v50 }
0x149a   :  { %v2672_v53 = vmul.f32 1.442695, %v2670_v49 }
0x149b   :  { %v2674_v54 = vmul.f32 1.442695, %v2671_v52 }
0x149c   :  { %6265 = vpow2.f32 %v2672_v53 }
0x149d   :  { %6267 = vpow2.f32 %v2674_v54  ;;  %v6939_v54 = vld [vmem:[%s7223_s24 + $0x8] sm:$0xff] }
0x14a6   :  { %v6266_v55 = vpop.eup %6265 }
0x14a7   :  { %v6268_v56 = vpop.eup %6267  ;;  %v2676_v57 = vsel %vm228_vm1, %v6266_v55, 0.0 }
0x14a8   :  { %2677 = vadd.xlane.f32.xlu0 %v2676_v57  ;;  %v2679_v59 = vsel %vm228_vm1, %v6268_v56, 0.0  ;;  %v6944_v57 = vld [vmem:[%s7223_s24] sm:$0xff] }
0x14a9   :  { %2680 = vadd.xlane.f32.xlu1 %v2679_v59  ;;  %v5297_v59 = vld [vmem:[%s7224_s30 + $0x1] ss:$0 sm:$0xff] }
0x1535   :  { %v2678_v60 = vpop.xlane.xlu0 %2677 }
0x1536   :  { %6269 = vrcp.f32 %v2678_v60  ;;  %v2681_v61 = vpop.xlane.xlu1 %2680 }
0x1537   :  { %6271 = vrcp.f32 %v2681_v61  ;;  %v3507_v61 = vmul.f32 %v5297_v59, %v6944_v57 }
0x1540   :  { %v6270_v62 = vpop.eup %6269 }
0x1541   :  { %v6272_v63 = vpop.eup %6271  ;;  %v2683_v1 = vmul.f32 %v6270_v62, %v6266_v55  ;;  %v5296_v55 = vld [vmem:[%s7224_s30] ss:$0 sm:$0xff] }
0x1542   :  { %v2685_v2 = vmul.f32 %v6272_v63, %v6268_v56  ;;  %v3496_v56 = vmul.f32 %v5296_v55, %v6939_v54  ;;  %v3495_v60 = vmul.f32 %v5296_v55, %v6944_v57  ;;  %v3509_v63 = vsel %vm228_vm1, %v3507_v61, 0.0  ;;  %v5283_v61 = vld [vmem:[%s7218_s29 + $0x80] sm:$0xff] }
0x1543   :  { %5740 = vmatprep.mubr.msk.f32.mxu1 %vm228_vm1, %v2683_v1  ;;  %v3508_v1 = vmul.f32 %v5297_v59, %v6939_v54 }
0x1544   :  { %5741 = vmatmul.mubr.msk.f32.vlgmr.msra.gmra.mrb[20].mxu1 %vm228_vm1, %v2685_v2  ;;  %v3500_v58 = vsel %vm228_vm1, %v3496_v56, 0.0  ;;  %v3497_v62 = vsel %vm228_vm1, %v3495_v60, 0.0 }
0x1545   :  { %5763 = vmatpush3.msra.mxu1 %v6891_v20  ;;  %5764 = vmatprep.mubr.msk.f32.mxu1 %vm6388_vm2, %v6387_v26  ;;  %v3512_v2 = vsel %vm228_vm1, %v3508_v1, 0.0 }
0x1546   :  { %5767 = vmatprep.subr.mxu1 %v6387_v26 }
0x1617   :  { %v5742_v4 = vpop.f32.mrb[20].mxu1 }
0x1618   :  { %v2759_v51 = vpop.f32.mrb[21].mxu1  ;;  %v2771_v6 = vsel %vm228_vm1, %v5742_v4, -inf }
0x1619   :  { %2772 = vmax.xlane.f32.xlu1 %v2771_v6  ;;  %v2768_v0 = vsel %vm228_vm1, %v2759_v51, -inf  ;;  %v5271_v6 = vld [vmem:[%s7218_s29 + $0x40] sm:$0xff] }
0x161a   :  { %2769 = vmax.xlane.f32.xlu0 %v2768_v0  ;;  %v5272_v0 = vld [vmem:[%s7218_s29 + $0x48] sm:$0xff] }
0x16a6   :  { %v2773_v7 = vpop.xlane.xlu1 %2772 }
0x16a7   :  { %v2775_v8 = vsub.f32 %v5742_v4, %v2773_v7  ;;  %v2770_v48 = vpop.xlane.xlu0 %2769 }
0x16a8   :  { %v2774_v9 = vsub.f32 %v2759_v51, %v2770_v48 }
0x16a9   :  { %v2778_v10 = vmul.f32 1.442695, %v2775_v8 }
0x16aa   :  { %v2776_v5 = vmul.f32 1.442695, %v2774_v9  ;;  %v6066_v9 = vpack.c.bf16 %v5272_v0, %v5271_v6  ;;  %v5288_v6 = vld [vmem:[%s7218_s29 + $0xa8] sm:$0xff] }
0x16ab   :  { %6273 = vpow2.f32 %v2778_v10  ;;  %v5273_v10 = vld [vmem:[%s7218_s29 + $0x50] sm:$0xff] }
0x16ac   :  { %6275 = vpow2.f32 %v2776_v5  ;;  %v5274_v5 = vld [vmem:[%s7218_s29 + $0x58] sm:$0xff] }
0x16b5   :  { %v6274_v11 = vpop.eup %6273 }
0x16b6   :  { %v6276_v21 = vpop.eup %6275  ;;  %v2783_v45 = vsel %vm228_vm1, %v6274_v11, 0.0 }
0x16b7   :  { %2784 = vadd.xlane.f32.xlu1 %v2783_v45  ;;  %v2780_v46 = vsel %vm228_vm1, %v6276_v21, 0.0 }
0x16b8   :  { %2781 = vadd.xlane.f32.xlu0 %v2780_v46 }
0x1744   :  { %v2785_v17 = vpop.xlane.xlu1 %2784 }
0x1745   :  { %6277 = vrcp.f32 %v2785_v17  ;;  %v2782_v3 = vpop.xlane.xlu0 %2781 }
0x1746   :  { %6279 = vrcp.f32 %v2782_v3 }
0x174f   :  { %v6278_v18 = vpop.eup %6277 }
0x1750   :  { %v6280_v19 = vpop.eup %6279  ;;  %v2789_v22 = vmul.f32 %v6278_v18, %v6274_v11 }
0x1751   :  { %v2787_v23 = vmul.f32 %v6280_v19, %v6276_v21  ;;  %v6070_v21 = vpack.c.bf16 %v5274_v5, %v5273_v10  ;;  %v3541_v19 = vld [vmem:[%s7225_s5] sm:$0xff] }
0x1752   :  { %v2791_v25 = vmul.f32 %v6932_v24, %v2789_v22 }
0x1753   :  { %v2790_v27 = vmul.f32 %v6932_v24, %v2787_v23 }
0x1754   :  { %v2799_v28 = vsel %vm228_vm1, %v2791_v25, 0.0 }
0x1755   :  { %v2800_v29 = vrot.slane %v2799_v28, 4  ;;  %v2792_v30 = vsel %vm228_vm1, %v2790_v27, 0.0 }
0x1756   :  { %v2793_v31 = vrot.slane %v2792_v30, 4 }
0x1757   :  { %v2801_v32 = vadd.f32 %v2800_v29, %v2799_v28 }
0x1758   :  { %v2794_v33 = vadd.f32 %v2793_v31, %v2792_v30  ;;  %v5275_v31 = vld [vmem:[%s7218_s29 + $0x60] sm:$0xff] }
0x1759   :  { %v2802_v34 = vrot.slane %v2801_v32, 2 }
0x175a   :  { %v2795_v37 = vrot.slane %v2794_v33, 2 }
0x175b   :  { %v2803_v38 = vadd.f32 %v2802_v34, %v2801_v32  ;;  %v5276_v32 = vld [vmem:[%s7218_s29 + $0x68] sm:$0xff]  ;;  %v5277_v34 = vld [vmem:[%s7218_s29 + $0x70] sm:$0xff] }
0x175c   :  { %v2796_v39 = vadd.f32 %v2795_v37, %v2794_v33  ;;  %v6074_v33 = vpack.c.bf16 %v5276_v32, %v5275_v31  ;;  %v5278_v37 = vld [vmem:[%s7218_s29 + $0x78] sm:$0xff] }
0x175d   :  { %v2804_v40 = vrot.slane %v2803_v38, 1 }
0x175e   :  { %v2797_v41 = vrot.slane %v2796_v39, 1 }
0x175f   :  { %v2805_v42 = vadd.f32 %v2804_v40, %v2803_v38  ;;  %v6078_v38 = vpack.c.bf16 %v5278_v37, %v5277_v34 }
0x1760   :  { %v2798_v47 = vadd.f32 %v2797_v41, %v2796_v39 }
0x1761   :  { %6281 = vrsqrt.f32 %v2805_v42  ;;  %vm2807_vm15 = vcmp.gt.f32.partialorder %v2805_v42, 0.0 }
0x1762   :  { %6283 = vrsqrt.f32 %v2798_v47  ;;  %vm2806_vm0 = vcmp.gt.f32.partialorder %v2798_v47, 0.0 }
0x176b   :  { %v6282_v49 = vpop.eup %6281 }
0x176c   :  { %v6284_v50 = vpop.eup %6283  ;;  %v2811_v52 = vsel %vm2807_vm15, %v6282_v49, 0.0 }
0x176d   :  { %2816 = vbcast.lane.b32.xlu1 %v2811_v52, 256  ;;  %v2810_v53 = vsel %vm2806_vm0, %v6284_v50, 0.0 }
0x176e   :  { %2813 = vbcast.lane.b32.xlu0 %v2810_v53, 256 }
0x178d   :  { %3501 = vadd.xlane.f32.xlu0 %v3500_v58 }
0x1791   :  { %3498 = vadd.xlane.f32.xlu1 %v3497_v62  ;;  %3510 = vadd.xlane.f32.xlu0 %v3509_v63  ;;  %v5284_v62 = vld [vmem:[%s7218_s29 + $0x88] sm:$0xff]  ;;  %v5285_v63 = vld [vmem:[%s7218_s29 + $0x90] sm:$0xff] }
0x1792   :  { %v6082_v1 = vpack.c.bf16 %v5284_v62, %v5283_v61 }
0x1795   :  { %3513 = vadd.xlane.f32.xlu1 %v3512_v2  ;;  %v5286_v2 = vld [vmem:[%s7218_s29 + $0x98] sm:$0xff] }
0x17df   :  { %v2817_v4 = vpop.permute.xlu1 %2816 }
0x17e0   :  { %v2814_v51 = vpop.permute.xlu0 %2813  ;;  %v2819_v8 = vmul.f32 %v2817_v4, %v2791_v25  ;;  %v6086_v4 = vpack.c.bf16 %v5286_v2, %v5285_v63 }
0x17e1   :  { %v2818_v7 = vmul.f32 %v2814_v51, %v2790_v27  ;;  %v5287_v51 = vld [vmem:[%s7218_s29 + $0xa0] sm:$0xff] }
0x17e2   :  { %v2821_v11 = vmul.f32 %v2819_v8, %v2811_v52  ;;  %v6090_v0 = vpack.c.bf16 %v5288_v6, %v5287_v51  ;;  %v5290_v8 = vld [vmem:[%s7218_s29 + $0xb8] sm:$0xff] }
0x17e3   :  { %v2820_v48 = vmul.f32 %v2818_v7, %v2810_v53  ;;  %v5289_v7 = vld [vmem:[%s7218_s29 + $0xb0] sm:$0xff] }
0x17e5   :  { %5765 = vmatmul.mubr.msk.f32.vlgmr.msra.gmra.mrb[22].mxu1 %vm228_vm1, %v2820_v48 }
0x17e6   :  { %5768 = vmatpush3.msra.mxu1 %v6889_v13  ;;  %5769 = vmatprep.mubr.msk.f32.mxu1 %vm6388_vm2, %v6387_v26 }
0x17e7   :  { %6067 = vmatprep.subr.bf16.mxu1 %v6066_v9 }
0x17e9   :  { %5770 = vmatmul.mubr.msk.f32.vlgmr.msra.gmra.mrb[24].mxu1 %vm228_vm1, %v2821_v11 }
0x17ea   :  { %6069 = vmatpush3.bf16.msra.mxu1 %v6066_v9 }
0x17eb   :  { %6071 = vmatprep.subr.bf16.mxu1 %v6070_v21 }
0x17ee   :  { %6073 = vmatpush3.bf16.msra.mxu1 %v6070_v21 }
0x17ef   :  { %6075 = vmatprep.subr.bf16.mxu1 %v6074_v33 }
0x17f2   :  { %6077 = vmatpush3.bf16.msra.mxu1 %v6074_v33 }
0x17f3   :  { %6079 = vmatprep.subr.bf16.mxu1 %v6078_v38 }
0x17f6   :  { %6081 = vmatpush3.bf16.msra.mxu1 %v6078_v38 }
0x17f7   :  { %6099 = vmatprep.subr.bf16.mxu1 %v6796_v12 }
0x181a   :  { %v3502_v45 = vpop.xlane.xlu0 %3501 }
0x181b   :  { %v3524_v3 = vrot.slane %v3502_v45, %v6607_v15 }
0x181e   :  { %v3499_v46 = vpop.xlane.xlu1 %3498  ;;  %v3511_v17 = vpop.xlane.xlu0 %3510 }
0x181f   :  { %v3520_v18 = vrot.slane %v3499_v46, %v6607_v15 }
0x1821   :  { %v3539_v22 = vmul.f32 %v3520_v18, %v3511_v17 }
0x1822   :  { %v3514_v23 = vpop.xlane.xlu1 %3513 }
0x1823   :  { %v3540_v25 = vmul.f32 %v3524_v3, %v3514_v23  ;;  %v3542_v27 = vadd.f32 %v3541_v19, %v3539_v22 }
0x1825   :  { %v3544_v28 = vsel %vm228_vm1, %v3542_v27, -inf  ;;  %v3543_v29 = vadd.f32 %v3541_v19, %v3540_v25  ;;  %v5293_v25 = vld [vmem:[%s7227_s20] ss:$0 sm:$0xff] }
0x1826   :  { %3545 = vmax.xlane.f32.xlu0 %v3544_v28 }
0x1827   :  { %v3547_v30 = vsel %vm228_vm1, %v3543_v29, -inf }
0x1828   :  { %3548 = vmax.xlane.f32.xlu1 %v3547_v30 }
0x18b3   :  { %v3546_v39 = vpop.xlane.xlu0 %3545 }
0x18b4   :  { %v3550_v40 = vsub.f32 %v3542_v27, %v3546_v39  ;;  %v7016_v39 = vld [vmem:[%s7228_s4] ss:$0 sm:$0xff] }
0x18b5   :  { %v3549_v41 = vpop.xlane.xlu1 %3548 }
0x18b6   :  { %v3552_v42 = vmul.f32 1.442695, %v3550_v40  ;;  %v3551_v47 = vsub.f32 %v3543_v29, %v3549_v41  ;;  %v1816_v40 = vadd.f32 %v6816_v35, %v7016_v39  ;;  %v1823_v41 = vsub.s32 0, %v6604_v14 }
0x18b8   :  { %6285 = vpow2.f32 %v3552_v42  ;;  %v3554_v49 = vmul.f32 1.442695, %v3551_v47  ;;  %v2980_v50 = vpop.f32.mrb[22].mxu1  ;;  %v3481_v42 = vsub.s32 1, %v6604_v14  ;;  %v7023_v47 = vld [vmem:[%s7229_s7] sm:$0x7] }
0x18b9   :  { %v5766_v52 = vpop.f32.mrb[23].mxu1  ;;  %5788 = vmatprep.mubr.msk.f32.mxu1 %vm951_vm5, %v2980_v50  ;;  %5792 = vmatpush3.msra.mxu0 %v2980_v50 }
0x18ba   :  { %6287 = vpow2.f32 %v3554_v49  ;;  %5794 = vmatmul.mubr.msk.f32.vlgmr.msra.gmra.mrb[32].mxu0 %vm228_vm1, %v2820_v48  ;;  %5796 = vmatprep.subr.mxu0 %v6387_v26  ;;  %v6094_v48 = vpack.c.bf16 %v5290_v8, %v5289_v7  ;;  %v1811_v49 = vadd.f32 %v7016_v39, %v6818_v36  ;;  %v1820_v52 = vmax.f32 %v1816_v40, 0.0 }
0x18bb   :  { %5798 = vmatprep.mubr.msk.f32.mxu0 %vm6388_vm2, %v6387_v26 }
0x18bc   :  { %v3053_v53 = vpop.f32.mrb[24].mxu1 }
0x18bd   :  { %v5771_v55 = vpop.f32.mrb[25].mxu1  ;;  %5789 = vmatmul.mubr.msk.f32.vlgmr.msra.gmra.mrb[26].mxu1 %vm951_vm5, %v3053_v53  ;;  %5797 = vmatpush3.msra.mxu0 %v3053_v53  ;;  %v1824_v53 = vrot.slane %v7023_v47, %v1823_v41 }
0x18be   :  { %5799 = vmatmul.mubr.msk.f32.vlgmr.msra.gmra.mrb[34].mxu0 %vm228_vm1, %v2821_v11  ;;  %6101 = vmatpush3.bf16.msra.mxu1 %v6796_v12 }
0x18bf   :  { %6103 = vmatprep.subr.bf16.mxu1 %v6802_v16  ;;  %6083 = vmatprep.subr.bf16.mxu0 %v6082_v1  ;;  %v1826_v63 = vmul.f32 %v1824_v53, %v1820_v52 }
0x18c0   :  { %6085 = vmatpush3.bf16.msra.mxu0 %v6082_v1 }
0x18c1   :  { %6087 = vmatprep.subr.bf16.mxu0 %v6086_v4 }
0x18c2   :  { %v6286_v56 = vpop.eup %6285  ;;  %6105 = vmatpush3.bf16.msra.mxu1 %v6802_v16 }
0x18c3   :  { %v3556_v59 = vsel %vm228_vm1, %v6286_v56, 0.0 }
0x18c4   :  { %v6984_v58 = vpop.eup %6287  ;;  %3557 = vadd.xlane.f32.xlu0 %v3556_v59  ;;  %6089 = vmatpush3.bf16.msra.mxu0 %v6086_v4 }
0x18c5   :  { %v3559_v60 = vsel %vm228_vm1, %v6984_v58, 0.0  ;;  %6091 = vmatprep.subr.bf16.mxu0 %v6090_v0 }
0x18c6   :  { %3560 = vadd.xlane.f32.xlu1 %v3559_v60 }
0x18c8   :  { %6093 = vmatpush3.bf16.msra.mxu0 %v6090_v0 }
0x18c9   :  { %6095 = vmatprep.subr.bf16.mxu0 %v6094_v48 }
0x18cc   :  { %6097 = vmatpush3.bf16.msra.mxu0 %v6094_v48 }
0x18cd   :  { %5841 = vmatprep.subr.mxu0 %v6387_v26 }
0x1953   :  { %v3561_v23 = vpop.xlane.xlu1 %3560 }
0x198d   :  { %v3215_v9 = vpop.f32.mrb[32].mxu0 }
0x198e   :  { %v3289_v10 = vmul.f32 2.0, %v3215_v9  ;;  %v5795_v5 = vpop.f32.mrb[33].mxu0 }
0x1990   :  { %v3291_v11 = vsub.f32 %v3289_v10, %v6891_v20  ;;  %v5790_v21 = vpop.f32.mrb[26].mxu1  ;;  %v3566_v20 = vld [vmem:[%s7226_s6] sm:$0xff] }
0x1991   :  { %v3148_v45 = vsub.f32 %v6913_v43, %v5790_v21  ;;  %v3138_v46 = vpop.f32.mrb[27].mxu1  ;;  %v3285_v17 = vpop.f32.mrb[34].mxu0  ;;  %5831 = vmatprep.subr.mxu1 %v3566_v20 }
0x1992   :  { %v3147_v3 = vsub.f32 %v6915_v44, %v3138_v46  ;;  %v3290_v18 = vmul.f32 2.0, %v3285_v17  ;;  %v5800_v19 = vpop.f32.mrb[35].mxu0  ;;  %5817 = vmatprep.mubr.msk.f32.mxu0 %vm951_vm5, %v3291_v11  ;;  %v3558_v43 = vpop.xlane.xlu0 %3557 }
0x1993   :  { %6289 = vrcp.f32 %v3558_v43 }
0x1994   :  { %v3292_v22 = vsub.f32 %v3290_v18, %v6889_v13  ;;  %6291 = vrcp.f32 %v3561_v23 }
0x1996   :  { %5818 = vmatmul.mubr.msk.f32.vlgmr.msra.gmra.mrb[36].mxu0 %vm951_vm5, %v3292_v22 }
0x1997   :  { %5842 = vmatpush3.msra.mxu0 %v6944_v57  ;;  %5843 = vmatprep.mubr.msk.f32.mxu0 %vm6388_vm2, %v6387_v26 }
0x199d   :  { %v6290_v31 = vpop.eup %6289 }
0x199e   :  { %v6292_v34 = vpop.eup %6291  ;;  %v3563_v37 = vmul.f32 %v6290_v31, %v6286_v56  ;;  %v3482_v56 = vrot.slane %v7023_v47, %v3481_v42 }
0x199f   :  { %v3565_v38 = vmul.f32 %v6292_v34, %v6984_v58  ;;  %v1819_v58 = vmax.f32 %v1811_v49, 0.0 }
0x19a1   :  { %v1825_v4 = vmul.f32 %v1824_v53, %v1819_v58 }
0x1a69   :  { %v5819_v44 = vpop.f32.mrb[36].mxu0 }
0x1a6a   :  { %v3384_v27 = vadd.f32 %v5819_v44, %v3148_v45  ;;  %v3374_v28 = vpop.f32.mrb[37].mxu0 }
0x1a6b   :  { %v3383_v29 = vadd.f32 %v3374_v28, %v3147_v3  ;;  %v3702_v3 = vld [vmem:[%s7230_s10] sm:$0xff] }
0x1a6c   :  { %v3393_v13 = vadd.f32 %v5293_v25, %v3384_v27 }
0x1a6d   :  { %v3392_v30 = vadd.f32 %v5293_v25, %v3383_v29 }
0x1a6e   :  { %v3395_v33 = vmax.f32 %v3393_v13, 0.0 }
0x1a6f   :  { %v3394_v32 = vmax.f32 %v3392_v30, 0.0 }
0x1a71   :  { %5828 = vmatprep.mubr.msk.f32.mxu1 %vm1737_vm9, %v3394_v32 }
0x1a72   :  { %5829 = vmatmul.mubr.msk.f32.vlgmr.msra.gmra.mrb[28].mxu1 %vm1737_vm9, %v3395_v33 }
0x1a73   :  { %5833 = vmatprep.mubr.msk.f32.mxu1 %vm228_vm1, %v3563_v37  ;;  %5832 = vmatpush3.msra.mxu1 %v3566_v20 }
0x1a74   :  { %5836 = vmatprep.subr.mxu1 %v3702_v3 }
0x1a76   :  { %5834 = vmatmul.mubr.msk.f32.vlgmr.msra.gmra.mrb[30].mxu1 %vm228_vm1, %v3565_v38 }
0x1a77   :  { %5838 = vmatprep.mubr.msk.f32.mxu1 %vm228_vm1, %v6944_v57  ;;  %5837 = vmatpush3.msra.mxu1 %v3702_v3 }
0x1a78   :  { %5846 = vmatprep.subr.mxu1 %v6387_v26 }
0x1a7a   :  { %5839 = vmatmul.mubr.msk.f32.vlgmr.msra.gmra.mrb[32].mxu1 %vm228_vm1, %v6939_v54 }
0x1a7b   :  { %5847 = vmatpush3.msra.mxu1 %v6939_v54  ;;  %5848 = vmatprep.mubr.msk.f32.mxu1 %vm6388_vm2, %v6387_v26 }
0x1a7c   :  { %5856 = vmatprep.subr.mxu1 %v6387_v26 }
0x1b45   :  { %v5830_v50 = vpop.f32.mrb[28].mxu1 }
0x1b46   :  { %v3474_v55 = vadd.f32 %v5830_v50, %v7016_v39  ;;  %v3468_v59 = vpop.f32.mrb[29].mxu1 }
0x1b47   :  { %v3469_v35 = vadd.f32 %v7016_v39, %v3468_v59 }
0x1b48   :  { %v3478_v60 = vmax.f32 %v3474_v55, 0.0 }
0x1b49   :  { %v3477_v61 = vmax.f32 %v3469_v35, 0.0  ;;  %v5835_v62 = vpop.f32.mrb[30].mxu1 }
0x1b4a   :  { %v3484_v1 = vmul.f32 %v3482_v56, %v3478_v60  ;;  %v3639_v2 = vpop.f32.mrb[31].mxu1  ;;  %v3651_v36 = vsel %vm228_vm1, %v5835_v62, -inf }
0x1b4b   :  { %v3483_v51 = vmul.f32 %v3482_v56, %v3477_v61  ;;  %3652 = vmax.xlane.f32.xlu1 %v3651_v36  ;;  %v3648_v6 = vsel %vm228_vm1, %v3639_v2, -inf }
0x1b4c   :  { %v7033_v0 = vadd.f32 %v3484_v1, %v1826_v63  ;;  %3649 = vmax.xlane.f32.xlu0 %v3648_v6  ;;  %v5304_v63 = vld [vmem:[%s7230_s10 + $0x8] sm:$0xff]  ;;  %v4468_v6 = vld [vmem:[%s6576_s13] sm:$0xff] }
0x1b4d   :  { %v7035_v7 = vadd.f32 %v3483_v51, %v1825_v4  ;;  %v7051_v55 = vpop.f32.mrb[32].mxu1  ;;  %5851 = vmatprep.subr.mxu0 %v5304_v63  ;;  %v5309_v51 = vld [vmem:[%s7230_s10 + $0x10] sm:$0xff] }
0x1b4e   :  { %v7053_v56 = vpop.f32.mrb[33].mxu1 }
0x1bd8   :  { %v3653_v8 = vpop.xlane.xlu1 %3652 }
0x1bd9   :  { %v3655_v48 = vsub.f32 %v5835_v62, %v3653_v8  ;;  %v3650_v9 = vpop.xlane.xlu0 %3649  ;;  %v4469_v8 = vld [vmem:[%s6576_s13 + $0x8] sm:$0xff] }
0x1bda   :  { %v3654_v10 = vsub.f32 %v3639_v2, %v3650_v9 }
0x1bdb   :  { %v3658_v5 = vmul.f32 1.442695, %v3655_v48  ;;  %v6106_v48 = vpack.c.bf16 %v4469_v8, %v4468_v6 }
0x1bdc   :  { %v3656_v11 = vmul.f32 1.442695, %v3654_v10 }
0x1bdd   :  { %6293 = vpow2.f32 %v3658_v5 }
0x1bde   :  { %6295 = vpow2.f32 %v3656_v11 }
0x1be7   :  { %v6294_v21 = vpop.eup %6293 }
0x1be8   :  { %v6296_v45 = vpop.eup %6295  ;;  %v3663_v46 = vsel %vm228_vm1, %v6294_v21, 0.0 }
0x1be9   :  { %3664 = vadd.xlane.f32.xlu1 %v3663_v46  ;;  %v3660_v17 = vsel %vm228_vm1, %v6296_v45, 0.0 }
0x1bea   :  { %3661 = vadd.xlane.f32.xlu0 %v3660_v17 }
0x1c76   :  { %v3665_v18 = vpop.xlane.xlu1 %3664 }
0x1c77   :  { %6297 = vrcp.f32 %v3665_v18  ;;  %v3662_v19 = vpop.xlane.xlu0 %3661  ;;  %v4470_v18 = vld [vmem:[%s6576_s13 + $0x10] sm:$0xff] }
0x1c78   :  { %6299 = vrcp.f32 %v3662_v19  ;;  %v4471_v19 = vld [vmem:[%s6576_s13 + $0x18] sm:$0xff] }
0x1c81   :  { %v6298_v22 = vpop.eup %6297 }
0x1c82   :  { %v6300_v20 = vpop.eup %6299  ;;  %v3669_v43 = vmul.f32 %v6298_v22, %v6294_v21 }
0x1c83   :  { %v3667_v23 = vmul.f32 %v6300_v20, %v6296_v45 }
0x1c84   :  { %v3671_v44 = vmul.f32 %v6932_v24, %v3669_v43 }
0x1c85   :  { %v3670_v25 = vmul.f32 %v6932_v24, %v3667_v23  ;;  %v6110_v23 = vpack.c.bf16 %v4471_v19, %v4470_v18 }
0x1c86   :  { %v3679_v27 = vsel %vm228_vm1, %v3671_v44, 0.0 }
0x1c87   :  { %v3680_v28 = vrot.slane %v3679_v27, 4  ;;  %v3672_v29 = vsel %vm228_vm1, %v3670_v25, 0.0 }
0x1c88   :  { %v3673_v13 = vrot.slane %v3672_v29, 4 }
0x1c89   :  { %v3681_v30 = vadd.f32 %v3680_v28, %v3679_v27  ;;  %v4474_v27 = vld [vmem:[%s6576_s13 + $0x30] sm:$0xff]  ;;  %v4475_v28 = vld [vmem:[%s6576_s13 + $0x38] sm:$0xff] }
0x1c8a   :  { %v3674_v31 = vadd.f32 %v3673_v13, %v3672_v29  ;;  %v6118_v29 = vpack.c.bf16 %v4475_v28, %v4474_v27  ;;  %v5312_v13 = vld [vmem:[%s7231_s11] ss:$0 sm:$0xff] }
0x1c8b   :  { %v3682_v32 = vrot.slane %v3681_v30, 2 }
0x1c8c   :  { %v3675_v33 = vrot.slane %v3674_v31, 2 }
0x1c8d   :  { %v3683_v34 = vadd.f32 %v3682_v32, %v3681_v30 }
0x1c8e   :  { %v3676_v37 = vadd.f32 %v3675_v33, %v3674_v31 }
0x1c8f   :  { %v3684_v38 = vrot.slane %v3683_v34, 1 }
0x1c90   :  { %v3677_v40 = vrot.slane %v3676_v37, 1 }
0x1c91   :  { %v3685_v41 = vadd.f32 %v3684_v38, %v3683_v34 }
0x1c92   :  { %v3678_v42 = vadd.f32 %v3677_v40, %v3676_v37  ;;  %v5313_v37 = vld [vmem:[%s6571_s9] ss:$0 sm:$0xff] }
0x1c93   :  { %6301 = vrsqrt.f32 %v3685_v41  ;;  %vm3687_vm3 = vcmp.gt.f32.partialorder %v3685_v41, 0.0  ;;  %v5314_v41 = vld [vmem:[%s6571_s9 + $0x1] ss:$0 sm:$0xff]  ;;  %s7233_s9 = sld [smem:[#allocation23_spill]] }
0x1c94   :  { %6303 = vrsqrt.f32 %v3678_v42  ;;  %vm3686_vm4 = vcmp.gt.f32.partialorder %v3678_v42, 0.0 }
0x1c99   :  { %v4332_v19 = vld [vmem:[%s7233_s9] sm:$0xff] }
0x1c9d   :  { %v6302_v49 = vpop.eup %6301 }
0x1c9e   :  { %v6304_v50 = vpop.eup %6303  ;;  %v3691_v52 = vsel %vm3687_vm3, %v6302_v49, 0.0 }
0x1c9f   :  { %3696 = vbcast.lane.b32.xlu1 %v3691_v52, 256  ;;  %v3690_v53 = vsel %vm3686_vm4, %v6304_v50, 0.0 }
0x1ca0   :  { %3693 = vbcast.lane.b32.xlu0 %v3690_v53, 256 }
0x1d11   :  { %v3697_v59 = vpop.permute.xlu1 %3696 }
0x1d12   :  { %v3699_v58 = vmul.f32 %v3697_v59, %v3671_v44  ;;  %v3694_v35 = vpop.permute.xlu0 %3693  ;;  %v4472_v44 = vld [vmem:[%s6576_s13 + $0x20] sm:$0xff] }
0x1d13   :  { %v3698_v60 = vmul.f32 %v3694_v35, %v3670_v25 }
0x1d14   :  { %v3701_v61 = vmul.f32 %v3699_v58, %v3691_v52 }
0x1d15   :  { %v3700_v62 = vmul.f32 %v3698_v60, %v3690_v53 }
0x1d16   :  { %5849 = vmatmul.mubr.msk.f32.vlgmr.msra.gmra.mrb[34].mxu1 %vm228_vm1, %v3701_v61 }
0x1d17   :  { %5844 = vmatmul.mubr.msk.f32.vlgmr.msra.gmra.mrb[38].mxu0 %vm228_vm1, %v3700_v62  ;;  %5858 = vmatprep.mubr.msk.f32.mxu1 %vm6388_vm2, %v6387_v26 }
0x1d18   :  { %5852 = vmatpush3.msra.mxu0 %v5304_v63  ;;  %v4307_v63 = vld [vmem:[%s7232_s15] sm:$0xff] }
0x1d19   :  { %5861 = vmatprep.subr.mxu0 %v6387_v26 }
0x1de9   :  { %v3926_v1 = vpop.f32.mrb[34].mxu1 }
0x1dea   :  { %v3853_v2 = vpop.f32.mrb[38].mxu0  ;;  %v5850_v36 = vpop.f32.mrb[35].mxu1 }
0x1deb   :  { %v5845_v4 = vpop.f32.mrb[39].mxu0  ;;  %5853 = vmatprep.mubr.msk.f32.mxu0 %vm228_vm1, %v3853_v2  ;;  %5857 = vmatpush3.msra.mxu1 %v3853_v2 }
0x1dec   :  { %5854 = vmatmul.mubr.msk.f32.vlgmr.msra.gmra.mrb[40].mxu0 %vm228_vm1, %v3926_v1  ;;  %5859 = vmatmul.mubr.msk.f32.vlgmr.msra.gmra.mrb[36].mxu1 %vm228_vm1, %v3700_v62 }
0x1ded   :  { %5862 = vmatpush3.msra.mxu0 %v3926_v1  ;;  %5863 = vmatprep.mubr.msk.f32.mxu0 %vm6388_vm2, %v6387_v26 }
0x1dee   :  { %5866 = vmatprep.subr.mxu1 %v5309_v51  ;;  %5871 = vmatprep.subr.mxu0 %v4332_v19 }
0x1def   :  { %5867 = vmatpush3.msra.mxu1 %v5309_v51 }
0x1df0   :  { %5864 = vmatmul.mubr.msk.f32.vlgmr.msra.gmra.mrb[42].mxu0 %vm228_vm1, %v3701_v61  ;;  %6107 = vmatprep.subr.bf16.mxu1 %v6106_v48 }
0x1df1   :  { %5872 = vmatpush3.msra.mxu0 %v4332_v19 }
0x1df2   :  { %5895 = vmatprep.subr.mxu0 %v6387_v26 }
0x1ebf   :  { %v5855_v9 = vpop.f32.mrb[40].mxu0  ;;  %v4081_v10 = vpop.f32.mrb[36].mxu1 }
0x1ec0   :  { %v4014_v5 = vsub.f32 %v7051_v55, %v5855_v9  ;;  %v4155_v11 = vmul.f32 2.0, %v4081_v10  ;;  %v4004_v21 = vpop.f32.mrb[41].mxu0  ;;  %v5860_v45 = vpop.f32.mrb[37].mxu1 }
0x1ec1   :  { %v4013_v46 = vsub.f32 %v7053_v56, %v4004_v21 }
0x1ec2   :  { %v4157_v17 = vsub.f32 %v4155_v11, %v6944_v57  ;;  %v4473_v57 = vld [vmem:[%s6576_s13 + $0x28] sm:$0xff] }
0x1ec3   :  { %v4151_v3 = vpop.f32.mrb[42].mxu0  ;;  %v6114_v25 = vpack.c.bf16 %v4473_v57, %v4472_v44 }
0x1ec4   :  { %v4156_v22 = vmul.f32 2.0, %v4151_v3  ;;  %v5865_v20 = vpop.f32.mrb[43].mxu0  ;;  %5868 = vmatprep.mubr.msk.f32.mxu1 %vm228_vm1, %v4157_v17 }
0x1ec6   :  { %v4158_v43 = vsub.f32 %v4156_v22, %v6939_v54 }
0x1ec8   :  { %5869 = vmatmul.mubr.msk.f32.vlgmr.msra.gmra.mrb[38].mxu1 %vm228_vm1, %v4158_v43 }
0x1ec9   :  { %6109 = vmatpush3.bf16.msra.mxu1 %v6106_v48 }
0x1eca   :  { %6111 = vmatprep.subr.bf16.mxu1 %v6110_v23 }
0x1ecd   :  { %6113 = vmatpush3.bf16.msra.mxu1 %v6110_v23 }
0x1ece   :  { %6115 = vmatprep.subr.bf16.mxu1 %v6114_v25 }
0x1ed1   :  { %6117 = vmatpush3.bf16.msra.mxu1 %v6114_v25 }
0x1ed2   :  { %6119 = vmatprep.subr.bf16.mxu1 %v6118_v29 }
0x1ed5   :  { %6121 = vmatpush3.bf16.msra.mxu1 %v6118_v29 }
0x1ed6   :  { %5924 = vmatprep.subr.mxu1 %v6387_v26 }
0x1f9b   :  { %v5870_v54 = vpop.f32.mrb[38].mxu1 }
0x1f9c   :  { %v4243_v30 = vadd.f32 %v5870_v54, %v4014_v5  ;;  %v4233_v31 = vpop.f32.mrb[39].mxu1 }
0x1f9d   :  { %v4242_v32 = vadd.f32 %v4233_v31, %v4013_v46 }
0x1f9e   :  { %v4252_v33 = vadd.f32 %v5312_v13, %v4243_v30 }
0x1f9f   :  { %v4251_v34 = vadd.f32 %v5312_v13, %v4242_v32 }
0x1fa0   :  { %v7085_v38 = vmax.f32 %v4252_v33, 0.0 }
0x1fa1   :  { %v7087_v40 = vmax.f32 %v4251_v34, 0.0 }
0x1fa2   :  { %v4262_v42 = vmul.f32 %v5313_v37, %v7085_v38  ;;  %v4274_v55 = vmul.f32 %v5314_v41, %v7085_v38 }
0x1fa3   :  { %5892 = vmatprep.mubr.msk.f32.mxu1 %vm951_vm5, %v7087_v40  ;;  %v4261_v49 = vmul.f32 %v5313_v37, %v7087_v40  ;;  %v4273_v52 = vmul.f32 %v5314_v41, %v7087_v40 }
0x1fa4   :  { %5893 = vmatmul.mubr.msk.f32.vlgmr.msra.gmra.mrb[40].mxu1 %vm951_vm5, %v7085_v38  ;;  %v4266_v50 = vsel %vm951_vm5, %v4262_v42, 0.0  ;;  %v4278_v59 = vsel %vm951_vm5, %v4274_v55, 0.0 }
0x1fa5   :  { %4267 = vadd.xlane.f32.xlu0 %v4266_v50  ;;  %v4263_v53 = vsel %vm951_vm5, %v4261_v49, 0.0  ;;  %5926 = vmatprep.mubr.msk.f32.mxu1 %vm6388_vm2, %v6387_v26  ;;  %v4275_v56 = vsel %vm951_vm5, %v4273_v52, 0.0 }
0x1fa6   :  { %4264 = vadd.xlane.f32.xlu1 %v4263_v53 }
0x1fa9   :  { %4276 = vadd.xlane.f32.xlu0 %v4275_v56 }
0x1faa   :  { %4279 = vadd.xlane.f32.xlu1 %v4278_v59 }
0x2032   :  { %v4268_v58 = vpop.xlane.xlu0 %4267 }
0x2033   :  { %v4265_v35 = vpop.xlane.xlu1 %4264  ;;  %v4290_v61 = vrot.slane %v4268_v58, %v6607_v15 }
0x2034   :  { %v4286_v60 = vrot.slane %v4265_v35, %v6607_v15 }
0x2036   :  { %v4277_v62 = vpop.xlane.xlu0 %4276 }
0x2037   :  { %v4305_v1 = vmul.f32 %v4286_v60, %v4277_v62  ;;  %v4280_v2 = vpop.xlane.xlu1 %4279 }
0x2038   :  { %v4306_v36 = vmul.f32 %v4290_v61, %v4280_v2 }
0x2039   :  { %v4308_v4 = vadd.f32 %v4307_v63, %v4305_v1 }
0x203a   :  { %v4309_v51 = vadd.f32 %v4307_v63, %v4306_v36 }
0x203b   :  { %v4310_v6 = vsel %vm228_vm1, %v4308_v4, -inf }
0x203c   :  { %4311 = vmax.xlane.f32.xlu0 %v4310_v6  ;;  %v4313_v8 = vsel %vm228_vm1, %v4309_v51, -inf }
0x203d   :  { %4314 = vmax.xlane.f32.xlu1 %v4313_v8 }
0x2077   :  { %v7109_v48 = vpop.f32.mrb[40].mxu1 }
0x2078   :  { %v7111_v9 = vpop.f32.mrb[41].mxu1 }
0x20c9   :  { %v4312_v10 = vpop.xlane.xlu0 %4311 }
0x20ca   :  { %v4316_v15 = vsub.f32 %v4308_v4, %v4312_v10  ;;  %v4315_v5 = vpop.xlane.xlu1 %4314 }
0x20cb   :  { %v4317_v11 = vsub.f32 %v4309_v51, %v4315_v5 }
0x20cc   :  { %v4318_v21 = vmul.f32 1.442695, %v4316_v15 }
0x20cd   :  { %v4320_v45 = vmul.f32 1.442695, %v4317_v11 }
0x20ce   :  { %6305 = vpow2.f32 %v4318_v21 }
0x20cf   :  { %6307 = vpow2.f32 %v4320_v45 }
0x20d8   :  { %v6306_v46 = vpop.eup %6305 }
0x20d9   :  { %v6308_v17 = vpop.eup %6307  ;;  %v4322_v3 = vsel %vm228_vm1, %v6306_v46, 0.0 }
0x20da   :  { %4323 = vadd.xlane.f32.xlu0 %v4322_v3  ;;  %v4325_v18 = vsel %vm228_vm1, %v6308_v17, 0.0  ;;  %v5322_v3 = vld [vmem:[%s6576_s13 + $0x48] sm:$0xff] }
0x20db   :  { %4326 = vadd.xlane.f32.xlu1 %v4325_v18 }
0x2167   :  { %v4324_v22 = vpop.xlane.xlu0 %4323 }
0x2168   :  { %6309 = vrcp.f32 %v4324_v22  ;;  %v4327_v20 = vpop.xlane.xlu1 %4326 }
0x2169   :  { %6311 = vrcp.f32 %v4327_v20 }
0x2172   :  { %v6310_v43 = vpop.eup %6309 }
0x2173   :  { %v6312_v23 = vpop.eup %6311  ;;  %v4329_v44 = vmul.f32 %v6310_v43, %v6306_v46  ;;  %v5323_v43 = vld [vmem:[%s6576_s13 + $0x50] sm:$0xff] }
0x2174   :  { %v4331_v57 = vmul.f32 %v6312_v23, %v6308_v17  ;;  %v5321_v17 = vld [vmem:[%s6576_s13 + $0x40] sm:$0xff]  ;;  %v5324_v23 = vld [vmem:[%s6576_s13 + $0x58] sm:$0xff] }
0x2175   :  { %5873 = vmatprep.mubr.msk.f32.mxu0 %vm228_vm1, %v4329_v44  ;;  %v6122_v20 = vpack.c.bf16 %v5322_v3, %v5321_v17 }
0x2176   :  { %5874 = vmatmul.mubr.msk.f32.vlgmr.msra.gmra.mrb[44].mxu0 %vm228_vm1, %v4331_v57  ;;  %v6126_v57 = vpack.c.bf16 %v5324_v23, %v5323_v43 }
0x2177   :  { %5896 = vmatpush3.msra.mxu0 %v7087_v40  ;;  %5897 = vmatprep.mubr.msk.f32.mxu0 %vm6388_vm2, %v6387_v26 }
0x2178   :  { %5900 = vmatprep.subr.mxu0 %v6387_v26 }
0x2249   :  { %v5875_v25 = vpop.f32.mrb[44].mxu0 }
0x224a   :  { %v4405_v27 = vpop.f32.mrb[45].mxu0  ;;  %v4417_v28 = vsel %vm228_vm1, %v5875_v25, -inf }
0x224b   :  { %4418 = vmax.xlane.f32.xlu1 %v4417_v28  ;;  %v4414_v29 = vsel %vm228_vm1, %v4405_v27, -inf }
0x224c   :  { %4415 = vmax.xlane.f32.xlu0 %v4414_v29  ;;  %v5327_v29 = vld [vmem:[%s6576_s13 + $0x70] sm:$0xff] }
0x22d8   :  { %v4419_v54 = vpop.xlane.xlu1 %4418 }
0x22d9   :  { %v4421_v13 = vsub.f32 %v5875_v25, %v4419_v54  ;;  %v4416_v30 = vpop.xlane.xlu0 %4415  ;;  %v5325_v25 = vld [vmem:[%s6576_s13 + $0x60] sm:$0xff]  ;;  %v5328_v54 = vld [vmem:[%s6576_s13 + $0x78] sm:$0xff] }
0x22da   :  { %v4420_v31 = vsub.f32 %v4405_v27, %v4416_v30  ;;  %v5326_v27 = vld [vmem:[%s6576_s13 + $0x68] sm:$0xff]  ;;  %v5333_v30 = vld [vmem:[%s6576_s13 + $0x80] sm:$0xff] }
0x22db   :  { %v4424_v32 = vmul.f32 1.442695, %v4421_v13  ;;  %v6130_v28 = vpack.c.bf16 %v5326_v27, %v5325_v25  ;;  %v6134_v13 = vpack.c.bf16 %v5328_v54, %v5327_v29 }
0x22dc   :  { %v4422_v33 = vmul.f32 1.442695, %v4420_v31  ;;  %v5334_v31 = vld [vmem:[%s6576_s13 + $0x88] sm:$0xff] }
0x22dd   :  { %6313 = vpow2.f32 %v4424_v32 }
0x22de   :  { %6315 = vpow2.f32 %v4422_v33 }
0x22e7   :  { %v6314_v34 = vpop.eup %6313 }
0x22e8   :  { %v6316_v37 = vpop.eup %6315  ;;  %v4429_v41 = vsel %vm228_vm1, %v6314_v34, 0.0 }
0x22e9   :  { %4430 = vadd.xlane.f32.xlu1 %v4429_v41  ;;  %v4426_v42 = vsel %vm228_vm1, %v6316_v37, 0.0  ;;  %v6138_v41 = vpack.c.bf16 %v5334_v31, %v5333_v30 }
0x22ea   :  { %4427 = vadd.xlane.f32.xlu0 %v4426_v42 }
0x2376   :  { %v4431_v49 = vpop.xlane.xlu1 %4430 }
0x2377   :  { %6317 = vrcp.f32 %v4431_v49  ;;  %v4428_v50 = vpop.xlane.xlu0 %4427 }
0x2378   :  { %6319 = vrcp.f32 %v4428_v50 }
0x2381   :  { %v6318_v52 = vpop.eup %6317 }
0x2382   :  { %v6320_v53 = vpop.eup %6319  ;;  %v4435_v55 = vmul.f32 %v6318_v52, %v6314_v34  ;;  %v5335_v34 = vld [vmem:[%s6576_s13 + $0x90] sm:$0xff]  ;;  %v5338_v52 = vld [vmem:[%s6576_s13 + $0xa8] sm:$0xff] }
0x2383   :  { %v4433_v56 = vmul.f32 %v6320_v53, %v6316_v37  ;;  %v5336_v37 = vld [vmem:[%s6576_s13 + $0x98] sm:$0xff] }
0x2384   :  { %v4437_v59 = vmul.f32 %v6932_v24, %v4435_v55  ;;  %v6142_v49 = vpack.c.bf16 %v5336_v37, %v5335_v34  ;;  %v5339_v55 = vld [vmem:[%s6576_s13 + $0xb0] sm:$0xff] }
0x2385   :  { %v4436_v58 = vmul.f32 %v6932_v24, %v4433_v56  ;;  %v5340_v56 = vld [vmem:[%s6576_s13 + $0xb8] sm:$0xff] }
0x2386   :  { %v4445_v35 = vsel %vm228_vm1, %v4437_v59, 0.0 }
0x2387   :  { %v4446_v60 = vrot.slane %v4445_v35, 4  ;;  %v4438_v61 = vsel %vm228_vm1, %v4436_v58, 0.0 }
0x2388   :  { %v4439_v62 = vrot.slane %v4438_v61, 4 }
0x2389   :  { %v4447_v63 = vadd.f32 %v4446_v60, %v4445_v35 }
0x238a   :  { %v4440_v1 = vadd.f32 %v4439_v62, %v4438_v61 }
0x238b   :  { %v4448_v2 = vrot.slane %v4447_v63, 2 }
0x238c   :  { %v4441_v36 = vrot.slane %v4440_v1, 2 }
0x238d   :  { %v4449_v4 = vadd.f32 %v4448_v2, %v4447_v63 }
0x238e   :  { %v4442_v51 = vadd.f32 %v4441_v36, %v4440_v1 }
0x238f   :  { %v4450_v6 = vrot.slane %v4449_v4, 1 }
0x2390   :  { %v4443_v8 = vrot.slane %v4442_v51, 1 }
0x2391   :  { %v4451_v10 = vadd.f32 %v4450_v6, %v4449_v4  ;;  %v5343_v6 = vld [vmem:[%s6581_s12] ss:$0 sm:$0xff] }
0x2392   :  { %v4444_v15 = vadd.f32 %v4443_v8, %v4442_v51 }
0x2393   :  { %6321 = vrsqrt.f32 %v4451_v10  ;;  %vm4453_vm6 = vcmp.gt.f32.partialorder %v4451_v10, 0.0 }
0x2394   :  { %6323 = vrsqrt.f32 %v4444_v15  ;;  %vm4452_vm7 = vcmp.gt.f32.partialorder %v4444_v15, 0.0 }
0x239d   :  { %v6322_v24 = vpop.eup %6321 }
0x239e   :  { %v6324_v5 = vpop.eup %6323  ;;  %v4457_v11 = vsel %vm4453_vm6, %v6322_v24, 0.0 }
0x239f   :  { %4462 = vbcast.lane.b32.xlu1 %v4457_v11, 256  ;;  %v4456_v21 = vsel %vm4452_vm7, %v6324_v5, 0.0 }
0x23a0   :  { %4459 = vbcast.lane.b32.xlu0 %v4456_v21, 256 }
0x2411   :  { %v4463_v45 = vpop.permute.xlu1 %4462 }
0x2412   :  { %v4460_v46 = vpop.permute.xlu0 %4459  ;;  %v4465_v19 = vmul.f32 %v4463_v45, %v4437_v59  ;;  %v6150_v59 = vpack.c.bf16 %v5340_v56, %v5339_v55 }
0x2413   :  { %v4464_v18 = vmul.f32 %v4460_v46, %v4436_v58 }
0x2414   :  { %v4467_v44 = vmul.f32 %v4465_v19, %v4457_v11 }
0x2415   :  { %v4466_v22 = vmul.f32 %v4464_v18, %v4456_v21 }
0x2417   :  { %5898 = vmatmul.mubr.msk.f32.vlgmr.msra.gmra.mrb[46].mxu0 %vm228_vm1, %v4466_v22 }
0x2418   :  { %5901 = vmatpush3.msra.mxu0 %v7085_v38  ;;  %5902 = vmatprep.mubr.msk.f32.mxu0 %vm6388_vm2, %v6387_v26 }
0x2419   :  { %6123 = vmatprep.subr.bf16.mxu0 %v6122_v20 }
0x241b   :  { %5903 = vmatmul.mubr.msk.f32.vlgmr.msra.gmra.mrb[48].mxu0 %vm228_vm1, %v4467_v44 }
0x241c   :  { %6125 = vmatpush3.bf16.msra.mxu0 %v6122_v20 }
0x241d   :  { %6127 = vmatprep.subr.bf16.mxu0 %v6126_v57 }
0x2420   :  { %6129 = vmatpush3.bf16.msra.mxu0 %v6126_v57 }
0x2421   :  { %6131 = vmatprep.subr.bf16.mxu0 %v6130_v28 }
0x2424   :  { %6133 = vmatpush3.bf16.msra.mxu0 %v6130_v28 }
0x2425   :  { %6135 = vmatprep.subr.bf16.mxu0 %v6134_v13 }
0x2428   :  { %6137 = vmatpush3.bf16.msra.mxu0 %v6134_v13 }
0x2429   :  { %6155 = vmatprep.subr.bf16.mxu0 %v6796_v12 }
0x24ea   :  { %v4626_v32 = vpop.f32.mrb[46].mxu0 }
0x24eb   :  { %v5899_v33 = vpop.f32.mrb[47].mxu0  ;;  %5921 = vmatprep.mubr.msk.f32.mxu0 %vm951_vm5, %v4626_v32  ;;  %5925 = vmatpush3.msra.mxu1 %v4626_v32 }
0x24ec   :  { %5927 = vmatmul.mubr.msk.f32.vlgmr.msra.gmra.mrb[42].mxu1 %vm228_vm1, %v4466_v22  ;;  %5929 = vmatprep.subr.mxu1 %v6387_v26 }
0x24ed   :  { %5931 = vmatprep.mubr.msk.f32.mxu1 %vm6388_vm2, %v6387_v26  ;;  %v5337_v26 = vld [vmem:[%s6576_s13 + $0xa0] sm:$0xff]  ;;  %s6390_s13 = smov [#allocation2]  }
0x24ee   :  { %v4699_v42 = vpop.f32.mrb[48].mxu0  ;;  %v6146_v53 = vpack.c.bf16 %v5338_v52, %v5337_v26  ;;  %s5140_s12 = sshll.u32 %s6390_s13, 4  ;;  %s5141_s12 = int_to_ptr.vmem [resolvable:$true] %s5140_s12 }
0x24ef   :  { %v5904_v50 = vpop.f32.mrb[49].mxu0  ;;  %5922 = vmatmul.mubr.msk.f32.vlgmr.msra.gmra.mrb[50].mxu0 %vm951_vm5, %v4699_v42  ;;  %5930 = vmatpush3.msra.mxu1 %v4699_v42  ;;  %s6326_s16 = scalar_lea.vmem %s5141_s12, 256  ;;  %p6331_p1 = scmp.lt.s32.totalorder %s5141_s12, %s5141_s12 }
0x24f0   :  { %5932 = vmatmul.mubr.msk.f32.vlgmr.msra.gmra.mrb[44].mxu1 %vm228_vm1, %v4467_v44  ;;  %6139 = vmatprep.subr.bf16.mxu1 %v6138_v41  ;;  %p6327_p0 = scmp.ne.s32.totalorder %s5141_s12, %s6326_s16  ;;  %p6332_p2 = scmp.lt.s32.totalorder %s6326_s16, %s6326_s16 }
0x24f1   :  { %6141 = vmatpush3.bf16.msra.mxu1 %v6138_v41  ;;  %6157 = vmatpush3.bf16.msra.mxu0 %v6796_v12 }
0x24f2   :  { %6143 = vmatprep.subr.bf16.mxu1 %v6142_v49  ;;  %6159 = vmatprep.subr.bf16.mxu0 %v6802_v16  ;;  %p6333_p3 = por %p6332_p2, %p6331_p1 }
0x24f4   :  { %p6334_p4 = pnand %p6333_p3, %p6327_p0 }
0x24f5   :  { %6145 = vmatpush3.bf16.msra.mxu1 %v6142_v49  ;;  %6161 = vmatpush3.bf16.msra.mxu0 %v6802_v16 }
0x24f6   :  { %6147 = vmatprep.subr.bf16.mxu1 %v6146_v53 }
0x24f9   :  { %6149 = vmatpush3.bf16.msra.mxu1 %v6146_v53 }
0x24fa   :  { %6151 = vmatprep.subr.bf16.mxu1 %v6150_v59 }
0x24fd   :  { %6153 = vmatpush3.bf16.msra.mxu1 %v6150_v59 }
0x25bf   :  { %v4861_v58 = vpop.f32.mrb[42].mxu1 }
0x25c0   :  { %v4935_v35 = vmul.f32 2.0, %v4861_v58  ;;  %v5928_v12 = vpop.f32.mrb[43].mxu1 }
0x25c2   :  { %v4937_v60 = vsub.f32 %v4935_v35, %v7087_v40  ;;  %v5923_v61 = vpop.f32.mrb[50].mxu0 }
0x25c3   :  { %v4794_v62 = vsub.f32 %v7109_v48, %v5923_v61  ;;  %v4784_v16 = vpop.f32.mrb[51].mxu0  ;;  %v4931_v63 = vpop.f32.mrb[44].mxu1 }
0x25c4   :  { %v4793_v1 = vsub.f32 %v7111_v9, %v4784_v16  ;;  %v4936_v2 = vmul.f32 2.0, %v4931_v63  ;;  %v5933_v36 = vpop.f32.mrb[45].mxu1  ;;  %5950 = vmatprep.mubr.msk.f32.mxu1 %vm951_vm5, %v4937_v60  ;;  %v5127_v9 = vsub.s32 2, %v6604_v14 }
0x25c6   :  { %v4938_v4 = vsub.f32 %v4936_v2, %v7085_v38  ;;  %v5128_v21 = vrot.slane %v7023_v47, %v5127_v9 }
0x25c8   :  { %5951 = vmatmul.mubr.msk.f32.vlgmr.msra.gmra.mrb[46].mxu1 %vm951_vm5, %v4938_v4 }
0x269b   :  { %v5952_v51 = vpop.f32.mrb[46].mxu1 }
0x269c   :  { %v5030_v8 = vadd.f32 %v5952_v51, %v4794_v62  ;;  %v5020_v10 = vpop.f32.mrb[47].mxu1 }
0x269d   :  { %v5029_v40 = vadd.f32 %v5020_v10, %v4793_v1 }
0x269e   :  { %v5039_v15 = vadd.f32 %v5343_v6, %v5030_v8 }
0x269f   :  { %v5038_v24 = vadd.f32 %v5343_v6, %v5029_v40 }
0x26a0   :  { %v5041_v5 = vmax.f32 %v5039_v15, 0.0 }
0x26a1   :  { %v5040_v48 = vmax.f32 %v5038_v24, 0.0 }
0x26a3   :  { %5961 = vmatprep.mubr.msk.f32.mxu0 %vm1737_vm9, %v5040_v48 }
0x26a4   :  { %5962 = vmatmul.mubr.msk.f32.vlgmr.msra.gmra.mrb[52].mxu0 %vm1737_vm9, %v5041_v5 }
0x2777   :  { %v5963_v11 = vpop.f32.mrb[52].mxu0 }
0x2778   :  { %v5120_v38 = vadd.f32 %v5963_v11, %v7016_v39  ;;  %v5114_v45 = vpop.f32.mrb[53].mxu0 }
0x2779   :  { %v5115_v46 = vadd.f32 %v7016_v39, %v5114_v45 }
0x277a   :  { %v5124_v17 = vmax.f32 %v5120_v38, 0.0 }
0x277b   :  { %v5123_v3 = vmax.f32 %v5115_v46, 0.0 }
0x277c   :  { %v5130_v18 = vmul.f32 %v5128_v21, %v5124_v17 }
0x277d   :  { %v5129_v19 = vmul.f32 %v5128_v21, %v5123_v3 }
0x277e   :  { %v5132_v22 = vadd.f32 %v5130_v18, %v7033_v0 }
0x277f   :  { %v5131_v20 = vadd.f32 %v5129_v19, %v7035_v7 }
0x2780   :  { %5134 = vst.msk [vmem:[#allocation2 + $0x8] sm:$0xff] %vm1837_vm8, %v5132_v22 }
0x2781   :  { %5133 = vst.msk [vmem:[#allocation2] sm:$0xff] %vm1837_vm8, %v5131_v20 }
0x2782   :  { %6337 = shalt.err (!%p6334_p4)
}
0x2783   :  { %s6338_s18 = scalar_lea.hbm %s6586_s27, 256 }
0x2784   :  { %p6339_p5 = scmp.ne.s32.totalorder %s6586_s27, %s6338_s18  ;;  %p6342_p6 = scmp.lt.u32.totalorder %s6338_s18, %s6586_s27 }
0x2786   :  { %p6344_p7 = pnand %p6342_p6, %p6339_p5 }
0x2788   :  { %6347 = shalt.err (!%p6344_p7)
}
0x2789   :  { %s6391_s22 = smov 128   ;;  %s6392_s23 = smov 8  }
0x278a   :  { %5146 = dma.vmem_to_hbm [thread:$0]  %s5141_s12, 256, %s6586_s27, [#allocation3], %s6391_s22, %s6391_s22, %s6392_s23  }
0x278b   :  { %6348 = dma.done.wait [#allocation3], 256  }
0x278c   :  { %6349 = vsyncadd [#allocation3], 4294967040 }
0x278d   :  { %5150 = vsyncpa [#allocation3], 1 }

</bundles_post_ra>
